<compile_context>
chip_gen: v7x
topology: tpu7x:2x2x1
jax: 0.10.0
libtpu: 0.0.40
codegen_flags: <defaults>
</compile_context>

<pallas_src>
import functools

import jax
import jax.numpy as jnp
from jax.experimental import pallas as pl
from jax.experimental.pallas import tpu as pltpu

LANE = 128


def _round_up(x, m):
    return (x + m - 1) // m * m


def _pick_co_tile(cout_p):
    kind = ""
    try:
        kind = jax.devices()[0].device_kind.lower()
    except Exception:
        pass
    if "v5 lite" in kind or "v5e" in kind:
        return 128          # v5e MXU is 4x128^2: 256-wide tiles only add pressure
    return 256 if cout_p % 256 == 0 else 128


def _pick_row_chunk(oh, wp, co_tile):
    # keep the per-chunk f32 accumulator (rc*wp, co_tile) vreg-sized
    budget = 128 if co_tile >= 256 else 192
    rc = 1
    for d in range(1, oh + 1):
        if oh % d == 0 and d * wp <= budget:
            rc = d
    return rc


# ----------------------------------------------------------------------------
# Pallas kernel: fused 3x3 conv + folded BN [+ residual | + fused 1x1-proj
# shortcut (+ its BN)] [+ ReLU], plane-layout in / plane-layout out.
# ----------------------------------------------------------------------------
def _conv3x3_kernel(xph_ref, w_ref, scale_ref, shift_ref, *rest,
                    stride, oh, ow, rc, relu, res_mode):
    if res_mode == "add":
        res_ref, out_ref = rest
    elif res_mode == "proj":
        xs_ref, ws_ref, sscale_ref, sshift_ref, out_ref = rest
    else:
        (out_ref,) = rest

    s = stride
    wp = ow + 2                       # plane width (input plane == output plane)
    m = rc * wp                       # rows of the per-chunk accumulator
    co = out_ref.shape[-1]
    phw = out_ref.shape[1]            # (oh + 3) * wp
    n_chunks = oh // rc
    out_dtype = out_ref.dtype

    scale = scale_ref[...]
    shift = shift_ref[...]
    if res_mode == "proj":
        ws = ws_ref[...]
        sscale = sscale_ref[...]
        sshift = sshift_ref[...]

    # Columns >= ow of every plane row are halo/garbage -> forced to zero so the
    # stored plane is directly consumable as the next conv's zero-padded input.
    col = jax.lax.broadcasted_iota(jnp.int32, (m, 1), 0) % wp
    valid = col < ow

    # Zero the top halo row (+ left pad of the first data row) and the bottom
    # halo/safety rows once per grid step; the chunk stores cover everything else.
    out_ref[0, pl.ds(0, wp + 1), :] = jnp.zeros((wp + 1, co), out_dtype)
    tail = (oh + 1) * wp + 1
    out_ref[0, pl.ds(tail, phw - tail), :] = jnp.zeros((phw - tail, co), out_dtype)

    def chunk(ci):
        r0 = ci * rc
        acc = jnp.zeros((m, co), jnp.float32)
        # 9 taps: one contiguous flat-window load + one MXU dot each; the f32
        # accumulator for this chunk stays in vregs and is stored exactly once.
        for i in range(3):
            di, pi = i // s, i % s
            for j in range(3):
                dj, pj = j // s, j % s
                p = pi * s + pj
                patch = xph_ref[0, p, pl.ds((r0 + di) * wp + dj, m), :]
                acc = acc + jnp.dot(patch, w_ref[i * 3 + j],
                                    preferred_element_type=jnp.float32)

        y = acc * scale + shift                     # folded BN (f32 epilogue)
        roff = (1 + r0) * wp + 1                    # (+1,+1) halo offset in the plane
        if res_mode == "add":                       # identity shortcut
            y = y + res_ref[0, 0, pl.ds(roff, m), :].astype(jnp.float32)
        elif res_mode == "proj":                    # fused 1x1-conv + BN shortcut
            sc = jnp.dot(xs_ref[0, 0, pl.ds(roff, m), :], ws,
                         preferred_element_type=jnp.float32)
            y = y + sc * sscale + sshift
        if relu:
            y = jnp.maximum(y, 0.0)
        y = jnp.where(valid, y, 0.0)                # zero halo/garbage columns
        out_ref[0, pl.ds(roff, m), :] = y.astype(out_dtype)

    if n_chunks == 1:
        chunk(0)
    else:
        def body(ci, carry):
            chunk(ci)
            return carry
        jax.lax.fori_loop(0, n_chunks, body, 0)


def conv3x3_bn_plane(xph, w, scale, shift, *, stride, oh, ow, relu,
                     residual=None, shortcut=None):
    """One fused Pallas call: 3x3 conv (pad=1, no bias) + folded BN
    [+ residual | + fused 1x1 projection shortcut] [+ ReLU].

    xph:   (N, s*s, (oh+3)*(ow+2), Cin_eff) bf16 zero-padded flattened phase planes.
    w:     (9, Cin_eff, Cout_p) bf16 taps row-major (kh, kw).
    scale/shift: (1, Cout_p) f32 folded BN.
    residual: optional plane-layout tensor (N, 1, phw, Cout_p) added before ReLU.
    shortcut: optional (xs_plane, ws, sscale, sshift) fused 1x1-conv + BN shortcut.
    Returns (N, (oh+3)*(ow+2), Cout_p) bf16 in the SAME plane layout (halo zeroed),
    directly consumable as the next stride-1 conv's input.
    """
    N, ss, phw, cin_eff = xph.shape
    cout_p = w.shape[-1]
    wp = ow + 2
    assert ss == stride * stride and phw == (oh + 3) * wp

    co_tile = _pick_co_tile(cout_p)
    if cout_p % co_tile:
        co_tile = LANE
    n_co = cout_p // co_tile
    rc = _pick_row_chunk(oh, wp, co_tile)

    # Size-aware grid order: keep the larger operand resident across the inner axis.
    w_bytes = w.size * w.dtype.itemsize
    a_bytes = xph.size * xph.dtype.itemsize
    if shortcut is not None:
        a_bytes += shortcut[0].size * shortcut[0].dtype.itemsize
        w_bytes += shortcut[1].size * shortcut[1].dtype.itemsize
    n_first = (N * w_bytes + a_bytes) <= (n_co * a_bytes + w_bytes)

    if n_first:
        grid = (N, n_co)
        x_map = lambda n, c: (n, 0, 0, 0)
        w_map = lambda n, c: (0, 0, c)
        v_map = lambda n, c: (0, c)
        o_map = lambda n, c: (n, 0, c)
        r_map = lambda n, c: (n, 0, 0, c)
        s_map = lambda n, c: (n, 0, 0, 0)
    else:
        grid = (n_co, N)
        x_map = lambda c, n: (n, 0, 0, 0)
        w_map = lambda c, n: (0, 0, c)
        v_map = lambda c, n: (0, c)
        o_map = lambda c, n: (n, 0, c)
        r_map = lambda c, n: (n, 0, 0, c)
        s_map = lambda c, n: (n, 0, 0, 0)

    in_specs = [
        pl.BlockSpec((1, ss, phw, cin_eff), x_map),
        pl.BlockSpec((9, cin_eff, co_tile), w_map),
        pl.BlockSpec((1, co_tile), v_map),
        pl.BlockSpec((1, co_tile), v_map),
    ]
    args = [xph, w, scale, shift]
    flops = 2 * N * oh * wp * cin_eff * cout_p * 9
    blk = (ss * phw * cin_eff * 2 + 9 * cin_eff * co_tile * 2
           + 2 * co_tile * 4 + phw * co_tile * 2)

    if residual is not None:
        res_mode = "add"
        in_specs.append(pl.BlockSpec((1, 1, phw, co_tile), r_map))
        args.append(residual)
        blk += phw * co_tile * 2
    elif shortcut is not None:
        res_mode = "proj"
        xs, wsm, sscale, sshift = shortcut
        cs = xs.shape[-1]
        in_specs += [
            pl.BlockSpec((1, 1, phw, cs), s_map),
            pl.BlockSpec((cs, co_tile), v_map),
            pl.BlockSpec((1, co_tile), v_map),
            pl.BlockSpec((1, co_tile), v_map),
        ]
        args += [xs, wsm, sscale, sshift]
        flops += 2 * N * oh * wp * cs * cout_p
        blk += phw * cs * 2 + cs * co_tile * 2 + 2 * co_tile * 4
    else:
        res_mode = None

    # HBM traffic hint that accounts for the chosen re-fetch order.
    out_bytes = N * phw * cout_p * 2
    if n_first:
        bytes_accessed = a_bytes + N * w_bytes + out_bytes
    else:
        bytes_accessed = n_co * a_bytes + w_bytes + out_bytes
    if residual is not None:
        bytes_accessed += residual.size * residual.dtype.itemsize

    vmem_limit = int(min(max(2 * blk + (4 << 20), 16 << 20), 60 << 20))
    kernel = functools.partial(_conv3x3_kernel, stride=stride, oh=oh, ow=ow,
                               rc=rc, relu=relu, res_mode=res_mode)
    return pl.pallas_call(
        kernel,
        out_shape=jax.ShapeDtypeStruct((N, phw, cout_p), jnp.bfloat16),
        grid=grid,
        in_specs=in_specs,
        out_specs=pl.BlockSpec((1, phw, co_tile), o_map),
        compiler_params=pltpu.CompilerParams(
            dimension_semantics=("parallel", "parallel"),
            vmem_limit_bytes=vmem_limit),
        cost_estimate=pl.CostEstimate(
            flops=int(flops), transcendentals=0,
            bytes_accessed=int(bytes_accessed)),
    )(*args)


# ----------------------------------------------------------------------------
# Plain-JAX glue: plane construction, BN folding, weight repack
# ----------------------------------------------------------------------------
def _to_plane(x_nhwc, stride, oh, ow):
    """Zero-padded (pad=1), stride-phase-decomposed, spatially-flattened plane.

    Returns (N, stride*stride, (oh+3)*(ow+2), C).  plane[(pi,pj)][r*wp + c] holds
    xpad[stride*r + pi, stride*c + pj], so every 3x3 tap inside the kernel is a
    single contiguous flat window of one phase plane.
    """
    n, hin, win, c = x_nhwc.shape
    s = stride
    wp, php = ow + 2, oh + 3
    xp = jnp.pad(x_nhwc, ((0, 0), (1, s * php - hin - 1),
                          (1, s * wp - win - 1), (0, 0)))
    xp = xp.reshape(n, php, s, wp, s, c).transpose(0, 2, 4, 1, 3, 5)
    return xp.reshape(n, s * s, php * wp, c)


def _fold_bn(g, b, m, v, eps=1e-5):
    scale = g / jnp.sqrt(v + eps)
    return scale, b - m * scale


def _pad_co(v, cout_p):
    return jnp.pad(v, (0, cout_p - v.shape[0])).reshape(1, cout_p).astype(jnp.float32)


def _pack_w3x3(w, cin_eff, cout_p):
    # (Cout, Cin, 3, 3) -> (9, cin_eff, cout_p) bf16, taps row-major (kh, kw)
    co, ci = w.shape[0], w.shape[1]
    wt = jnp.transpose(w, (2, 3, 1, 0)).reshape(9, ci, co)
    wt = jnp.pad(wt, ((0, 0), (0, cin_eff - ci), (0, cout_p - co)))
    return wt.astype(jnp.bfloat16)


def residual_block_forward(x_nchw, params, *, stride):
    """Inference-mode ResidualBlock forward (BN folded with running statistics)."""
    N, cin, H, W = x_nchw.shape
    cout = params["w1"].shape[0]
    cout_p = _round_up(cout, LANE)
    use_proj = (stride != 1) or (cin != cout)

    OH = (H - 1) // stride + 1
    OW = (W - 1) // stride + 1

    scale1, shift1 = _fold_bn(params["bn1_g"], params["bn1_b"],
                              params["bn1_m"], params["bn1_v"])
    scale2, shift2 = _fold_bn(params["bn2_g"], params["bn2_b"],
                              params["bn2_m"], params["bn2_v"])

    # NCHW -> NHWC bf16.  Projection blocks keep conv1's input channels
    # UNPADDED (avoids 4-8x zero-pad DMA bytes for small Cin); identity blocks
    # pad once so the same buffer doubles as kernel 2's residual operand.
    x = jnp.transpose(x_nchw, (0, 2, 3, 1)).astype(jnp.bfloat16)
    if use_proj:
        cin_eff = cin
        x_k1 = x
    else:
        cin_eff = cout_p
        x_k1 = jnp.pad(x, ((0, 0), (0, 0), (0, 0), (0, cout_p - cin)))

    w1 = _pack_w3x3(params["w1"], cin_eff, cout_p)
    w2 = _pack_w3x3(params["w2"], cout_p, cout_p)

    xph1 = _to_plane(x_k1, stride, OH, OW)          # (N, s*s, (OH+3)*(OW+2), cin_eff)

    # kernel 1: conv1 + BN1 + ReLU, written directly in the zero-padded plane
    # layout kernel 2 consumes (no inter-kernel pad/reshape HBM pass).
    h_plane = conv3x3_bn_plane(xph1, w1, _pad_co(scale1, cout_p),
                               _pad_co(shift1, cout_p),
                               stride=stride, oh=OH, ow=OW, relu=True)
    h_plane = h_plane.reshape(N, 1, (OH + 3) * (OW + 2), cout_p)

    # kernel 2: conv2 + BN2 + shortcut + ReLU, all fused in one pallas_call.
    if use_proj:
        ws = jnp.transpose(params["ws"], (2, 3, 1, 0)).reshape(cin, cout)
        ws = jnp.pad(ws, ((0, 0), (0, cout_p - cout))).astype(jnp.bfloat16)
        ss, sh = _fold_bn(params["bns_g"], params["bns_b"],
                          params["bns_m"], params["bns_v"])
        # TODO(synk): feed the 1x1 shortcut from phase (1,1) of xph1 instead of
        # this (small) strided-slice copy.
        xs = _to_plane(x[:, ::stride, ::stride, :], 1, OH, OW)
        y_plane = conv3x3_bn_plane(
            h_plane, w2, _pad_co(scale2, cout_p), _pad_co(shift2, cout_p),
            stride=1, oh=OH, ow=OW, relu=True,
            shortcut=(xs, ws, _pad_co(ss, cout_p), _pad_co(sh, cout_p)))
    else:
        y_plane = conv3x3_bn_plane(
            h_plane, w2, _pad_co(scale2, cout_p), _pad_co(shift2, cout_p),
            stride=1, oh=OH, ow=OW, relu=True, residual=xph1)

    y = y_plane.reshape(N, OH + 3, OW + 2, cout_p)[:, 1:1 + OH, 1:1 + OW, :cout]
    return jnp.transpose(y, (0, 3, 1, 2)).astype(jnp.float32)


# ----------------------------------------------------------------------------
# Reference (plain JAX) and test harness
# ----------------------------------------------------------------------------
def _reference_forward(x_nchw, params, *, stride):
    eps = 1e-5
    dn = ("NHWC", "HWIO", "NHWC")

    def bn(y, g, b, m, v):
        return (y - m) / jnp.sqrt(v + eps) * g + b

    def conv(inp, w, s, pad):
        wt = jnp.transpose(w, (2, 3, 1, 0)).astype(jnp.bfloat16).astype(jnp.float32)
        return jax.lax.conv_general_dilated(
            inp, wt, window_strides=(s, s),
            padding=[(pad, pad), (pad, pad)], dimension_numbers=dn)

    x = jnp.transpose(x_nchw, (0, 2, 3, 1)).astype(jnp.bfloat16).astype(jnp.float32)
    h = jax.nn.relu(bn(conv(x, params["w1"], stride, 1), params["bn1_g"],
                       params["bn1_b"], params["bn1_m"], params["bn1_v"]))
    h = h.astype(jnp.bfloat16).astype(jnp.float32)   # kernel keeps bf16 activations
    out = bn(conv(h, params["w2"], 1, 1), params["bn2_g"],
             params["bn2_b"], params["bn2_m"], params["bn2_v"])
    cin, cout = x_nchw.shape[1], params["w1"].shape[0]
    if stride != 1 or cin != cout:
        sc = bn(conv(x, params["ws"], stride, 0), params["bns_g"],
                params["bns_b"], params["bns_m"], params["bns_v"])
    else:
        sc = x
    return jnp.transpose(jax.nn.relu(out + sc), (0, 3, 1, 2))


def init_params(key, cin, cout, stride):
    keys = jax.random.split(key, 6)

    def conv_w(k, co, ci, kh, kw):
        bound = 1.0 / float((ci * kh * kw) ** 0.5)
        return jax.random.uniform(k, (co, ci, kh, kw), jnp.float32, -bound, bound)

    def bn_p(k):
        k1, k2, k3, k4 = jax.random.split(k, 4)
        return dict(g=jax.random.uniform(k1, (cout,), jnp.float32, 0.5, 1.5),
                    b=jax.random.normal(k2, (cout,), jnp.float32) * 0.1,
                    m=jax.random.normal(k3, (cout,), jnp.float32) * 0.1,
                    v=jax.random.uniform(k4, (cout,), jnp.float32, 0.5, 1.5))

    p = {"w1": conv_w(keys[0], cout, cin, 3, 3),
         "w2": conv_w(keys[1], cout, cout, 3, 3)}
    for name, d in (("bn1", bn_p(keys[2])), ("bn2", bn_p(keys[3]))):
        for kk, vv in d.items():
            p[f"{name}_{kk}"] = vv
    if stride != 1 or cin != cout:
        p["ws"] = conv_w(keys[4], cout, cin, 1, 1)
        for kk, vv in bn_p(keys[5]).items():
            p[f"bns_{kk}"] = vv
    return p


if __name__ == "__main__":
    fwd = jax.jit(residual_block_forward, static_argnames=("stride",))
    key = jax.random.PRNGKey(0)
    kx1, kx2, kp1, kp2 = jax.random.split(key, 4)

    # Case 1: downsampling block (stride=2, Cin != Cout -> projection shortcut)
    x1 = jax.random.normal(kx1, (2, 16, 16, 16), jnp.float32)   # NCHW
    p1 = init_params(kp1, cin=16, cout=32, stride=2)
    y1 = jax.block_until_ready(fwd(x1, p1, stride=2))
    r1 = _reference_forward(x1, p1, stride=2)
    assert y1.shape == (2, 32, 8, 8), y1.shape
    assert jnp.allclose(y1, r1, rtol=3e-2, atol=3e-2), float(jnp.max(jnp.abs(y1 - r1)))

    # Case 2: identity-shortcut block (stride=1, Cin == Cout)
    x2 = jax.random.normal(kx2, (2, 32, 16, 16), jnp.float32)
    p2 = init_params(kp2, cin=32, cout=32, stride=1)
    y2 = jax.block_until_ready(fwd(x2, p2, stride=1))
    r2 = _reference_forward(x2, p2, stride=1)
    assert y2.shape == (2, 32, 16, 16), y2.shape
    assert jnp.allclose(y2, r2, rtol=3e-2, atol=3e-2), float(jnp.max(jnp.abs(y2 - r2)))

    print("KERNEL_OK")
</pallas_src>

<mosaic_0001>
module attributes {stable_mosaic.version = 11 : i64} {
  func.func @_conv3x3_kernel(%arg0: i32, %arg1: i32, %arg2: memref<1x4x110x16xbf16, #tpu.memory_space<vmem>>, %arg3: memref<9x16x128xbf16, #tpu.memory_space<vmem>>, %arg4: memref<1x128xf32, #tpu.memory_space<vmem>>, %arg5: memref<1x128xf32, #tpu.memory_space<vmem>>, %arg6: memref<1x110x128xbf16, #tpu.memory_space<vmem>>) attributes {dimension_semantics = [#tpu.dimension_semantics<parallel>, #tpu.dimension_semantics<parallel>], iteration_bounds = array<i64: 1, 2>, scalar_prefetch = 0 : i64, scratch_operands = 0 : i64, tpu.core_type = #tpu.core_type<tc>, window_params = [{transform_indices = @transform_0, window_bounds = array<i64: 1, 4, 110, 16>}, {transform_indices = @transform_1, window_bounds = array<i64: 9, 16, 128>}, {transform_indices = @transform_2, window_bounds = array<i64: 1, 128>}, {transform_indices = @transform_3, window_bounds = array<i64: 1, 128>}, {transform_indices = @transform_4, window_bounds = array<i64: 1, 110, 128>}]} {
    %c0 = arith.constant 0 : index
    %c0_0 = arith.constant 0 : index
    %0 = vector.load %arg4[%c0, %c0_0] : memref<1x128xf32, #tpu.memory_space<vmem>>, vector<1x128xf32>
    %c0_1 = arith.constant 0 : index
    %c0_2 = arith.constant 0 : index
    %1 = vector.load %arg5[%c0_1, %c0_2] : memref<1x128xf32, #tpu.memory_space<vmem>>, vector<1x128xf32>
    %2 = tpu.iota {dimensions = array<i32: 0>} : vector<80x1xi32>
    %c10_i32 = arith.constant 10 : i32
    %c0_i32 = arith.constant 0 : i32
    %3 = arith.cmpi eq, %c10_i32, %c0_i32 : i32
    %c1_i32 = arith.constant 1 : i32
    %4 = arith.select %3, %c1_i32, %c10_i32 : i32
    %5 = vector.broadcast %4 : i32 to vector<80x1xi32>
    %6 = arith.remsi %2, %5 : vector<80x1xi32>
    %c0_i32_3 = arith.constant 0 : i32
    %7 = vector.broadcast %c0_i32_3 : i32 to vector<80x1xi32>
    %8 = arith.cmpi ne, %6, %7 : vector<80x1xi32>
    %c0_i32_4 = arith.constant 0 : i32
    %9 = vector.broadcast %c0_i32_4 : i32 to vector<80x1xi32>
    %10 = arith.cmpi slt, %6, %9 : vector<80x1xi32>
    %c0_i32_5 = arith.constant 0 : i32
    %11 = arith.cmpi slt, %4, %c0_i32_5 : i32
    %12 = vector.broadcast %11 : i1 to vector<80x1xi1>
    %13 = vector.broadcast %12 : vector<80x1xi1> to vector<80x1xi1>
    %14 = arith.xori %10, %13 : vector<80x1xi1>
    %15 = arith.andi %14, %8 : vector<80x1xi1>
    %16 = vector.broadcast %4 : i32 to vector<80x1xi32>
    %17 = arith.addi %6, %16 : vector<80x1xi32>
    %18 = arith.select %15, %17, %6 : vector<80x1xi1>, vector<80x1xi32>
    %c8_i32 = arith.constant 8 : i32
    %19 = vector.broadcast %c8_i32 : i32 to vector<80x1xi32>
    %20 = arith.cmpi slt, %18, %19 : vector<80x1xi32>
    %cst = arith.constant 0.000000e+00 : bf16
    %21 = vector.broadcast %cst : bf16 to vector<11x128xbf16>
    %c0_6 = arith.constant 0 : index
    %c0_7 = arith.constant 0 : index
    %c0_8 = arith.constant 0 : index
    %22 = vector.load %arg6[%c0_6, %c0_7, %c0_8] : memref<1x110x128xbf16, #tpu.memory_space<vmem>>, vector<1x11x128xbf16>
    %23 = vector.shape_cast %22 : vector<1x11x128xbf16> to vector<11x128xbf16>
    %24 = vector.shape_cast %21 : vector<11x128xbf16> to vector<1x11x128xbf16>
    tpu.vector_store %arg6[%c0_6, %c0_7, %c0_8], %24 {strides = array<i32>} : memref<1x110x128xbf16, #tpu.memory_space<vmem>>, vector<1x11x128xbf16>,
    %cst_9 = arith.constant 0.000000e+00 : bf16
    %25 = vector.broadcast %cst_9 : bf16 to vector<19x128xbf16>
    %c0_10 = arith.constant 0 : index
    %c91 = arith.constant 91 : index
    %c0_11 = arith.constant 0 : index
    %26 = vector.load %arg6[%c0_10, %c91, %c0_11] : memref<1x110x128xbf16, #tpu.memory_space<vmem>>, vector<1x19x128xbf16>
    %27 = vector.shape_cast %26 : vector<1x19x128xbf16> to vector<19x128xbf16>
    %28 = vector.shape_cast %25 : vector<19x128xbf16> to vector<1x19x128xbf16>
    tpu.vector_store %arg6[%c0_10, %c91, %c0_11], %28 {strides = array<i32>} : memref<1x110x128xbf16, #tpu.memory_space<vmem>>, vector<1x19x128xbf16>,
    %cst_12 = arith.constant 0.000000e+00 : f32
    %29 = vector.broadcast %cst_12 : f32 to vector<80x128xf32>
    %c0_13 = arith.constant 0 : index
    %c0_14 = arith.constant 0 : index
    %c0_15 = arith.constant 0 : index
    %c0_16 = arith.constant 0 : index
    %30 = vector.load %arg2[%c0_13, %c0_14, %c0_15, %c0_16] : memref<1x4x110x16xbf16, #tpu.memory_space<vmem>>, vector<1x1x80x16xbf16>
    %31 = vector.shape_cast %30 : vector<1x1x80x16xbf16> to vector<80x16xbf16>
    %c0_17 = arith.constant 0 : index
    %c0_18 = arith.constant 0 : index
    %c0_19 = arith.constant 0 : index
    %32 = vector.load %arg3[%c0_17, %c0_18, %c0_19] : memref<9x16x128xbf16, #tpu.memory_space<vmem>>, vector<1x16x128xbf16>
    %33 = vector.shape_cast %32 : vector<1x16x128xbf16> to vector<16x128xbf16>
    %cst_20 = arith.constant dense<0.000000e+00> : vector<80x128xf32>
    %34 = tpu.matmul %31, %33, %cst_20 {dimension_numbers = #tpu.dot_dimension_numbers<[1], [0], [0], [1], [0, 0, 1, 1], [], []>} : vector<80x16xbf16>, vector<16x128xbf16>, vector<80x128xf32> -> vector<80x128xf32>
    %35 = arith.addf %29, %34 : vector<80x128xf32>
    %c0_21 = arith.constant 0 : index
    %c1 = arith.constant 1 : index
    %c0_22 = arith.constant 0 : index
    %c0_23 = arith.constant 0 : index
    %36 = vector.load %arg2[%c0_21, %c1, %c0_22, %c0_23] : memref<1x4x110x16xbf16, #tpu.memory_space<vmem>>, vector<1x1x80x16xbf16>
    %37 = vector.shape_cast %36 : vector<1x1x80x16xbf16> to vector<80x16xbf16>
    %c1_24 = arith.constant 1 : index
    %c0_25 = arith.constant 0 : index
    %c0_26 = arith.constant 0 : index
    %38 = vector.load %arg3[%c1_24, %c0_25, %c0_26] : memref<9x16x128xbf16, #tpu.memory_space<vmem>>, vector<1x16x128xbf16>
    %39 = vector.shape_cast %38 : vector<1x16x128xbf16> to vector<16x128xbf16>
    %cst_27 = arith.constant dense<0.000000e+00> : vector<80x128xf32>
    %40 = tpu.matmul %37, %39, %cst_27 {dimension_numbers = #tpu.dot_dimension_numbers<[1], [0], [0], [1], [0, 0, 1, 1], [], []>} : vector<80x16xbf16>, vector<16x128xbf16>, vector<80x128xf32> -> vector<80x128xf32>
    %41 = arith.addf %35, %40 : vector<80x128xf32>
    %c0_28 = arith.constant 0 : index
    %c0_29 = arith.constant 0 : index
    %c1_30 = arith.constant 1 : index
    %c0_31 = arith.constant 0 : index
    %42 = vector.load %arg2[%c0_28, %c0_29, %c1_30, %c0_31] : memref<1x4x110x16xbf16, #tpu.memory_space<vmem>>, vector<1x1x80x16xbf16>
    %43 = vector.shape_cast %42 : vector<1x1x80x16xbf16> to vector<80x16xbf16>
    %c2 = arith.constant 2 : index
    %c0_32 = arith.constant 0 : index
    %c0_33 = arith.constant 0 : index
    %44 = vector.load %arg3[%c2, %c0_32, %c0_33] : memref<9x16x128xbf16, #tpu.memory_space<vmem>>, vector<1x16x128xbf16>
    %45 = vector.shape_cast %44 : vector<1x16x128xbf16> to vector<16x128xbf16>
    %cst_34 = arith.constant dense<0.000000e+00> : vector<80x128xf32>
    %46 = tpu.matmul %43, %45, %cst_34 {dimension_numbers = #tpu.dot_dimension_numbers<[1], [0], [0], [1], [0, 0, 1, 1], [], []>} : vector<80x16xbf16>, vector<16x128xbf16>, vector<80x128xf32> -> vector<80x128xf32>
    %47 = arith.addf %41, %46 : vector<80x128xf32>
    %c0_35 = arith.constant 0 : index
    %c2_36 = arith.constant 2 : index
    %c0_37 = arith.constant 0 : index
    %c0_38 = arith.constant 0 : index
    %48 = vector.load %arg2[%c0_35, %c2_36, %c0_37, %c0_38] : memref<1x4x110x16xbf16, #tpu.memory_space<vmem>>, vector<1x1x80x16xbf16>
    %49 = vector.shape_cast %48 : vector<1x1x80x16xbf16> to vector<80x16xbf16>
    %c3 = arith.constant 3 : index
    %c0_39 = arith.constant 0 : index
    %c0_40 = arith.constant 0 : index
    %50 = vector.load %arg3[%c3, %c0_39, %c0_40] : memref<9x16x128xbf16, #tpu.memory_space<vmem>>, vector<1x16x128xbf16>
    %51 = vector.shape_cast %50 : vector<1x16x128xbf16> to vector<16x128xbf16>
    %cst_41 = arith.constant dense<0.000000e+00> : vector<80x128xf32>
    %52 = tpu.matmul %49, %51, %cst_41 {dimension_numbers = #tpu.dot_dimension_numbers<[1], [0], [0], [1], [0, 0, 1, 1], [], []>} : vector<80x16xbf16>, vector<16x128xbf16>, vector<80x128xf32> -> vector<80x128xf32>
    %53 = arith.addf %47, %52 : vector<80x128xf32>
    %c0_42 = arith.constant 0 : index
    %c3_43 = arith.constant 3 : index
    %c0_44 = arith.constant 0 : index
    %c0_45 = arith.constant 0 : index
    %54 = vector.load %arg2[%c0_42, %c3_43, %c0_44, %c0_45] : memref<1x4x110x16xbf16, #tpu.memory_space<vmem>>, vector<1x1x80x16xbf16>
    %55 = vector.shape_cast %54 : vector<1x1x80x16xbf16> to vector<80x16xbf16>
    %c4 = arith.constant 4 : index
    %c0_46 = arith.constant 0 : index
    %c0_47 = arith.constant 0 : index
    %56 = vector.load %arg3[%c4, %c0_46, %c0_47] : memref<9x16x128xbf16, #tpu.memory_space<vmem>>, vector<1x16x128xbf16>
    %57 = vector.shape_cast %56 : vector<1x16x128xbf16> to vector<16x128xbf16>
    %cst_48 = arith.constant dense<0.000000e+00> : vector<80x128xf32>
    %58 = tpu.matmul %55, %57, %cst_48 {dimension_numbers = #tpu.dot_dimension_numbers<[1], [0], [0], [1], [0, 0, 1, 1], [], []>} : vector<80x16xbf16>, vector<16x128xbf16>, vector<80x128xf32> -> vector<80x128xf32>
    %59 = arith.addf %53, %58 : vector<80x128xf32>
    %c0_49 = arith.constant 0 : index
    %c2_50 = arith.constant 2 : index
    %c1_51 = arith.constant 1 : index
    %c0_52 = arith.constant 0 : index
    %60 = vector.load %arg2[%c0_49, %c2_50, %c1_51, %c0_52] : memref<1x4x110x16xbf16, #tpu.memory_space<vmem>>, vector<1x1x80x16xbf16>
    %61 = vector.shape_cast %60 : vector<1x1x80x16xbf16> to vector<80x16xbf16>
    %c5 = arith.constant 5 : index
    %c0_53 = arith.constant 0 : index
    %c0_54 = arith.constant 0 : index
    %62 = vector.load %arg3[%c5, %c0_53, %c0_54] : memref<9x16x128xbf16, #tpu.memory_space<vmem>>, vector<1x16x128xbf16>
    %63 = vector.shape_cast %62 : vector<1x16x128xbf16> to vector<16x128xbf16>
    %cst_55 = arith.constant dense<0.000000e+00> : vector<80x128xf32>
    %64 = tpu.matmul %61, %63, %cst_55 {dimension_numbers = #tpu.dot_dimension_numbers<[1], [0], [0], [1], [0, 0, 1, 1], [], []>} : vector<80x16xbf16>, vector<16x128xbf16>, vector<80x128xf32> -> vector<80x128xf32>
    %65 = arith.addf %59, %64 : vector<80x128xf32>
    %c0_56 = arith.constant 0 : index
    %c0_57 = arith.constant 0 : index
    %c10 = arith.constant 10 : index
    %c0_58 = arith.constant 0 : index
    %66 = vector.load %arg2[%c0_56, %c0_57, %c10, %c0_58] : memref<1x4x110x16xbf16, #tpu.memory_space<vmem>>, vector<1x1x80x16xbf16>
    %67 = vector.shape_cast %66 : vector<1x1x80x16xbf16> to vector<80x16xbf16>
    %c6 = arith.constant 6 : index
    %c0_59 = arith.constant 0 : index
    %c0_60 = arith.constant 0 : index
    %68 = vector.load %arg3[%c6, %c0_59, %c0_60] : memref<9x16x128xbf16, #tpu.memory_space<vmem>>, vector<1x16x128xbf16>
    %69 = vector.shape_cast %68 : vector<1x16x128xbf16> to vector<16x128xbf16>
    %cst_61 = arith.constant dense<0.000000e+00> : vector<80x128xf32>
    %70 = tpu.matmul %67, %69, %cst_61 {dimension_numbers = #tpu.dot_dimension_numbers<[1], [0], [0], [1], [0, 0, 1, 1], [], []>} : vector<80x16xbf16>, vector<16x128xbf16>, vector<80x128xf32> -> vector<80x128xf32>
    %71 = arith.addf %65, %70 : vector<80x128xf32>
    %c0_62 = arith.constant 0 : index
    %c1_63 = arith.constant 1 : index
    %c10_64 = arith.constant 10 : index
    %c0_65 = arith.constant 0 : index
    %72 = vector.load %arg2[%c0_62, %c1_63, %c10_64, %c0_65] : memref<1x4x110x16xbf16, #tpu.memory_space<vmem>>, vector<1x1x80x16xbf16>
    %73 = vector.shape_cast %72 : vector<1x1x80x16xbf16> to vector<80x16xbf16>
    %c7 = arith.constant 7 : index
    %c0_66 = arith.constant 0 : index
    %c0_67 = arith.constant 0 : index
    %74 = vector.load %arg3[%c7, %c0_66, %c0_67] : memref<9x16x128xbf16, #tpu.memory_space<vmem>>, vector<1x16x128xbf16>
    %75 = vector.shape_cast %74 : vector<1x16x128xbf16> to vector<16x128xbf16>
    %cst_68 = arith.constant dense<0.000000e+00> : vector<80x128xf32>
    %76 = tpu.matmul %73, %75, %cst_68 {dimension_numbers = #tpu.dot_dimension_numbers<[1], [0], [0], [1], [0, 0, 1, 1], [], []>} : vector<80x16xbf16>, vector<16x128xbf16>, vector<80x128xf32> -> vector<80x128xf32>
    %77 = arith.addf %71, %76 : vector<80x128xf32>
    %c0_69 = arith.constant 0 : index
    %c0_70 = arith.constant 0 : index
    %c11 = arith.constant 11 : index
    %c0_71 = arith.constant 0 : index
    %78 = vector.load %arg2[%c0_69, %c0_70, %c11, %c0_71] : memref<1x4x110x16xbf16, #tpu.memory_space<vmem>>, vector<1x1x80x16xbf16>
    %79 = vector.shape_cast %78 : vector<1x1x80x16xbf16> to vector<80x16xbf16>
    %c8 = arith.constant 8 : index
    %c0_72 = arith.constant 0 : index
    %c0_73 = arith.constant 0 : index
    %80 = vector.load %arg3[%c8, %c0_72, %c0_73] : memref<9x16x128xbf16, #tpu.memory_space<vmem>>, vector<1x16x128xbf16>
    %81 = vector.shape_cast %80 : vector<1x16x128xbf16> to vector<16x128xbf16>
    %cst_74 = arith.constant dense<0.000000e+00> : vector<80x128xf32>
    %82 = tpu.matmul %79, %81, %cst_74 {dimension_numbers = #tpu.dot_dimension_numbers<[1], [0], [0], [1], [0, 0, 1, 1], [], []>} : vector<80x16xbf16>, vector<16x128xbf16>, vector<80x128xf32> -> vector<80x128xf32>
    %83 = arith.addf %77, %82 : vector<80x128xf32>
    %84 = vector.broadcast %0 : vector<1x128xf32> to vector<80x128xf32>
    %85 = arith.mulf %83, %84 : vector<80x128xf32>
    %86 = vector.broadcast %1 : vector<1x128xf32> to vector<80x128xf32>
    %87 = arith.addf %85, %86 : vector<80x128xf32>
    %cst_75 = arith.constant 0.000000e+00 : f32
    %88 = vector.broadcast %cst_75 : f32 to vector<80x128xf32>
    %89 = arith.maximumf %87, %88 : vector<80x128xf32>
    %cst_76 = arith.constant 0.000000e+00 : f32
    %90 = vector.shape_cast %20 : vector<80x1xi1> to vector<80x1xi1>
    %91 = vector.broadcast %90 : vector<80x1xi1> to vector<80x128xi1>
    %92 = vector.broadcast %cst_76 : f32 to vector<80x128xf32>
    %93 = arith.select %91, %89, %92 : vector<80x128xi1>, vector<80x128xf32>
    %94 = arith.truncf %93 : vector<80x128xf32> to vector<80x128xbf16>
    %c0_77 = arith.constant 0 : index
    %c11_78 = arith.constant 11 : index
    %c0_79 = arith.constant 0 : index
    %95 = vector.load %arg6[%c0_77, %c11_78, %c0_79] : memref<1x110x128xbf16, #tpu.memory_space<vmem>>, vector<1x80x128xbf16>
    %96 = vector.shape_cast %95 : vector<1x80x128xbf16> to vector<80x128xbf16>
    %97 = vector.shape_cast %94 : vector<80x128xbf16> to vector<1x80x128xbf16>
    tpu.vector_store %arg6[%c0_77, %c11_78, %c0_79], %97 {strides = array<i32>} : memref<1x110x128xbf16, #tpu.memory_space<vmem>>, vector<1x80x128xbf16>,
    return
  }
  func.func @transform_0(%arg0: i32, %arg1: i32) -> (i32, i32, i32, i32) {
    %c0_i32 = arith.constant 0 : i32
    %c0_i32_0 = arith.constant 0 : i32
    %c0_i32_1 = arith.constant 0 : i32
    %c0_i32_2 = arith.constant 0 : i32
    return %arg1, %c0_i32, %c0_i32_0, %c0_i32_1 : i32, i32, i32, i32
  }
  func.func @transform_1(%arg0: i32, %arg1: i32) -> (i32, i32, i32) {
    %c0_i32 = arith.constant 0 : i32
    %c0_i32_0 = arith.constant 0 : i32
    %c0_i32_1 = arith.constant 0 : i32
    return %c0_i32, %c0_i32_0, %arg0 : i32, i32, i32
  }
  func.func @transform_2(%arg0: i32, %arg1: i32) -> (i32, i32) {
    %c0_i32 = arith.constant 0 : i32
    %c0_i32_0 = arith.constant 0 : i32
    return %c0_i32, %arg0 : i32, i32
  }
  func.func @transform_3(%arg0: i32, %arg1: i32) -> (i32, i32) {
    %c0_i32 = arith.constant 0 : i32
    %c0_i32_0 = arith.constant 0 : i32
    return %c0_i32, %arg0 : i32, i32
  }
  func.func @transform_4(%arg0: i32, %arg1: i32) -> (i32, i32, i32) {
    %c0_i32 = arith.constant 0 : i32
    %c0_i32_0 = arith.constant 0 : i32
    return %arg1, %c0_i32, %arg0 : i32, i32, i32
  }
}

module attributes {stable_mosaic.version = 11 : i64} {
  func.func @_conv3x3_kernel(%arg0: i32, %arg1: i32, %arg2: memref<1x1x110x128xbf16, #tpu.memory_space<vmem>>, %arg3: memref<9x128x128xbf16, #tpu.memory_space<vmem>>, %arg4: memref<1x128xf32, #tpu.memory_space<vmem>>, %arg5: memref<1x128xf32, #tpu.memory_space<vmem>>, %arg6: memref<1x1x110x16xbf16, #tpu.memory_space<vmem>>, %arg7: memref<16x128xbf16, #tpu.memory_space<vmem>>, %arg8: memref<1x128xf32, #tpu.memory_space<vmem>>, %arg9: memref<1x128xf32, #tpu.memory_space<vmem>>, %arg10: memref<1x110x128xbf16, #tpu.memory_space<vmem>>) attributes {dimension_semantics = [#tpu.dimension_semantics<parallel>, #tpu.dimension_semantics<parallel>], iteration_bounds = array<i64: 1, 2>, scalar_prefetch = 0 : i64, scratch_operands = 0 : i64, tpu.core_type = #tpu.core_type<tc>, window_params = [{transform_indices = @transform_0, window_bounds = array<i64: 1, 1, 110, 128>}, {transform_indices = @transform_1, window_bounds = array<i64: 9, 128, 128>}, {transform_indices = @transform_2, window_bounds = array<i64: 1, 128>}, {transform_indices = @transform_3, window_bounds = array<i64: 1, 128>}, {transform_indices = @transform_4, window_bounds = array<i64: 1, 1, 110, 16>}, {transform_indices = @transform_5, window_bounds = array<i64: 16, 128>}, {transform_indices = @transform_6, window_bounds = array<i64: 1, 128>}, {transform_indices = @transform_7, window_bounds = array<i64: 1, 128>}, {transform_indices = @transform_8, window_bounds = array<i64: 1, 110, 128>}]} {
    %c0 = arith.constant 0 : index
    %c0_0 = arith.constant 0 : index
    %0 = vector.load %arg4[%c0, %c0_0] : memref<1x128xf32, #tpu.memory_space<vmem>>, vector<1x128xf32>
    %c0_1 = arith.constant 0 : index
    %c0_2 = arith.constant 0 : index
    %1 = vector.load %arg5[%c0_1, %c0_2] : memref<1x128xf32, #tpu.memory_space<vmem>>, vector<1x128xf32>
    %c0_3 = arith.constant 0 : index
    %c0_4 = arith.constant 0 : index
    %2 = vector.load %arg7[%c0_3, %c0_4] : memref<16x128xbf16, #tpu.memory_space<vmem>>, vector<16x128xbf16>
    %c0_5 = arith.constant 0 : index
    %c0_6 = arith.constant 0 : index
    %3 = vector.load %arg8[%c0_5, %c0_6] : memref<1x128xf32, #tpu.memory_space<vmem>>, vector<1x128xf32>
    %c0_7 = arith.constant 0 : index
    %c0_8 = arith.constant 0 : index
    %4 = vector.load %arg9[%c0_7, %c0_8] : memref<1x128xf32, #tpu.memory_space<vmem>>, vector<1x128xf32>
    %5 = tpu.iota {dimensions = array<i32: 0>} : vector<80x1xi32>
    %c10_i32 = arith.constant 10 : i32
    %c0_i32 = arith.constant 0 : i32
    %6 = arith.cmpi eq, %c10_i32, %c0_i32 : i32
    %c1_i32 = arith.constant 1 : i32
    %7 = arith.select %6, %c1_i32, %c10_i32 : i32
    %8 = vector.broadcast %7 : i32 to vector<80x1xi32>
    %9 = arith.remsi %5, %8 : vector<80x1xi32>
    %c0_i32_9 = arith.constant 0 : i32
    %10 = vector.broadcast %c0_i32_9 : i32 to vector<80x1xi32>
    %11 = arith.cmpi ne, %9, %10 : vector<80x1xi32>
    %c0_i32_10 = arith.constant 0 : i32
    %12 = vector.broadcast %c0_i32_10 : i32 to vector<80x1xi32>
    %13 = arith.cmpi slt, %9, %12 : vector<80x1xi32>
    %c0_i32_11 = arith.constant 0 : i32
    %14 = arith.cmpi slt, %7, %c0_i32_11 : i32
    %15 = vector.broadcast %14 : i1 to vector<80x1xi1>
    %16 = vector.broadcast %15 : vector<80x1xi1> to vector<80x1xi1>
    %17 = arith.xori %13, %16 : vector<80x1xi1>
    %18 = arith.andi %17, %11 : vector<80x1xi1>
    %19 = vector.broadcast %7 : i32 to vector<80x1xi32>
    %20 = arith.addi %9, %19 : vector<80x1xi32>
    %21 = arith.select %18, %20, %9 : vector<80x1xi1>, vector<80x1xi32>
    %c8_i32 = arith.constant 8 : i32
    %22 = vector.broadcast %c8_i32 : i32 to vector<80x1xi32>
    %23 = arith.cmpi slt, %21, %22 : vector<80x1xi32>
    %cst = arith.constant 0.000000e+00 : bf16
    %24 = vector.broadcast %cst : bf16 to vector<11x128xbf16>
    %c0_12 = arith.constant 0 : index
    %c0_13 = arith.constant 0 : index
    %c0_14 = arith.constant 0 : index
    %25 = vector.load %arg10[%c0_12, %c0_13, %c0_14] : memref<1x110x128xbf16, #tpu.memory_space<vmem>>, vector<1x11x128xbf16>
    %26 = vector.shape_cast %25 : vector<1x11x128xbf16> to vector<11x128xbf16>
    %27 = vector.shape_cast %24 : vector<11x128xbf16> to vector<1x11x128xbf16>
    tpu.vector_store %arg10[%c0_12, %c0_13, %c0_14], %27 {strides = array<i32>} : memref<1x110x128xbf16, #tpu.memory_space<vmem>>, vector<1x11x128xbf16>,
    %cst_15 = arith.constant 0.000000e+00 : bf16
    %28 = vector.broadcast %cst_15 : bf16 to vector<19x128xbf16>
    %c0_16 = arith.constant 0 : index
    %c91 = arith.constant 91 : index
    %c0_17 = arith.constant 0 : index
    %29 = vector.load %arg10[%c0_16, %c91, %c0_17] : memref<1x110x128xbf16, #tpu.memory_space<vmem>>, vector<1x19x128xbf16>
    %30 = vector.shape_cast %29 : vector<1x19x128xbf16> to vector<19x128xbf16>
    %31 = vector.shape_cast %28 : vector<19x128xbf16> to vector<1x19x128xbf16>
    tpu.vector_store %arg10[%c0_16, %c91, %c0_17], %31 {strides = array<i32>} : memref<1x110x128xbf16, #tpu.memory_space<vmem>>, vector<1x19x128xbf16>,
    %cst_18 = arith.constant 0.000000e+00 : f32
    %32 = vector.broadcast %cst_18 : f32 to vector<80x128xf32>
    %c0_19 = arith.constant 0 : index
    %c0_20 = arith.constant 0 : index
    %c0_21 = arith.constant 0 : index
    %c0_22 = arith.constant 0 : index
    %33 = vector.load %arg2[%c0_19, %c0_20, %c0_21, %c0_22] : memref<1x1x110x128xbf16, #tpu.memory_space<vmem>>, vector<1x1x80x128xbf16>
    %34 = vector.shape_cast %33 : vector<1x1x80x128xbf16> to vector<80x128xbf16>
    %c0_23 = arith.constant 0 : index
    %c0_24 = arith.constant 0 : index
    %c0_25 = arith.constant 0 : index
    %35 = vector.load %arg3[%c0_23, %c0_24, %c0_25] : memref<9x128x128xbf16, #tpu.memory_space<vmem>>, vector<1x128x128xbf16>
    %36 = vector.shape_cast %35 : vector<1x128x128xbf16> to vector<128x128xbf16>
    %cst_26 = arith.constant dense<0.000000e+00> : vector<80x128xf32>
    %37 = tpu.matmul %34, %36, %cst_26 {dimension_numbers = #tpu.dot_dimension_numbers<[1], [0], [0], [1], [0, 0, 1, 1], [], []>} : vector<80x128xbf16>, vector<128x128xbf16>, vector<80x128xf32> -> vector<80x128xf32>
    %38 = arith.addf %32, %37 : vector<80x128xf32>
    %c0_27 = arith.constant 0 : index
    %c0_28 = arith.constant 0 : index
    %c1 = arith.constant 1 : index
    %c0_29 = arith.constant 0 : index
    %39 = vector.load %arg2[%c0_27, %c0_28, %c1, %c0_29] : memref<1x1x110x128xbf16, #tpu.memory_space<vmem>>, vector<1x1x80x128xbf16>
    %40 = vector.shape_cast %39 : vector<1x1x80x128xbf16> to vector<80x128xbf16>
    %c1_30 = arith.constant 1 : index
    %c0_31 = arith.constant 0 : index
    %c0_32 = arith.constant 0 : index
    %41 = vector.load %arg3[%c1_30, %c0_31, %c0_32] : memref<9x128x128xbf16, #tpu.memory_space<vmem>>, vector<1x128x128xbf16>
    %42 = vector.shape_cast %41 : vector<1x128x128xbf16> to vector<128x128xbf16>
    %cst_33 = arith.constant dense<0.000000e+00> : vector<80x128xf32>
    %43 = tpu.matmul %40, %42, %cst_33 {dimension_numbers = #tpu.dot_dimension_numbers<[1], [0], [0], [1], [0, 0, 1, 1], [], []>} : vector<80x128xbf16>, vector<128x128xbf16>, vector<80x128xf32> -> vector<80x128xf32>
    %44 = arith.addf %38, %43 : vector<80x128xf32>
    %c0_34 = arith.constant 0 : index
    %c0_35 = arith.constant 0 : index
    %c2 = arith.constant 2 : index
    %c0_36 = arith.constant 0 : index
    %45 = vector.load %arg2[%c0_34, %c0_35, %c2, %c0_36] : memref<1x1x110x128xbf16, #tpu.memory_space<vmem>>, vector<1x1x80x128xbf16>
    %46 = vector.shape_cast %45 : vector<1x1x80x128xbf16> to vector<80x128xbf16>
    %c2_37 = arith.constant 2 : index
    %c0_38 = arith.constant 0 : index
    %c0_39 = arith.constant 0 : index
    %47 = vector.load %arg3[%c2_37, %c0_38, %c0_39] : memref<9x128x128xbf16, #tpu.memory_space<vmem>>, vector<1x128x128xbf16>
    %48 = vector.shape_cast %47 : vector<1x128x128xbf16> to vector<128x128xbf16>
    %cst_40 = arith.constant dense<0.000000e+00> : vector<80x128xf32>
    %49 = tpu.matmul %46, %48, %cst_40 {dimension_numbers = #tpu.dot_dimension_numbers<[1], [0], [0], [1], [0, 0, 1, 1], [], []>} : vector<80x128xbf16>, vector<128x128xbf16>, vector<80x128xf32> -> vector<80x128xf32>
    %50 = arith.addf %44, %49 : vector<80x128xf32>
    %c0_41 = arith.constant 0 : index
    %c0_42 = arith.constant 0 : index
    %c10 = arith.constant 10 : index
    %c0_43 = arith.constant 0 : index
    %51 = vector.load %arg2[%c0_41, %c0_42, %c10, %c0_43] : memref<1x1x110x128xbf16, #tpu.memory_space<vmem>>, vector<1x1x80x128xbf16>
    %52 = vector.shape_cast %51 : vector<1x1x80x128xbf16> to vector<80x128xbf16>
    %c3 = arith.constant 3 : index
    %c0_44 = arith.constant 0 : index
    %c0_45 = arith.constant 0 : index
    %53 = vector.load %arg3[%c3, %c0_44, %c0_45] : memref<9x128x128xbf16, #tpu.memory_space<vmem>>, vector<1x128x128xbf16>
    %54 = vector.shape_cast %53 : vector<1x128x128xbf16> to vector<128x128xbf16>
    %cst_46 = arith.constant dense<0.000000e+00> : vector<80x128xf32>
    %55 = tpu.matmul %52, %54, %cst_46 {dimension_numbers = #tpu.dot_dimension_numbers<[1], [0], [0], [1], [0, 0, 1, 1], [], []>} : vector<80x128xbf16>, vector<128x128xbf16>, vector<80x128xf32> -> vector<80x128xf32>
    %56 = arith.addf %50, %55 : vector<80x128xf32>
    %c0_47 = arith.constant 0 : index
    %c0_48 = arith.constant 0 : index
    %c11 = arith.constant 11 : index
    %c0_49 = arith.constant 0 : index
    %57 = vector.load %arg2[%c0_47, %c0_48, %c11, %c0_49] : memref<1x1x110x128xbf16, #tpu.memory_space<vmem>>, vector<1x1x80x128xbf16>
    %58 = vector.shape_cast %57 : vector<1x1x80x128xbf16> to vector<80x128xbf16>
    %c4 = arith.constant 4 : index
    %c0_50 = arith.constant 0 : index
    %c0_51 = arith.constant 0 : index
    %59 = vector.load %arg3[%c4, %c0_50, %c0_51] : memref<9x128x128xbf16, #tpu.memory_space<vmem>>, vector<1x128x128xbf16>
    %60 = vector.shape_cast %59 : vector<1x128x128xbf16> to vector<128x128xbf16>
    %cst_52 = arith.constant dense<0.000000e+00> : vector<80x128xf32>
    %61 = tpu.matmul %58, %60, %cst_52 {dimension_numbers = #tpu.dot_dimension_numbers<[1], [0], [0], [1], [0, 0, 1, 1], [], []>} : vector<80x128xbf16>, vector<128x128xbf16>, vector<80x128xf32> -> vector<80x128xf32>
    %62 = arith.addf %56, %61 : vector<80x128xf32>
    %c0_53 = arith.constant 0 : index
    %c0_54 = arith.constant 0 : index
    %c12 = arith.constant 12 : index
    %c0_55 = arith.constant 0 : index
    %63 = vector.load %arg2[%c0_53, %c0_54, %c12, %c0_55] : memref<1x1x110x128xbf16, #tpu.memory_space<vmem>>, vector<1x1x80x128xbf16>
    %64 = vector.shape_cast %63 : vector<1x1x80x128xbf16> to vector<80x128xbf16>
    %c5 = arith.constant 5 : index
    %c0_56 = arith.constant 0 : index
    %c0_57 = arith.constant 0 : index
    %65 = vector.load %arg3[%c5, %c0_56, %c0_57] : memref<9x128x128xbf16, #tpu.memory_space<vmem>>, vector<1x128x128xbf16>
    %66 = vector.shape_cast %65 : vector<1x128x128xbf16> to vector<128x128xbf16>
    %cst_58 = arith.constant dense<0.000000e+00> : vector<80x128xf32>
    %67 = tpu.matmul %64, %66, %cst_58 {dimension_numbers = #tpu.dot_dimension_numbers<[1], [0], [0], [1], [0, 0, 1, 1], [], []>} : vector<80x128xbf16>, vector<128x128xbf16>, vector<80x128xf32> -> vector<80x128xf32>
    %68 = arith.addf %62, %67 : vector<80x128xf32>
    %c0_59 = arith.constant 0 : index
    %c0_60 = arith.constant 0 : index
    %c20 = arith.constant 20 : index
    %c0_61 = arith.constant 0 : index
    %69 = vector.load %arg2[%c0_59, %c0_60, %c20, %c0_61] : memref<1x1x110x128xbf16, #tpu.memory_space<vmem>>, vector<1x1x80x128xbf16>
    %70 = vector.shape_cast %69 : vector<1x1x80x128xbf16> to vector<80x128xbf16>
    %c6 = arith.constant 6 : index
    %c0_62 = arith.constant 0 : index
    %c0_63 = arith.constant 0 : index
    %71 = vector.load %arg3[%c6, %c0_62, %c0_63] : memref<9x128x128xbf16, #tpu.memory_space<vmem>>, vector<1x128x128xbf16>
    %72 = vector.shape_cast %71 : vector<1x128x128xbf16> to vector<128x128xbf16>
    %cst_64 = arith.constant dense<0.000000e+00> : vector<80x128xf32>
    %73 = tpu.matmul %70, %72, %cst_64 {dimension_numbers = #tpu.dot_dimension_numbers<[1], [0], [0], [1], [0, 0, 1, 1], [], []>} : vector<80x128xbf16>, vector<128x128xbf16>, vector<80x128xf32> -> vector<80x128xf32>
    %74 = arith.addf %68, %73 : vector<80x128xf32>
    %c0_65 = arith.constant 0 : index
    %c0_66 = arith.constant 0 : index
    %c21 = arith.constant 21 : index
    %c0_67 = arith.constant 0 : index
    %75 = vector.load %arg2[%c0_65, %c0_66, %c21, %c0_67] : memref<1x1x110x128xbf16, #tpu.memory_space<vmem>>, vector<1x1x80x128xbf16>
    %76 = vector.shape_cast %75 : vector<1x1x80x128xbf16> to vector<80x128xbf16>
    %c7 = arith.constant 7 : index
    %c0_68 = arith.constant 0 : index
    %c0_69 = arith.constant 0 : index
    %77 = vector.load %arg3[%c7, %c0_68, %c0_69] : memref<9x128x128xbf16, #tpu.memory_space<vmem>>, vector<1x128x128xbf16>
    %78 = vector.shape_cast %77 : vector<1x128x128xbf16> to vector<128x128xbf16>
    %cst_70 = arith.constant dense<0.000000e+00> : vector<80x128xf32>
    %79 = tpu.matmul %76, %78, %cst_70 {dimension_numbers = #tpu.dot_dimension_numbers<[1], [0], [0], [1], [0, 0, 1, 1], [], []>} : vector<80x128xbf16>, vector<128x128xbf16>, vector<80x128xf32> -> vector<80x128xf32>
    %80 = arith.addf %74, %79 : vector<80x128xf32>
    %c0_71 = arith.constant 0 : index
    %c0_72 = arith.constant 0 : index
    %c22 = arith.constant 22 : index
    %c0_73 = arith.constant 0 : index
    %81 = vector.load %arg2[%c0_71, %c0_72, %c22, %c0_73] : memref<1x1x110x128xbf16, #tpu.memory_space<vmem>>, vector<1x1x80x128xbf16>
    %82 = vector.shape_cast %81 : vector<1x1x80x128xbf16> to vector<80x128xbf16>
    %c8 = arith.constant 8 : index
    %c0_74 = arith.constant 0 : index
    %c0_75 = arith.constant 0 : index
    %83 = vector.load %arg3[%c8, %c0_74, %c0_75] : memref<9x128x128xbf16, #tpu.memory_space<vmem>>, vector<1x128x128xbf16>
    %84 = vector.shape_cast %83 : vector<1x128x128xbf16> to vector<128x128xbf16>
    %cst_76 = arith.constant dense<0.000000e+00> : vector<80x128xf32>
    %85 = tpu.matmul %82, %84, %cst_76 {dimension_numbers = #tpu.dot_dimension_numbers<[1], [0], [0], [1], [0, 0, 1, 1], [], []>} : vector<80x128xbf16>, vector<128x128xbf16>, vector<80x128xf32> -> vector<80x128xf32>
    %86 = arith.addf %80, %85 : vector<80x128xf32>
    %87 = vector.broadcast %0 : vector<1x128xf32> to vector<80x128xf32>
    %88 = arith.mulf %86, %87 : vector<80x128xf32>
    %89 = vector.broadcast %1 : vector<1x128xf32> to vector<80x128xf32>
    %90 = arith.addf %88, %89 : vector<80x128xf32>
    %c0_77 = arith.constant 0 : index
    %c0_78 = arith.constant 0 : index
    %c11_79 = arith.constant 11 : index
    %c0_80 = arith.constant 0 : index
    %91 = vector.load %arg6[%c0_77, %c0_78, %c11_79, %c0_80] : memref<1x1x110x16xbf16, #tpu.memory_space<vmem>>, vector<1x1x80x16xbf16>
    %92 = vector.shape_cast %91 : vector<1x1x80x16xbf16> to vector<80x16xbf16>
    %cst_81 = arith.constant dense<0.000000e+00> : vector<80x128xf32>
    %93 = tpu.matmul %92, %2, %cst_81 {dimension_numbers = #tpu.dot_dimension_numbers<[1], [0], [0], [1], [0, 0, 1, 1], [], []>} : vector<80x16xbf16>, vector<16x128xbf16>, vector<80x128xf32> -> vector<80x128xf32>
    %94 = vector.broadcast %3 : vector<1x128xf32> to vector<80x128xf32>
    %95 = arith.mulf %93, %94 : vector<80x128xf32>
    %96 = arith.addf %90, %95 : vector<80x128xf32>
    %97 = vector.broadcast %4 : vector<1x128xf32> to vector<80x128xf32>
    %98 = arith.addf %96, %97 : vector<80x128xf32>
    %cst_82 = arith.constant 0.000000e+00 : f32
    %99 = vector.broadcast %cst_82 : f32 to vector<80x128xf32>
    %100 = arith.maximumf %98, %99 : vector<80x128xf32>
    %cst_83 = arith.constant 0.000000e+00 : f32
    %101 = vector.shape_cast %23 : vector<80x1xi1> to vector<80x1xi1>
    %102 = vector.broadcast %101 : vector<80x1xi1> to vector<80x128xi1>
    %103 = vector.broadcast %cst_83 : f32 to vector<80x128xf32>
    %104 = arith.select %102, %100, %103 : vector<80x128xi1>, vector<80x128xf32>
    %105 = arith.truncf %104 : vector<80x128xf32> to vector<80x128xbf16>
    %c0_84 = arith.constant 0 : index
    %c11_85 = arith.constant 11 : index
    %c0_86 = arith.constant 0 : index
    %106 = vector.load %arg10[%c0_84, %c11_85, %c0_86] : memref<1x110x128xbf16, #tpu.memory_space<vmem>>, vector<1x80x128xbf16>
    %107 = vector.shape_cast %106 : vector<1x80x128xbf16> to vector<80x128xbf16>
    %108 = vector.shape_cast %105 : vector<80x128xbf16> to vector<1x80x128xbf16>
    tpu.vector_store %arg10[%c0_84, %c11_85, %c0_86], %108 {strides = array<i32>} : memref<1x110x128xbf16, #tpu.memory_space<vmem>>, vector<1x80x128xbf16>,
    return
  }
  func.func @transform_0(%arg0: i32, %arg1: i32) -> (i32, i32, i32, i32) {
    %c0_i32 = arith.constant 0 : i32
    %c0_i32_0 = arith.constant 0 : i32
    %c0_i32_1 = arith.constant 0 : i32
    %c0_i32_2 = arith.constant 0 : i32
    return %arg1, %c0_i32, %c0_i32_0, %c0_i32_1 : i32, i32, i32, i32
  }
  func.func @transform_1(%arg0: i32, %arg1: i32) -> (i32, i32, i32) {
    %c0_i32 = arith.constant 0 : i32
    %c0_i32_0 = arith.constant 0 : i32
    %c0_i32_1 = arith.constant 0 : i32
    return %c0_i32, %c0_i32_0, %arg0 : i32, i32, i32
  }
  func.func @transform_2(%arg0: i32, %arg1: i32) -> (i32, i32) {
    %c0_i32 = arith.constant 0 : i32
    %c0_i32_0 = arith.constant 0 : i32
    return %c0_i32, %arg0 : i32, i32
  }
  func.func @transform_3(%arg0: i32, %arg1: i32) -> (i32, i32) {
    %c0_i32 = arith.constant 0 : i32
    %c0_i32_0 = arith.constant 0 : i32
    return %c0_i32, %arg0 : i32, i32
  }
  func.func @transform_4(%arg0: i32, %arg1: i32) -> (i32, i32, i32, i32) {
    %c0_i32 = arith.constant 0 : i32
    %c0_i32_0 = arith.constant 0 : i32
    %c0_i32_1 = arith.constant 0 : i32
    %c0_i32_2 = arith.constant 0 : i32
    return %arg1, %c0_i32, %c0_i32_0, %c0_i32_1 : i32, i32, i32, i32
  }
  func.func @transform_5(%arg0: i32, %arg1: i32) -> (i32, i32) {
    %c0_i32 = arith.constant 0 : i32
    %c0_i32_0 = arith.constant 0 : i32
    return %c0_i32, %arg0 : i32, i32
  }
  func.func @transform_6(%arg0: i32, %arg1: i32) -> (i32, i32) {
    %c0_i32 = arith.constant 0 : i32
    %c0_i32_0 = arith.constant 0 : i32
    return %c0_i32, %arg0 : i32, i32
  }
  func.func @transform_7(%arg0: i32, %arg1: i32) -> (i32, i32) {
    %c0_i32 = arith.constant 0 : i32
    %c0_i32_0 = arith.constant 0 : i32
    return %c0_i32, %arg0 : i32, i32
  }
  func.func @transform_8(%arg0: i32, %arg1: i32) -> (i32, i32, i32) {
    %c0_i32 = arith.constant 0 : i32
    %c0_i32_0 = arith.constant 0 : i32
    return %arg1, %c0_i32, %arg0 : i32, i32, i32
  }
}

</mosaic_0001>

<bundles_post_ra>
// kernel: residual_block_forward.2
= control target key start
LH: loop header
LB: loop body
LE: loop exit
PB: predicated region body
PF: predicated region fallthrough
CT: control target
= control target key end

     0   :  { %s2980_s15 = smov 0   ;;  %s2982_s16 = smov 0   ;;  %s3708_s0 = inlined_call_operand.vmem [shape: bf16[2,4,110,16], index: 0, kind: input, shape index: {}]   ;;  %s3709_s1 = inlined_call_operand.vmem [shape: bf16[9,16,128], index: 1, kind: input, shape index: {}]   ;;  %s3710_s2 = inlined_call_operand.vmem [shape: f32[1,128], index: 2, kind: input, shape index: {}]   ;;  %s3711_s3 = inlined_call_operand.vmem [shape: f32[1,128], index: 3, kind: input, shape index: {}]   ;;  %s3712_s4 = inlined_call_operand.vmem [shape: bf16[2,110,128], index: 4, kind: output, shape index: {}]  }
   0x1   :  { %s2984_s17 = smov 0  }
   0x2 LB: > { %s23_s18 = sadd.s32 1, %s2946_s16  ;;  %p2227_p0 = scmp.ge.s32.totalorder %s2950_s17, 1  ;;  %s2950_s17 = sphi %s2984_s17, %s14_s17   ;;  %s2946_s16 = sphi %s2982_s16, %s3756_s16   ;;  %s2942_s15 = sphi %s2980_s15, %s3755_s15  }
   0x3   : > { %p24_p1 = scmp.ge.s32.totalorder %s23_s18, 2  ;;  %p201_p2 = scmp.lt.s32.totalorder %s2950_s17, 3 }
   0x5   : > { %s3758_s18 = smov (%p24_p1, %s23_s18), 0  ;;  %p202_p3 = pnand %p2227_p0, %p201_p2 }
   0x6   : > { %v3001_v0 = vld [vmem:[%s3709_s1 + $0x20] sm:$0xff] (!%p202_p3)   ;;  %v2952_v1 = vmov (!%p202_p3), 0.0   ;;  %v2875_v2 = vld [vmem:[%s3709_s1 + $0x8] sm:$0xff] (!%p202_p3)   ;;  %vm2953_vm0 = vmmov (!%p202_p3), 0   ;;  %p240_p4 = scmp.lt.s32.totalorder (!%p202_p3), %s2942_s15, 1  ;;  %vm519_vm1 = vcmask (!%p202_p3), 130048  }
   0x7   : > { %205 = sbr.rel (%p202_p3) target bundleno = 430 (0x1ae), region = 36  ;;  %2563 = vmatprep.subr.bf16.mxu0 (!%p202_p3), %v2952_v1  ;;  %2475 = vmatprep.subr.bf16.mxu1 (!%p202_p3), %v2952_v1  ;;  %v2878_v3 = vld [vmem:[%s3709_s1 + $0x28] sm:$0xff] (!%p202_p3)   ;;  %v2880_v4 = vld [vmem:[%s3709_s1] sm:$0xff] (!%p202_p3)   ;;  %vm769_vm2 = vsmask.f32 (!%p202_p3), 7424  ;;  %v2887_v21 = vld [vmem:[%s3709_s1 + $0x30] sm:$0xff] (!%p202_p3)  }
   0x8   : > { %2564 = vmatpush3.bf16.msra.mxu0 (!%p202_p3), %v3001_v0  ;;  %2477 = vmatprep.mubr.msk.bf16.mxu1 (!%p202_p3), %vm2953_vm0, %v2952_v1  ;;  %vm1436_vm3 = vcmask (!%p202_p3), 1046528   ;;  %v2893_v56 = vld [vmem:[%s3709_s1 + $0x10] sm:$0xff] (!%p202_p3)   ;;  %vm1716_vm4 = vsmask.f32 (!%p202_p3), 6400  ;;  %vm448_vm5 = vcmask (!%p202_p3), 1041408   ;;  %vm454_vm8 = vcmask (!%p202_p3), 1043457  }
   0x9   : > { %2476 = vmatpush3.bf16.msra.mxu1 (!%p202_p3), %v2875_v2  ;;  %2565 = vmatprep.mubr.msk.bf16.mxu0 (!%p202_p3), %vm2953_vm0, %v2952_v1  ;;  %vm449_vm6 = vsmask.f32 (!%p202_p3), 1280  ;;  %vm455_vm9 = vsmask.f32 (!%p202_p3), 7942 }
   0xa   : > { %2585 = vmatprep.subr.bf16.mxu0 (!%p202_p3), %v2952_v1  ;;  %2497 = vmatprep.subr.bf16.mxu1 (!%p202_p3), %v2952_v1  ;;  %vm3332_vm7 = vmand (!%p202_p3), %vm448_vm5, %vm449_vm6 }
   0xb   : > { %vm3338_vm10 = vmand (!%p202_p3), %vm454_vm8, %vm455_vm9 }
   0xe   : > { %s3760_s15 = smov (!%p240_p4, %s2942_s15), 1 }
   0xf   : > { %s2825_s23 = smul.u32 224, %s3760_s15 }
  0x10   : > { %s2826_s19 = smul.u32 56, %s3760_s15 }
  0x11   : > { %s3024_s28 = scalar_lea.vmem %s3708_s0, %s2825_s23 }
  0x12   : > { %v2876_v5 = vld [vmem:[%s3024_s28 + $0x38] sm:$0xff]   ;;  %v2877_v6 = vld [vmem:[%s3024_s28 + $0xa8] sm:$0xff]   ;;  %v2879_v7 = vld [vmem:[%s3024_s28 + $0x40] sm:$0xff]   ;;  %s3329_s22 = scalar_lea.vmem %s3712_s4, %s2826_s19 }
  0x13   : > { %2478 = vmatmul.mubr.msk.bf16.vlgmr.msra.gmra.mrb[0].mxu1 %vm519_vm1, %v2876_v5  ;;  %2566 = vmatmul.mubr.msk.bf16.vlgmr.msra.gmra.mrb[0].mxu0 %vm519_vm1, %v2877_v6  ;;  %v2881_v8 = vld [vmem:[%s3024_s28 + $0xb0] sm:$0xff]   ;;  %v2886_v10 = vld [vmem:[%s3024_s28 + $0x78] sm:$0xff]   ;;  %v2882_v12 = vld [vmem:[%s3024_s28 + $0x48] sm:$0xff]  }
  0x14   : > { %2481 = vmatprep.mubr.msk.bf16.mxu1 %vm2953_vm0, %v2952_v1  ;;  %2586 = vmatpush3.bf16.msra.mxu0 %v2878_v3  ;;  %v2885_v9 = vld [vmem:[%s3024_s28 + $0x70] sm:$0xff]   ;;  %v2883_v13 = vld [vmem:[%s3024_s28 + $0xb8] sm:$0xff]   ;;  %v1254_v16 = vshll.u32 %v2886_v10, 16  ;;  %v2889_v19 = vld [vmem:[%s3024_s28 + $0x80] sm:$0xff]   ;;  %v1258_v23 = vshrl.u32 %v2886_v10, 16 }
  0x15   : > { %2569 = vmatprep.mubr.msk.bf16.mxu0 %vm2953_vm0, %v2952_v1  ;;  %2498 = vmatpush3.bf16.msra.mxu1 %v2880_v4  ;;  %v1249_v11 = vshll.u32 %v2885_v9, 16  ;;  %v1247_v14 = vshrl.u32 %v2885_v9, 16  ;;  %v2884_v20 = vld [vmem:[%s3024_s28 + $0x50] sm:$0xff]   ;;  %v1262_v24 = vshll.u32 %v2889_v19, 16  ;;  %v2891_v25 = vld [vmem:[%s3024_s28 + $0x88] sm:$0xff]   ;;  %v2909_v30 = vld [vmem:[%s3024_s28 + $0x18] sm:$0xff]  }
  0x16   : > { %2607 = vmatprep.subr.bf16.mxu0 %v2952_v1  ;;  %2519 = vmatprep.subr.bf16.mxu1 %v2952_v1  ;;  %v1256_v18 = vrot.slane %v1254_v16, 1  ;;  %v2906_v26 = vld [vmem:[%s3024_s28 + $0x10] sm:$0xff]   ;;  %v2888_v31 = vld [vmem:[%s3024_s28 + $0x58] sm:$0xff]   ;;  %v1270_v32 = vshll.u32 %v2891_v25, 16  ;;  %v794_v36 = vshll.u32 %v2909_v30, 16  ;;  %v2911_v37 = vld [vmem:[%s3024_s28 + $0x20] sm:$0xff]  }
  0x17   : > { %v1251_v15 = vrot.slane %v1249_v11, 1  ;;  %v1264_v28 = vrot.slane %v1262_v24, 1  ;;  %v786_v29 = vshll.u32 %v2906_v26, 16  ;;  %v3075_v33 = vld [vmem:[%s3024_s28 + $0x90] sm:$0xff]   ;;  %v790_v35 = vshrl.u32 %v2906_v26, 16  ;;  %v2890_v51 = vld [vmem:[%s3024_s28] sm:$0xff]  }
  0x18   : > { %v1260_v27 = vor.u32 %v1258_v23, %v1256_v18  ;;  %v1266_v39 = vshrl.u32 %v2889_v19, 16  ;;  %v798_v40 = vshrl.u32 %v2909_v30, 16  ;;  %v796_v42 = vrot.slane %v794_v36, 1  ;;  %v3088_v47 = vld [vmem:[%s3024_s28 + $0x98] ss:$0 sps:$4 sm:$0x11]  }
  0x19   : > { %v1252_v17 = vor.u32 %v1251_v15, %v1247_v14  ;;  %v3077_v34 = vrot.slane %v786_v29, 1  ;;  %v1272_v43 = vrot.slane %v1270_v32, 1  ;;  %v1274_v44 = vshrl.u32 %v2891_v25, 16  ;;  %v3097_v53 = vld [vmem:[%s3024_s28 + $0x4] sm:$0xfe]   ;;  %v3108_v62 = vld [vmem:[%s3024_s28 + $0x54] sm:$0xff]  }
  0x1a   : > { %v1265_v38 = vsel %vm769_vm2, %v1260_v27, %v1264_v28  ;;  %v802_v45 = vshll.u32 %v2911_v37, 16  ;;  %v1278_v46 = vshll.u32 %v3075_v33, 16  ;;  %v800_v49 = vor.u32 %v798_v40, %v796_v42  ;;  %v2915_v55 = vld [vmem:[%s3024_s28 + $0x28] ss:$0 sps:$4 sm:$0x11]   ;;  %v3114_v5 = vld [vmem:[%s3024_s28 + $0xc] sm:$0xff]  }
  0x1b   : > { %2482 = vmatmul.mubr.msk.bf16.gmra.mrb[4].mxu1 %vm519_vm1, %v2879_v7  ;;  %2570 = vmatmul.mubr.msk.bf16.gmra.mrb[4].mxu0 %vm519_vm1, %v2881_v8  ;;  %v1257_v22 = vsel %vm769_vm2, %v1252_v17, %v1256_v18  ;;  %v792_v41 = vor.u32 %v790_v35, %v3077_v34  ;;  %v806_v50 = vshrl.u32 %v2911_v37, 16  ;;  %v1268_v52 = vor.u32 %v1266_v39, %v1264_v28  ;;  %v2920_v6 = vld [vmem:[%s3024_s28 + $0x5c] sm:$0xff]   ;;  %v3119_v7 = vld [vmem:[%s3024_s28 + $0x14] sm:$0xff]  }
  0x1c   : > { %2485 = vmatprep.mubr.msk.bf16.mxu1 %vm2953_vm0, %v2952_v1  ;;  %2573 = vmatprep.mubr.msk.bf16.mxu0 %vm2953_vm0, %v2952_v1  ;;  %v804_v54 = vrot.slane %v802_v45, 1  ;;  %v1282_v57 = vshrl.u32 %v3075_v33, 16  ;;  %v810_v60 = vshll.u32 %v2915_v55, 16  ;;  %v1280_v61 = vrot.slane %v1278_v46, 1  ;;  %v3134_v16 = vld [vmem:[%s3024_s28 + $0x1c] sm:$0xff]  }
  0x1d   : > { %v3091_v48 = vsel %vm769_vm2, %v792_v41, %v796_v42  ;;  %v1273_v63 = vsel %vm769_vm2, %v1268_v52, %v1272_v43  ;;  %v1718_v3 = vshrl.u32 %v3097_v53, 16  ;;  %v1286_v4 = vshll.u32 %v3088_v47, 16  ;;  %v2927_v41 = vld [vmem:[%s3024_s28 + $0x2c] ss:$0 sps:$4 sm:$0x33]  }
  0x1e   : > { %v3105_v58 = vsel %vm769_vm2, %v800_v49, %v804_v54  ;;  %v808_v59 = vor.u32 %v806_v50, %v804_v54  ;;  %v812_v2 = vrot.slane %v810_v60, 1  ;;  %v1599_v9 = vrot.slane %v3108_v62, 1  ;;  %v2895_v54 = vld [vmem:[%s3024_s28 + $0x10] sm:$0xff]   ;;  %v2921_v62 = vld [vmem:[%s3024_s28 + $0x80] sm:$0xff]  }
  0x1f   : > { %v1276_v10 = vor.u32 %v1274_v44, %v1272_v43  ;;  %v1601_v11 = vrot.slane %v2920_v6, 1  ;;  %v1720_v14 = vrot.slane %v1718_v3, 1  ;;  %v1721_v15 = vshll.u32 %v3097_v53, 16  ;;  %v2903_v6 = vld [vmem:[%s3024_s28] sm:$0xff]  }
  0x20   : > { %v3122_v8 = vsel %vm769_vm2, %v808_v59, %v812_v2  ;;  %v1726_v19 = vshrl.u32 %v3114_v5, 16  ;;  %v1735_v23 = vshrl.u32 %v3119_v7, 16  ;;  %v1738_v24 = vshll.u32 %v3119_v7, 16 }
  0x21   : > { %v3140_v17 = vsel %vm1436_vm3, %v1599_v9, %v1601_v11  ;;  %v1281_v25 = vsel %vm769_vm2, %v1276_v10, %v1280_v61  ;;  %v1744_v32 = vshrl.u32 %v3134_v16, 16  ;;  %v1747_v35 = vshll.u32 %v3134_v16, 16 }
  0x22   : > { %v1728_v27 = vrot.slane %v1726_v19, 1  ;;  %v1737_v30 = vrot.slane %v1735_v23, 1  ;;  %v1288_v46 = vrot.slane %v1286_v4, 1  ;;  %v1762_v49 = vshrl.u32 %v2927_v41, 16  ;;  %v2897_v4 = vld [vmem:[%s3024_s28 + $0x18] sm:$0xff]  }
  0x23   : > { %2486 = vmatmul.mubr.msk.bf16.gmra.mrb[8].mxu1 %vm519_vm1, %v2882_v12  ;;  %2574 = vmatmul.mubr.msk.bf16.gmra.mrb[8].mxu0 %vm519_vm1, %v2883_v13  ;;  %v2922_v12 = vld [vmem:[%s3024_s28 + $0x64] ss:$0 sps:$4 sm:$0x11]   ;;  %v2892_v13 = vld [vmem:[%s3024_s28 + $0x8] sm:$0xff]   ;;  %v1746_v40 = vrot.slane %v1744_v32, 1  ;;  %v1749_v43 = vrot.slane %v1747_v35, 2 }
  0x24   : > { %2489 = vmatprep.mubr.msk.bf16.mxu1 %vm2953_vm0, %v2952_v1  ;;  %2587 = vmatprep.mubr.msk.bf16.mxu0 %vm2953_vm0, %v2952_v1  ;;  %v1603_v18 = vrot.slane %v2922_v12, 1  ;;  %v1765_v50 = vshll.u32 %v2927_v41, 16  ;;  %v1764_v55 = vrot.slane %v1762_v49, 1  ;;  %v1437_v2 = vrot.slane %v3097_v53, 1  ;;  %v2904_v12 = vld [vmem:[%s3024_s28 + $0x8] sm:$0xff]  }
  0x25   : > { %v1438_v3 = vrot.slane %v3114_v5, 1  ;;  %v1440_v53 = vrot.slane %v3119_v7, 1  ;;  %v1442_v7 = vrot.slane %v3134_v16, 1  ;;  %v2913_v35 = vld [vmem:[%s3024_s28 + $0x44] sm:$0xff]   ;;  %v266_v49 = vlaneseq }
  0x26   : > { %v3151_v26 = vsel %vm1436_vm3, %v1601_v11, %v1603_v18  ;;  %v2900_v11 = vld [vmem:[%s3709_s1 + $0x38] sm:$0xff]   ;;  %v778_v18 = vshll.u32 %v2904_v12, 16 }
  0x27   : > { %v1439_v10 = vsel %vm1436_vm3, %v1437_v2, %v1438_v3  ;;  %v1441_v19 = vsel %vm1436_vm3, %v1438_v3, %v1440_v53 }
  0x2b   : > { %2490 = vmatmul.mubr.msk.bf16.gmra.mrb[12].mxu1 %vm519_vm1, %v2884_v20  ;;  %2588 = vmatmul.mubr.msk.bf16.vlgmr.msra.gmra.mrb[0].mxu0 %vm519_vm1, %v1257_v22  ;;  %v1729_v20 = vshll.u32 %v3114_v5, 16  ;;  %v1723_v22 = vrot.slane %v1721_v15, 2  ;;  %v2901_v5 = vld [vmem:[%s3024_s28 + $0x20] sm:$0xff]  }
  0x2c   : > { %2493 = vmatprep.mubr.msk.bf16.mxu1 %vm2953_vm0, %v2952_v1  ;;  %2608 = vmatpush3.bf16.msra.mxu0 %v2887_v21  ;;  %v3145_v21 = vld [vmem:[%s3024_s28 + $0x24] sm:$0xff]  }
  0x2d   : > { %2591 = vmatprep.mubr.msk.bf16.mxu0 %vm2953_vm0, %v2952_v1  ;;  %2629 = vmatprep.subr.bf16.mxu0 %v2952_v1  ;;  %v1731_v28 = vrot.slane %v1729_v20, 2  ;;  %v1724_v29 = vor.u32 %v1723_v22, %v1720_v14  ;;  %v1753_v36 = vshrl.u32 %v3145_v21, 16  ;;  %v1756_v37 = vshll.u32 %v3145_v21, 16 }
  0x2e   : > { %v771_v14 = vshrl.u32 %v2903_v6, 16  ;;  %v780_v22 = vrot.slane %v778_v18, 1  ;;  %v1444_v16 = vrot.slane %v3145_v21, 1 }
  0x2f   : > { %v1732_v33 = vor.u32 %v1731_v28, %v1728_v27  ;;  %v1755_v44 = vrot.slane %v1753_v36, 1  ;;  %v1758_v45 = vrot.slane %v1756_v37, 2  ;;  %v2907_v27 = vld [vmem:[%s3709_s1 + $0x18] sm:$0xff]   ;;  %v1595_v36 = vrot.slane %v2913_v35, 1 }
  0x31   : > { %v3163_v42 = vsel %vm1716_vm4, %v1724_v29, %v1732_v33  ;;  %v1759_v52 = vor.u32 %v1758_v45, %v1755_v44  ;;  %v457_v45 = vld [vmem:[%s3329_s22 + $0x2c] sm:$0xe] }
  0x33   : > { %2494 = vmatmul.mubr.msk.bf16.gmra.mrb[16].mxu1 %vm519_vm1, %v2888_v31  ;;  %2592 = vmatmul.mubr.msk.bf16.gmra.mrb[4].mxu0 %vm519_vm1, %v1265_v38  ;;  %v1740_v31 = vrot.slane %v1738_v24, 2  ;;  %v1284_v38 = vor.u32 %v1282_v57, %v1280_v61  ;;  %v782_v24 = vshrl.u32 %v2904_v12, 16 }
  0x34   : > { %2499 = vmatprep.mubr.msk.bf16.mxu1 %vm2953_vm0, %v2952_v1  ;;  %2595 = vmatprep.mubr.msk.bf16.mxu0 %vm2953_vm0, %v2952_v1 }
  0x35   : > { %v1741_v39 = vor.u32 %v1740_v31, %v1737_v30  ;;  %v1289_v60 = vsel %vm769_vm2, %v1284_v38, %v1288_v46  ;;  %v784_v28 = vor.u32 %v782_v24, %v780_v22  ;;  %v1445_v30 = vsel %vm1436_vm3, %v1442_v7, %v1444_v16  ;;  %v2910_v31 = vld [vmem:[%s3024_s28 + $0x2c] ss:$0 sps:$4 sm:$0x11]   ;;  %v2914_v38 = vld [vmem:[%s3709_s1 + $0x40] sm:$0xff]  }
  0x36   : > { %v1446_v21 = vrot.slane %v2910_v31, 1 }
  0x37   : > { %v3168_v47 = vsel %vm1716_vm4, %v1732_v33, %v1741_v39  ;;  %v789_v29 = vsel %vm769_vm2, %v784_v28, %v3077_v34  ;;  %v2912_v33 = vld [vmem:[%s3024_s28 + $0x3c] sm:$0xfe]  }
  0x38   : > { %v1447_v32 = vsel %vm1436_vm3, %v1444_v16, %v1446_v21  ;;  %v1594_v34 = vrot.slane %v2912_v33, 1 }
  0x3a   : > { %v1596_v37 = vsel %vm1436_vm3, %v1594_v34, %v1595_v36 }
  0x3b   : > { %2500 = vmatmul.mubr.msk.bf16.vlgmr.msra.gmra.mrb[0].mxu1 %vm519_vm1, %v2890_v51  ;;  %2596 = vmatmul.mubr.msk.bf16.gmra.mrb[8].mxu0 %vm519_vm1, %v1273_v63  ;;  %v1750_v51 = vor.u32 %v1749_v43, %v1746_v40  ;;  %v451_v43 = vld [vmem:[%s3329_s22 + $0x4] sm:$0x3] }
  0x3c   : > { %2503 = vmatprep.mubr.msk.bf16.mxu1 %vm2953_vm0, %v2952_v1  ;;  %2599 = vmatprep.mubr.msk.bf16.mxu0 %vm2953_vm0, %v2952_v1  ;;  %v452_v46 = vsel %vm3332_vm7, 0, %v451_v43 }
  0x3d   : > { %2520 = vmatpush3.bf16.msra.mxu1 %v2893_v56  ;;  %v1767_v56 = vrot.slane %v1765_v50, 2  ;;  %v3172_v57 = vsel %vm1716_vm4, %v1741_v39, %v1750_v51  ;;  %v3175_v59 = vsel %vm1716_vm4, %v1750_v51, %v1759_v52  ;;  %v2916_v39 = vld [vmem:[%s3024_s28 + $0x4c] sm:$0xff]   ;;  %453 = vst [vmem:[%s3329_s22 + $0x4] sm:$0x3] %v452_v46  ;;  %v3351_v50 = vshrl.u32 %v266_v49, 7 }
  0x3e   : > { %2541 = vmatprep.subr.bf16.mxu1 %v2952_v1  ;;  %v3441_v49 = vld [vmem:[%s3710_s2] ss:$0 sm:$0xff] }
  0x3f   : > { %v1768_v61 = vor.u32 %v1767_v56, %v1764_v55  ;;  %v268_v51 = vadd.s32 8, %v3351_v50  ;;  %v272_v12 = vadd.s32 40, %v3351_v50 }
  0x41   : > { %v3180_v63 = vsel %vm1716_vm4, %v1759_v52, %v1768_v61  ;;  %v269_v52 = vadd.s32 16, %v3351_v50 }
  0x43   : > { %2504 = vmatmul.mubr.msk.bf16.gmra.mrb[4].mxu1 %vm519_vm1, %v2892_v13  ;;  %2600 = vmatmul.mubr.msk.bf16.gmra.mrb[12].mxu0 %vm519_vm1, %v1281_v25  ;;  %v773_v13 = vshll.u32 %v2903_v6, 16  ;;  %v1443_v25 = vsel %vm1436_vm3, %v1440_v53, %v1442_v7 }
  0x44   : > { %2507 = vmatprep.mubr.msk.bf16.mxu1 %vm2953_vm0, %v2952_v1  ;;  %2603 = vmatprep.mubr.msk.bf16.mxu0 %vm2953_vm0, %v2952_v1 }
  0x45   : > { %v775_v15 = vrot.slane %v773_v13, 1 }
  0x47   : > { %v776_v20 = vor.u32 %v775_v15, %v771_v14 }
  0x49   : > { %v781_v23 = vsel %vm769_vm2, %v776_v20, %v780_v22  ;;  %v3383_v20 = vmul.u32.u64.low 3435973837, %v272_v12  ;;  %v3384_v22 = vmul.u32.u64.high 3435973837, %v272_v12, %v3383_v20 }
  0x4b   : > { %2508 = vmatmul.mubr.msk.bf16.gmra.mrb[8].mxu1 %vm519_vm1, %v2895_v54  ;;  %2604 = vmatmul.mubr.msk.bf16.gmra.mrb[16].mxu0 %vm519_vm1, %v1289_v60  ;;  %v3356_v54 = vmul.u32.u64.low 3435973837, %v3351_v50  ;;  %v3357_v55 = vmul.u32.u64.high 3435973837, %v3351_v50, %v3356_v54  ;;  %v270_v60 = vadd.s32 24, %v3351_v50 }
  0x4c   : > { %2511 = vmatprep.mubr.msk.bf16.mxu1 %vm2953_vm0, %v2952_v1  ;;  %2609 = vmatprep.mubr.msk.bf16.mxu0 %vm2953_vm0, %v2952_v1 }
  0x4d   : > { %v283_v13 = vshrl.u32 %v3357_v55, 3 }
  0x4f   : > { %v284_v24 = vmul.u32 10, %v283_v13 }
  0x53   : > { %2512 = vmatmul.mubr.msk.bf16.gmra.mrb[12].mxu1 %vm519_vm1, %v2897_v4  ;;  %2610 = vmatmul.mubr.msk.bf16.vlgmr.msra.gmra.mrb[0].mxu0 %vm519_vm1, %v1439_v10  ;;  %v3370_v6 = vmul.u32.u64.low 3435973837, %v270_v60  ;;  %v3371_v10 = vmul.u32.u64.high 3435973837, %v270_v60, %v3370_v6 }
  0x54   : > { %2515 = vmatprep.mubr.msk.bf16.mxu1 %vm2953_vm0, %v2952_v1  ;;  %2630 = vmatpush3.bf16.msra.mxu0 %v2900_v11  ;;  %v271_v11 = vadd.s32 32, %v3351_v50 }
  0x55   : > { %2613 = vmatprep.mubr.msk.bf16.mxu0 %vm2953_vm0, %v2952_v1  ;;  %2651 = vmatprep.subr.bf16.mxu0 %v2952_v1  ;;  %v316_v28 = vshrl.u32 %v3371_v10, 3 }
  0x56   : > { %v3379_v14 = vmul.u32.u64.low 3435973837, %v271_v11  ;;  %v3380_v15 = vmul.u32.u64.high 3435973837, %v271_v11, %v3379_v14 }
  0x57   : > { %v317_v35 = vmul.u32 10, %v316_v28 }
  0x58   : > { %v327_v34 = vshrl.u32 %v3380_v15, 3  ;;  %v3477_v15 = vadd.s32 72, %v3351_v50 }
  0x5b   : > { %2516 = vmatmul.mubr.msk.bf16.gmra.mrb[16].mxu1 %vm519_vm1, %v2901_v5  ;;  %2614 = vmatmul.mubr.msk.bf16.gmra.mrb[4].mxu0 %vm519_vm1, %v1441_v19 }
  0x5c   : > { %2521 = vmatprep.mubr.msk.bf16.mxu1 %vm2953_vm0, %v2952_v1  ;;  %2617 = vmatprep.mubr.msk.bf16.mxu0 %vm2953_vm0, %v2952_v1 }
  0x63   : > { %2522 = vmatmul.mubr.msk.bf16.vlgmr.msra.gmra.mrb[0].mxu1 %vm519_vm1, %v781_v23  ;;  %2618 = vmatmul.mubr.msk.bf16.gmra.mrb[8].mxu0 %vm519_vm1, %v1443_v25  ;;  %v3389_v25 = vadd.s32 48, %v3351_v50 }
  0x64   : > { %2525 = vmatprep.mubr.msk.bf16.mxu1 %vm2953_vm0, %v2952_v1  ;;  %2621 = vmatprep.mubr.msk.bf16.mxu0 %vm2953_vm0, %v2952_v1 }
  0x65   : > { %2542 = vmatpush3.bf16.msra.mxu1 %v2907_v27  ;;  %v3397_v31 = vmul.u32.u64.low 3435973837, %v3389_v25  ;;  %v3398_v21 = vmul.u32.u64.high 3435973837, %v3389_v25, %v3397_v31 }
  0x66   : > { %2673 = vmatprep.subr.bf16.mxu1 %v2952_v1 }
  0x6b   : > { %2526 = vmatmul.mubr.msk.bf16.gmra.mrb[4].mxu1 %vm519_vm1, %v789_v29  ;;  %2622 = vmatmul.mubr.msk.bf16.gmra.mrb[12].mxu0 %vm519_vm1, %v1445_v30  ;;  %v3393_v29 = vadd.s32 56, %v3351_v50  ;;  %v285_v30 = vsub.s32 %v3351_v50, %v284_v24 }
  0x6c   : > { %2529 = vmatprep.mubr.msk.bf16.mxu1 %vm2953_vm0, %v2952_v1  ;;  %2625 = vmatprep.mubr.msk.bf16.mxu0 %vm2953_vm0, %v2952_v1 }
  0x6d   : > { %vm387_vm11 = vcmp.ne.s32.totalorder %v285_v30, 0  ;;  %vm397_vm12 = vcmp.lt.s32.totalorder %v285_v30, 0 }
  0x73   : > { %2530 = vmatmul.mubr.msk.bf16.gmra.mrb[8].mxu1 %vm519_vm1, %v3091_v48  ;;  %2626 = vmatmul.mubr.msk.bf16.gmra.mrb[16].mxu0 %vm519_vm1, %v1447_v32  ;;  %v1597_v48 = vrot.slane %v2916_v39, 1 }
  0x74   : > { %2533 = vmatprep.mubr.msk.bf16.mxu1 %vm2953_vm0, %v2952_v1  ;;  %2631 = vmatprep.mubr.msk.bf16.mxu0 %vm2953_vm0, %v2952_v1 }
  0x75   : > { %v1598_v40 = vsel %vm1436_vm3, %v1595_v36, %v1597_v48  ;;  %v1600_v41 = vsel %vm1436_vm3, %v1597_v48, %v1599_v9  ;;  %v2924_v9 = vld [vmem:[%s3024_s28 + $0x90] sm:$0xff]   ;;  %v3409_v39 = vmul.u32.u64.low 3435973837, %v3393_v29  ;;  %v3410_v48 = vmul.u32.u64.high 3435973837, %v3393_v29, %v3409_v39 }
  0x77   : > { %v360_v54 = vshrl.u32 %v3410_v48, 3 }
  0x79   : > { %v361_v14 = vmul.u32 10, %v360_v54 }
  0x7b   : > { %2534 = vmatmul.mubr.msk.bf16.gmra.mrb[12].mxu1 %vm519_vm1, %v3105_v58  ;;  %2632 = vmatmul.mubr.msk.bf16.vlgmr.msra.gmra.mrb[0].mxu0 %vm519_vm1, %v1596_v37  ;;  %v2917_v58 = vld [vmem:[%s3024_s28 + $0x70] sm:$0xff]  }
  0x7c   : > { %2537 = vmatprep.mubr.msk.bf16.mxu1 %vm2953_vm0, %v2952_v1  ;;  %2652 = vmatpush3.bf16.msra.mxu0 %v2914_v38  ;;  %v338_v38 = vshrl.u32 %v3384_v22, 3 }
  0x7d   : > { %2635 = vmatprep.mubr.msk.bf16.mxu0 %vm2953_vm0, %v2952_v1 }
  0x83   : > { %2538 = vmatmul.mubr.msk.bf16.gmra.mrb[16].mxu1 %vm519_vm1, %v3122_v8  ;;  %2636 = vmatmul.mubr.msk.bf16.gmra.mrb[4].mxu0 %vm519_vm1, %v1598_v40  ;;  %v2919_v8 = vld [vmem:[%s3024_s28 + $0x78] sm:$0xff]  }
  0x84   : > { %2543 = vmatprep.mubr.msk.bf16.mxu1 %vm2953_vm0, %v2952_v1  ;;  %2639 = vmatprep.mubr.msk.bf16.mxu0 %vm2953_vm0, %v2952_v1 }
  0x8b   : > { %2544 = vmatmul.mubr.msk.bf16.vlgmr.msra.gmra.mrb[0].mxu1 %vm519_vm1, %v2917_v58  ;;  %2640 = vmatmul.mubr.msk.bf16.gmra.mrb[8].mxu0 %vm519_vm1, %v1600_v41  ;;  %v318_v41 = vsub.s32 %v270_v60, %v317_v35 }
  0x8c   : > { %2547 = vmatprep.mubr.msk.bf16.mxu1 %vm2953_vm0, %v2952_v1  ;;  %2643 = vmatprep.mubr.msk.bf16.mxu0 %vm2953_vm0, %v2952_v1 }
  0x8d   : > { %2674 = vmatpush3.bf16.msra.mxu1 %v3001_v0  ;;  %v2923_v0 = vld [vmem:[%s3024_s28 + $0x88] sm:$0xff]   ;;  %vm390_vm4 = vcmp.ne.s32.totalorder %v318_v41, 0  ;;  %vm400_vm5 = vcmp.lt.s32.totalorder %v318_v41, 0 }
  0x8e   : > { %vm3466_vm8 = vmand %vm400_vm5, %vm390_vm4 }
  0x93   : > { %2548 = vmatmul.mubr.msk.bf16.gmra.mrb[4].mxu1 %vm519_vm1, %v2919_v8  ;;  %2644 = vmatmul.mubr.msk.bf16.gmra.mrb[12].mxu0 %vm519_vm1, %v3140_v17  ;;  %v2925_v17 = vld [vmem:[%s3024_s28 + $0xc0] sm:$0xff]   ;;  %v328_v8 = vmul.u32 10, %v327_v34  ;;  %v3523_v35 = vmul.u32.u64.low 3435973837, %v3477_v15  ;;  %v3524_v34 = vmul.u32.u64.high 3435973837, %v3477_v15, %v3523_v35 }
  0x94   : > { %2551 = vmatprep.mubr.msk.bf16.mxu1 %vm2953_vm0, %v2952_v1  ;;  %2647 = vmatprep.mubr.msk.bf16.mxu0 %vm2953_vm0, %v2952_v1 }
  0x9b   : > { %2552 = vmatmul.mubr.msk.bf16.gmra.mrb[8].mxu1 %vm519_vm1, %v2921_v62  ;;  %2648 = vmatmul.mubr.msk.bf16.gmra.mrb[16].mxu0 %vm519_vm1, %v3151_v26  ;;  %v2926_v26 = vld [vmem:[%s3024_s28 + $0xc8] sm:$0xff]   ;;  %v339_v62 = vmul.u32 10, %v338_v38 }
  0x9c   : > { %2555 = vmatprep.mubr.msk.bf16.mxu1 %vm2953_vm0, %v2952_v1  ;;  %2653 = vmatprep.mubr.msk.bf16.mxu0 %vm2953_vm0, %v2952_v1 }
  0xa3   : > { %2556 = vmatmul.mubr.msk.bf16.gmra.mrb[12].mxu1 %vm519_vm1, %v2923_v0  ;;  %2654 = vmatmul.mubr.msk.bf16.vlgmr.msra.gmra.mrb[0].mxu0 %vm519_vm1, %v3163_v42  ;;  %v2954_v42 = vmov 0  }
  0xa4   : > { %2559 = vmatprep.mubr.msk.bf16.mxu1 %vm2953_vm0, %v2952_v1  ;;  %2657 = vmatprep.mubr.msk.bf16.mxu0 %vm2953_vm0, %v2952_v1  ;;  %447 = vst [vmem:[%s3329_s22] sm:$0xf] %v2954_v42  ;;  %460 = vst [vmem:[%s3329_s22 + $0x30] sm:$0xf] %v2954_v42 }
  0xa5   : > { %461 = vst [vmem:[%s3329_s22 + $0x34] sm:$0x7] %v2954_v42 }
  0xab   : > { %2560 = vmatmul.mubr.msk.bf16.gmra.mrb[16].mxu1 %vm519_vm1, %v2924_v9  ;;  %2658 = vmatmul.mubr.msk.bf16.gmra.mrb[4].mxu0 %vm519_vm1, %v3168_v47  ;;  %v458_v47 = vsel %vm3338_vm10, 0, %v457_v45  ;;  %v3423_v9 = vadd.s32 64, %v3351_v50  ;;  %v349_v45 = vshrl.u32 %v3398_v21, 3 }
  0xac   : > { %2577 = vmatprep.mubr.msk.bf16.mxu1 %vm2953_vm0, %v2952_v1  ;;  %2661 = vmatprep.mubr.msk.bf16.mxu0 %vm2953_vm0, %v2952_v1  ;;  %459 = vst [vmem:[%s3329_s22 + $0x2c] sm:$0xe] %v458_v47  ;;  %v3436_v47 = vsub.s32 %v271_v11, %v328_v8 }
  0xad   : > { %v350_v11 = vmul.u32 10, %v349_v45 }
  0xae   : > { %vm391_vm9 = vcmp.ne.s32.totalorder %v3436_v47, 0 }
  0xaf   : > { %v3496_v24 = vsub.s32 %v3389_v25, %v350_v11 }
  0xb1   : > { %vm393_vm5 = vcmp.ne.s32.totalorder %v3496_v24, 0  ;;  %v3544_v45 = vadd.s32 10, %v3496_v24 }
  0xb3   : > { %2578 = vmatmul.mubr.msk.bf16.vlgmr.msra.gmra.mrb[12].mxu1 %vm519_vm1, %v2925_v17  ;;  %2662 = vmatmul.mubr.msk.bf16.gmra.mrb[8].mxu0 %vm519_vm1, %v3172_v57  ;;  %v417_v17 = vadd.s32 10, %v285_v30 }
  0xb4   : > { %2581 = vmatprep.mubr.msk.bf16.mxu1 %vm2953_vm0, %v2952_v1  ;;  %2665 = vmatprep.mubr.msk.bf16.mxu0 %vm2953_vm0, %v2952_v1 }
  0xbb   : > { %2582 = vmatmul.mubr.msk.bf16.gmra.mrb[16].mxu1 %vm519_vm1, %v2926_v26  ;;  %2666 = vmatmul.mubr.msk.bf16.gmra.mrb[12].mxu0 %vm519_vm1, %v3175_v59  ;;  %v3361_v57 = vmul.u32.u64.low 3435973837, %v268_v51  ;;  %v3362_v59 = vmul.u32.u64.high 3435973837, %v268_v51, %v3361_v57 }
  0xbc   : > { %2669 = vmatprep.mubr.msk.bf16.mxu0 %vm2953_vm0, %v2952_v1 }
  0xbd   : > { %v294_v5 = vshrl.u32 %v3362_v59, 3  ;;  %v420_v59 = vadd.s32 10, %v318_v41 }
  0xbf   : > { %v295_v27 = vmul.u32 10, %v294_v5  ;;  %v430_v20 = vsel %vm3466_vm8, %v420_v59, %v318_v41  ;;  %vm403_vm8 = vcmp.lt.s32.totalorder %v3496_v24, 0  ;;  %v2088_v59 = vld [vmem:[%s3329_s22 + $0x4] sm:$0xe] }
  0xc0   : > { %vm3515_vm4 = vcmp.lt.s32.totalorder %v430_v20, 8 }
  0xc1   : > { %v3402_v33 = vsub.s32 %v268_v51, %v295_v27 }
  0xc3   : > { %2670 = vmatmul.mubr.msk.bf16.gmra.mrb[16].mxu0 %vm519_vm1, %v3180_v63  ;;  %v3365_v63 = vmul.u32.u64.low 3435973837, %v269_v52  ;;  %v3366_v2 = vmul.u32.u64.high 3435973837, %v269_v52, %v3365_v63  ;;  %vm388_vm13 = vcmp.ne.s32.totalorder %v3402_v33, 0  ;;  %vm398_vm14 = vcmp.lt.s32.totalorder %v3402_v33, 0  ;;  %vm3418_vm1 = vmand %vm397_vm12, %vm387_vm11 }
  0xc4   : > { %vm3425_vm2 = vmand %vm398_vm14, %vm388_vm13  ;;  %v418_v42 = vadd.s32 10, %v3402_v33  ;;  %v3454_v63 = vld [vmem:[%s3711_s3] ss:$0 sm:$0xff]  ;;  %vm401_vm11 = vcmp.lt.s32.totalorder %v3436_v47, 0 }
  0xc5   : > { %v305_v19 = vshrl.u32 %v3366_v2, 3  ;;  %v427_v2 = vsel %vm3418_vm1, %v417_v17, %v285_v30 }
  0xc6   : > { %vm3479_vm14 = vcmp.lt.s32.totalorder %v427_v2, 8 }
  0xc7   : > { %v306_v16 = vmul.u32 10, %v305_v19 }
  0xc9   : > { %v3405_v37 = vsub.s32 %v269_v52, %v306_v16  ;;  %v3443_v52 = vsub.s32 %v272_v12, %v339_v62 }
  0xcb   : > { %vm389_vm15 = vcmp.ne.s32.totalorder %v3405_v37, 0  ;;  %vm399_vm0 = vcmp.lt.s32.totalorder %v3405_v37, 0  ;;  %v419_v43 = vadd.s32 10, %v3405_v37  ;;  %vm392_vm12 = vcmp.ne.s32.totalorder %v3443_v52, 0 }
  0xcc   : > { %vm3432_vm3 = vmand %vm399_vm0, %vm389_vm15  ;;  %vm402_vm13 = vcmp.lt.s32.totalorder %v3443_v52, 0  ;;  %vm1976_vm15 = vsmask.f32 5392  ;;  %v3493_v50 = vadd.s32 10, %v3443_v52 }
  0xcd   : > { %vm3487_vm0 = vmand %vm401_vm11, %vm391_vm9 }
 0x15e   : > { %v3359_v56 = vpop.f32.mrb[0].mxu1 }
 0x15f   : > { %v2545_v61 = vpop.f32.mrb[1].mxu1 }
 0x160   : > { %v3368_v3 = vpop.f32.mrb[2].mxu1  ;;  %v3448_v60 = vmul.u32.u64.low 3435973837, %v3423_v9  ;;  %v3449_v61 = vmul.u32.u64.high 3435973837, %v3423_v9, %v3448_v60 }
 0x161   : > { %v2546_v4 = vpop.f32.mrb[3].mxu1 }
 0x162   : > { %v428_v4 = vsel %vm3425_vm2, %v418_v42, %v3402_v33  ;;  %v3520_v33 = vsub.s32 %v3393_v29, %v361_v14  ;;  %v371_v48 = vshrl.u32 %v3449_v61, 3 }
 0x163   : > { %vm3498_vm1 = vcmp.lt.s32.totalorder %v428_v4, 8 }
 0x164   : > { %vm394_vm9 = vcmp.ne.s32.totalorder %v3520_v33, 0  ;;  %v3559_v4 = vadd.s32 10, %v3520_v33 }
 0x166   : > { %v3376_v53 = vpop.f32.mrb[4].mxu1 }
 0x167   : > { %v2549_v18 = vpop.f32.mrb[5].mxu1 }
 0x168   : > { %v3386_v7 = vpop.f32.mrb[6].mxu1 }
 0x169   : > { %v2550_v23 = vpop.f32.mrb[7].mxu1 }
 0x16a   : > { %v421_v23 = vadd.s32 10, %v3436_v47 }
 0x16c   : > { %v431_v29 = vsel %vm3487_vm0, %v421_v23, %v3436_v47 }
 0x16d   : > { %vm3549_vm11 = vcmp.lt.s32.totalorder %v431_v29, 8 }
 0x16e   : > { %v3400_v32 = vpop.f32.mrb[8].mxu1 }
 0x16f   : > { %v2553_v36 = vpop.f32.mrb[9].mxu1 }
 0x170   : > { %v3412_v40 = vpop.f32.mrb[10].mxu1 }
 0x171   : > { %v2554_v58 = vpop.f32.mrb[11].mxu1 }
 0x176   : > { %v1825_v51 = vpop.f32.mrb[0].mxu0 }
 0x177   : > { %v2675_v55 = vadd.f32 %v1825_v51, %v3359_v56  ;;  %v2655_v57 = vpop.f32.mrb[1].mxu0  ;;  %v429_v56 = vsel %vm3432_vm3, %v419_v43, %v3405_v37  ;;  %vm3511_vm3 = vmand %vm402_vm13, %vm392_vm12  ;;  %v372_v51 = vmul.u32 10, %v371_v48  ;;  %vm404_vm12 = vcmp.lt.s32.totalorder %v3520_v33, 0 }
 0x178   : > { %v1828_v6 = vpop.f32.mrb[2].mxu0  ;;  %vm3503_vm2 = vcmp.lt.s32.totalorder %v429_v56, 8  ;;  %v432_v8 = vsel %vm3511_vm3, %v3493_v50, %v3443_v52  ;;  %vm3564_vm13 = vmor %vm449_vm6, %vm1976_vm15 }
 0x179   : > { %v1880_v12 = vmul.f32 %v2675_v55, %v3441_v49  ;;  %v2676_v13 = vadd.f32 %v1828_v6, %v3368_v3  ;;  %v2656_v5 = vpop.f32.mrb[3].mxu0  ;;  %v3572_v22 = vsub.s32 %v3423_v9, %v372_v51  ;;  %vm3580_vm6 = vmand %vm403_vm8, %vm393_vm5 }
 0x17b   : > { %v1896_v19 = vadd.f32 %v3454_v63, %v1880_v12  ;;  %v1881_v3 = vmul.f32 %v2676_v13, %v3441_v49  ;;  %v382_v13 = vshrl.u32 %v3524_v34, 3  ;;  %vm395_vm15 = vcmp.ne.s32.totalorder %v3572_v22, 0 }
 0x17d   : > { %v1906_v27 = vmax.f32 %v1896_v19, 0.0  ;;  %v1897_v16 = vadd.f32 %v3454_v63, %v1881_v3 }
 0x17e   : > { %v1833_v25 = vpop.f32.mrb[4].mxu0 }
 0x17f   : > { %v1936_v36 = vsel %vm3479_vm14, %v1906_v27, 0.0  ;;  %v1907_v37 = vmax.f32 %v1897_v16, 0.0  ;;  %v2677_v38 = vadd.f32 %v1833_v25, %v3376_v53  ;;  %v2659_v39 = vpop.f32.mrb[5].mxu0  ;;  %vm3597_vm14 = vmand %vm404_vm12, %vm394_vm9 }
 0x180   : > { %v2411_v58 = vpack.c.bf16 %v1936_v36, %v1936_v36  ;;  %v1836_v41 = vpop.f32.mrb[6].mxu0 }
 0x181   : > { %v1937_v62 = vsel %vm3498_vm1, %v1907_v37, 0.0  ;;  %v1882_v53 = vmul.f32 %v2677_v38, %v3441_v49  ;;  %v2678_v0 = vadd.f32 %v1836_v41, %v3386_v7  ;;  %v2660_v17 = vpop.f32.mrb[7].mxu0  ;;  %v383_v38 = vmul.u32 10, %v382_v13 }
 0x182   : > { %v1979_v26 = vshrl.u32 %v2411_v58, 16  ;;  %v1982_v42 = vshll.u32 %v2411_v58, 16  ;;  %v2412_v43 = vpack.c.bf16 %v1937_v62, %v1937_v62  ;;  %v433_v58 = vsel %vm3580_vm6, %v3544_v45, %v3496_v24 }
 0x183   : > { %v1898_v46 = vadd.f32 %v3454_v63, %v1882_v53  ;;  %v1883_v47 = vmul.f32 %v2678_v0, %v3441_v49  ;;  %vm3616_vm0 = vcmp.lt.s32.totalorder %v433_v58, 8  ;;  %vm405_vm1 = vcmp.lt.s32.totalorder %v3572_v22, 0 }
 0x184   : > { %v1981_v52 = vrot.slane %v1979_v26, 6  ;;  %v1984_v54 = vrot.slane %v1982_v42, 7  ;;  %v1988_v7 = vshrl.u32 %v2412_v43, 16  ;;  %v1991_v55 = vshll.u32 %v2412_v43, 16  ;;  %vm3650_vm5 = vmand %vm405_vm1, %vm395_vm15 }
 0x185   : > { %v1908_v60 = vmax.f32 %v1898_v46, 0.0  ;;  %v1899_v61 = vadd.f32 %v3454_v63, %v1883_v47 }
 0x186   : > { %v3555_v2 = vpop.f32.mrb[12].mxu1  ;;  %v1985_v6 = vor.u32 %v1984_v54, %v1981_v52  ;;  %v1990_v56 = vrot.slane %v1988_v7, 6  ;;  %v1993_v10 = vrot.slane %v1991_v55, 7  ;;  %v1841_v11 = vpop.f32.mrb[8].mxu0 }
 0x187   : > { %v2579_v12 = vpop.f32.mrb[13].mxu1  ;;  %v1938_v14 = vsel %vm3503_vm2, %v1908_v60, 0.0  ;;  %v1909_v18 = vmax.f32 %v1899_v61, 0.0  ;;  %v2679_v19 = vadd.f32 %v1841_v11, %v3400_v32  ;;  %v2663_v3 = vpop.f32.mrb[9].mxu0  ;;  %v2100_v32 = vld [vmem:[%s3329_s22 + $0x2c] sm:$0x3] }
 0x188   : > { %v1182_v20 = vpop.f32.mrb[14].mxu1  ;;  %v1986_v23 = vrot.slane %v1985_v6, 4  ;;  %v2089_v50 = vsel %vm3338_vm10, %v1985_v6, %v2088_v59  ;;  %v1994_v27 = vor.u32 %v1993_v10, %v1990_v56  ;;  %v2413_v28 = vpack.c.bf16 %v1938_v14, %v1938_v14  ;;  %v1844_v16 = vpop.f32.mrb[10].mxu0 }
 0x189   : > { %v2580_v31 = vpop.f32.mrb[15].mxu1  ;;  %2090 = vst [vmem:[%s3329_s22 + $0x4] sm:$0xe] %v2089_v50  ;;  %v1939_v9 = vsel %vm3515_vm4, %v1909_v18, 0.0  ;;  %v1884_v44 = vmul.f32 %v2679_v19, %v3441_v49  ;;  %vm3588_vm10 = vcmp.lt.s32.totalorder %v432_v8, 8  ;;  %v2680_v25 = vadd.f32 %v1844_v16, %v3412_v40  ;;  %v2664_v35 = vpop.f32.mrb[11].mxu0 }
 0x18a   : > { %v1995_v21 = vsel %vm3564_vm13, %v1986_v23, %v1994_v27  ;;  %v1998_v36 = vshrl.u32 %v2413_v28, 16  ;;  %v2001_v37 = vshll.u32 %v2413_v28, 16  ;;  %v2414_v39 = vpack.c.bf16 %v1939_v9, %v1939_v9 }
 0x18b   : > { %2091 = vst [vmem:[%s3329_s22 + $0x8] sm:$0xf] %v1995_v21  ;;  %v1900_v48 = vadd.f32 %v3454_v63, %v1884_v44  ;;  %v1885_v40 = vmul.f32 %v2680_v25, %v3441_v49  ;;  %v434_v8 = vsel %vm3597_vm14, %v3559_v4, %v3520_v33  ;;  %v1996_v42 = vrot.slane %v1994_v27, 4 }
 0x18c   : > { %v2000_v41 = vrot.slane %v1998_v36, 6  ;;  %v2003_v29 = vrot.slane %v2001_v37, 7  ;;  %v2008_v62 = vshrl.u32 %v2414_v39, 16  ;;  %v2011_v53 = vshll.u32 %v2414_v39, 16 }
 0x18d   : > { %v1910_v0 = vmax.f32 %v1900_v48, 0.0  ;;  %v1901_v17 = vadd.f32 %v3454_v63, %v1885_v40  ;;  %v3622_v33 = vsub.s32 %v3477_v15, %v383_v38  ;;  %v425_v12 = vadd.s32 10, %v3572_v22 }
 0x18e   : > { %v1187_v26 = vpop.f32.mrb[16].mxu1  ;;  %v2004_v43 = vor.u32 %v2003_v29, %v2000_v41  ;;  %v1849_v24 = vpop.f32.mrb[12].mxu0  ;;  %v2010_v47 = vrot.slane %v2008_v62, 6  ;;  %v2013_v51 = vrot.slane %v2011_v53, 7  ;;  %vm3641_vm4 = vcmp.lt.s32.totalorder %v434_v8, 8 }
 0x18f   : > { %v2583_v45 = vpop.f32.mrb[17].mxu1  ;;  %v1940_v52 = vsel %vm3549_vm11, %v1910_v0, 0.0  ;;  %v1911_v54 = vmax.f32 %v1901_v17, 0.0  ;;  %v2667_v7 = vpop.f32.mrb[13].mxu0  ;;  %v2681_v4 = vadd.f32 %v1849_v24, %v3555_v2  ;;  %vm396_vm2 = vcmp.ne.s32.totalorder %v3622_v33, 0 }
 0x190   : > { %v1190_v55 = vpop.f32.mrb[18].mxu1  ;;  %v2005_v59 = vsel %vm3564_vm13, %v1996_v42, %v2004_v43  ;;  %v2006_v60 = vrot.slane %v2004_v43, 4  ;;  %v2415_v61 = vpack.c.bf16 %v1940_v52, %v1940_v52  ;;  %v1852_v6 = vpop.f32.mrb[14].mxu0  ;;  %v2014_v15 = vor.u32 %v2013_v51, %v2010_v47 }
 0x191   : > { %v2584_v56 = vpop.f32.mrb[19].mxu1  ;;  %2092 = vst [vmem:[%s3329_s22 + $0xc] sm:$0xf] %v2005_v59  ;;  %v1941_v10 = vsel %vm3588_vm10, %v1911_v54, 0.0  ;;  %v2682_v57 = vadd.f32 %v1852_v6, %v1182_v20  ;;  %v2668_v11 = vpop.f32.mrb[15].mxu0  ;;  %v1886_v19 = vmul.f32 %v2681_v4, %v3441_v49  ;;  %vm406_vm3 = vcmp.lt.s32.totalorder %v3622_v33, 0 }
 0x192   : > { %v2018_v13 = vshrl.u32 %v2415_v61, 16  ;;  %v2021_v14 = vshll.u32 %v2415_v61, 16  ;;  %v2416_v18 = vpack.c.bf16 %v1941_v10, %v1941_v10  ;;  %v2015_v2 = vsel %vm3564_vm13, %v2006_v60, %v2014_v15  ;;  %vm3659_vm8 = vmand %vm406_vm3, %vm396_vm2 }
 0x193   : > { %v1887_v3 = vmul.f32 %v2682_v57, %v3441_v49  ;;  %2093 = vst [vmem:[%s3329_s22 + $0x10] sm:$0xf] %v2015_v2  ;;  %v1902_v28 = vadd.f32 %v3454_v63, %v1886_v19  ;;  %v426_v9 = vadd.s32 10, %v3622_v33  ;;  %v2016_v44 = vrot.slane %v2014_v15, 4 }
 0x194   : > { %v2020_v23 = vrot.slane %v2018_v13, 6  ;;  %v2023_v20 = vrot.slane %v2021_v14, 7  ;;  %v2028_v50 = vshrl.u32 %v2416_v18, 16  ;;  %v2031_v27 = vshll.u32 %v2416_v18, 16 }
 0x195   : > { %v1903_v31 = vadd.f32 %v3454_v63, %v1887_v3  ;;  %v1912_v21 = vmax.f32 %v1902_v28, 0.0  ;;  %v435_v41 = vsel %vm3650_vm5, %v425_v12, %v3572_v22  ;;  %v436_v22 = vsel %vm3659_vm8, %v426_v9, %v3622_v33 }
 0x196   : > { %v2024_v30 = vor.u32 %v2023_v20, %v2020_v23  ;;  %v2030_v25 = vrot.slane %v2028_v50, 6  ;;  %v2033_v35 = vrot.slane %v2031_v27, 7  ;;  %v1857_v34 = vpop.f32.mrb[16].mxu0  ;;  %vm445_vm9 = vcmp.lt.s32.totalorder %v435_v41, 8 }
 0x197   : > { %v1913_v36 = vmax.f32 %v1903_v31, 0.0  ;;  %v2683_v37 = vadd.f32 %v1857_v34, %v1187_v26  ;;  %v2671_v38 = vpop.f32.mrb[17].mxu0  ;;  %v1942_v8 = vsel %vm3616_vm0, %v1912_v21, 0.0  ;;  %vm446_vm11 = vcmp.lt.s32.totalorder %v436_v22, 8 }
 0x198   : > { %v2025_v48 = vsel %vm3564_vm13, %v2016_v44, %v2024_v30  ;;  %v2026_v40 = vrot.slane %v2024_v30, 4  ;;  %v2034_v58 = vor.u32 %v2033_v35, %v2030_v25  ;;  %v1860_v29 = vpop.f32.mrb[18].mxu0  ;;  %v2417_v42 = vpack.c.bf16 %v1942_v8, %v1942_v8 }
 0x199   : > { %2094 = vst [vmem:[%s3329_s22 + $0x14] sm:$0xf] %v2025_v48  ;;  %v1943_v62 = vsel %vm3641_vm4, %v1913_v36, 0.0  ;;  %v1888_v53 = vmul.f32 %v2683_v37, %v3441_v49  ;;  %v2684_v0 = vadd.f32 %v1860_v29, %v1190_v55  ;;  %v2672_v17 = vpop.f32.mrb[19].mxu0 }
 0x19a   : > { %v2035_v26 = vsel %vm3564_vm13, %v2026_v40, %v2034_v58  ;;  %v2418_v43 = vpack.c.bf16 %v1943_v62, %v1943_v62  ;;  %v2038_v45 = vshrl.u32 %v2417_v42, 16  ;;  %v2041_v47 = vshll.u32 %v2417_v42, 16 }
 0x19b   : > { %2095 = vst [vmem:[%s3329_s22 + $0x18] sm:$0xf] %v2035_v26  ;;  %v1904_v46 = vadd.f32 %v3454_v63, %v1888_v53  ;;  %v1889_v24 = vmul.f32 %v2684_v0, %v3441_v49  ;;  %v2036_v6 = vrot.slane %v2034_v58, 4 }
 0x19c   : > { %v2048_v51 = vshrl.u32 %v2418_v43, 16  ;;  %v2051_v52 = vshll.u32 %v2418_v43, 16  ;;  %v2040_v55 = vrot.slane %v2038_v45, 6  ;;  %v2043_v59 = vrot.slane %v2041_v47, 7 }
 0x19d   : > { %v1914_v54 = vmax.f32 %v1904_v46, 0.0  ;;  %v1905_v7 = vadd.f32 %v3454_v63, %v1889_v24 }
 0x19e   : > { %v2050_v60 = vrot.slane %v2048_v51, 6  ;;  %v2053_v61 = vrot.slane %v2051_v52, 7  ;;  %v2044_v56 = vor.u32 %v2043_v59, %v2040_v55 }
 0x19f   : > { %v1944_v33 = vsel %vm445_vm9, %v1914_v54, 0.0  ;;  %v1915_v4 = vmax.f32 %v1905_v7, 0.0 }
 0x1a0   : > { %v2054_v15 = vor.u32 %v2053_v61, %v2050_v60  ;;  %v2419_v49 = vpack.c.bf16 %v1944_v33, %v1944_v33  ;;  %v2045_v57 = vsel %vm3564_vm13, %v2036_v6, %v2044_v56  ;;  %v2046_v11 = vrot.slane %v2044_v56, 4 }
 0x1a1   : > { %v1945_v10 = vsel %vm446_vm11, %v1915_v4, 0.0  ;;  %2096 = vst [vmem:[%s3329_s22 + $0x1c] sm:$0xf] %v2045_v57 }
 0x1a2   : > { %v2058_v12 = vshrl.u32 %v2419_v49, 16  ;;  %v2061_v63 = vshll.u32 %v2419_v49, 16  ;;  %v2420_v13 = vpack.c.bf16 %v1945_v10, %v1945_v10  ;;  %v2055_v14 = vsel %vm3564_vm13, %v2046_v11, %v2054_v15 }
 0x1a3   : > { %2097 = vst [vmem:[%s3329_s22 + $0x20] sm:$0xf] %v2055_v14  ;;  %v2056_v23 = vrot.slane %v2054_v15, 4 }
 0x1a4   : > { %v2060_v18 = vrot.slane %v2058_v12, 6  ;;  %v2063_v19 = vrot.slane %v2061_v63, 7  ;;  %v2068_v2 = vshrl.u32 %v2420_v13, 16  ;;  %v2071_v3 = vshll.u32 %v2420_v13, 16 }
 0x1a6   : > { %v2064_v20 = vor.u32 %v2063_v19, %v2060_v18  ;;  %v2070_v50 = vrot.slane %v2068_v2, 6  ;;  %v2073_v27 = vrot.slane %v2071_v3, 7 }
 0x1a8   : > { %v2065_v28 = vsel %vm3564_vm13, %v2056_v23, %v2064_v20  ;;  %v2066_v16 = vrot.slane %v2064_v20, 4  ;;  %v2074_v31 = vor.u32 %v2073_v27, %v2070_v50 }
 0x1a9   : > { %2098 = vst [vmem:[%s3329_s22 + $0x24] sm:$0xf] %v2065_v28 }
 0x1aa   : > { %v2075_v9 = vsel %vm3564_vm13, %v2066_v16, %v2074_v31  ;;  %v2076_v44 = vrot.slane %v2074_v31, 4 }
 0x1ab   : > { %2099 = vst [vmem:[%s3329_s22 + $0x28] sm:$0xf] %v2075_v9 }
 0x1ac   : > { %v2101_v30 = vsel %vm3332_vm7, %v2076_v44, %v2100_v32 }
 0x1ad   : > { %2102 = vst [vmem:[%s3329_s22 + $0x2c] sm:$0x3] %v2101_v30 }
 0x1ae PF: > { %s14_s17 = sadd.s32 1, %s2950_s17   ;;  %s3755_s15 = smov %s2946_s16 }
 0x1af   : > { %p11_p5 = scmp.ge.s32.totalorder %s14_s17, 4   ;;  %s3756_s16 = smov %s3758_s18 }
 0x1b1   :  { %13 = sbr.rel (!%p11_p5) target bundleno = 2 (0x2), region = 86 }

// kernel: residual_block_forward.3
= control target key start
LH: loop header
LB: loop body
LE: loop exit
PB: predicated region body
PF: predicated region fallthrough
CT: control target
= control target key end

     0   :  { %s4085_s27 = smov 0   ;;  %s4087_s28 = smov 0   ;;  %s5212_s0 = inlined_call_operand.vmem [shape: bf16[2,1,110,128], index: 0, kind: input, shape index: {}]   ;;  %s5213_s1 = inlined_call_operand.vmem [shape: bf16[9,128,128], index: 1, kind: input, shape index: {}]   ;;  %s5214_s2 = inlined_call_operand.vmem [shape: f32[1,128], index: 2, kind: input, shape index: {}]   ;;  %s5215_s3 = inlined_call_operand.vmem [shape: f32[1,128], index: 3, kind: input, shape index: {}]   ;;  %s5216_s4 = inlined_call_operand.vmem [shape: bf16[2,1,110,16], index: 4, kind: input, shape index: {}]   ;;  %s5217_s5 = inlined_call_operand.vmem [shape: bf16[16,128], index: 5, kind: input, shape index: {}]   ;;  %s5218_s6 = inlined_call_operand.vmem [shape: f32[1,128], index: 6, kind: input, shape index: {}]   ;;  %s5219_s7 = inlined_call_operand.vmem [shape: f32[1,128], index: 7, kind: input, shape index: {}]   ;;  %s5220_s8 = inlined_call_operand.vmem [shape: bf16[2,110,128], index: 8, kind: output, shape index: {}]  }
   0x1   :  { %s4089_s29 = smov 0  }
   0x2 LB: > { %s27_s30 = sadd.s32 1, %s4031_s28  ;;  %p2979_p0 = scmp.ge.s32.totalorder %s4035_s29, 1  ;;  %s4035_s29 = sphi %s4089_s29, %s18_s29   ;;  %s4031_s28 = sphi %s4087_s28, %s5264_s28   ;;  %s4027_s27 = sphi %s4085_s27, %s5263_s27  }
   0x3   : > { %p28_p1 = scmp.ge.s32.totalorder %s27_s30, 2  ;;  %p336_p2 = scmp.lt.s32.totalorder %s4035_s29, 3 }
   0x5   : > { %s5266_s30 = smov (%p28_p1, %s27_s30), 0  ;;  %p337_p3 = pnand %p2979_p0, %p336_p2 }
   0x6   : > { %v3911_v0 = vld [vmem:[%s5213_s1 + $0x40] sm:$0xff] (!%p337_p3)   ;;  %v4037_v1 = vmov (!%p337_p3), 0.0   ;;  %v3913_v3 = vld [vmem:[%s5213_s1 + $0x48] sm:$0xff] (!%p337_p3)   ;;  %vm4038_vm0 = vmmov (!%p337_p3), 0   ;;  %p398_p4 = scmp.lt.s32.totalorder (!%p337_p3), %s4027_s27, 1  ;;  %v3915_v5 = vld [vmem:[%s5213_s1 + $0x50] sm:$0xff] (!%p337_p3)  }
   0x7   : > { %340 = sbr.rel (%p337_p3) target bundleno = 472 (0x1d8), region = 52  ;;  %3367 = vmatprep.subr.bf16.mxu1 (!%p337_p3), %v4037_v1  ;;  %3511 = vmatprep.subr.bf16.mxu0 (!%p337_p3), %v4037_v1  ;;  %v3912_v2 = vld [vmem:[%s5213_s1 + $0x100] sm:$0xff] (!%p337_p3)   ;;  %v3914_v4 = vld [vmem:[%s5213_s1 + $0x108] sm:$0xff] (!%p337_p3)   ;;  %v3916_v6 = vld [vmem:[%s5213_s1 + $0x110] sm:$0xff] (!%p337_p3)   ;;  %vm711_vm1 = vsmask.f32 (!%p337_p3), 7424 }
   0x8   : > { %3368 = vmatpush3.bf16.msra.mxu1 (!%p337_p3), %v3911_v0  ;;  %3383 = vmatprep.mubr.msk.bf16.mxu1 (!%p337_p3), %vm4038_vm0, %v4037_v1  ;;  %v3917_v7 = vld [vmem:[%s5213_s1 + $0x58] sm:$0xff] (!%p337_p3)   ;;  %v3919_v9 = vld [vmem:[%s5213_s1 + $0x60] sm:$0xff] (!%p337_p3)   ;;  %v3921_v11 = vld [vmem:[%s5213_s1 + $0x68] sm:$0xff] (!%p337_p3)   ;;  %vm1401_vm2 = vsmask.f32 (!%p337_p3), 6400  ;;  %vm1029_vm3 = vcmask (!%p337_p3), 1046528  }
   0x9   : > { %3512 = vmatpush3.bf16.msra.mxu0 (!%p337_p3), %v3912_v2  ;;  %3369 = vmatprep.subr.bf16.mxu1 (!%p337_p3), %v4037_v1  ;;  %v3918_v8 = vld [vmem:[%s5213_s1 + $0x118] sm:$0xff] (!%p337_p3)   ;;  %v3920_v10 = vld [vmem:[%s5213_s1 + $0x120] sm:$0xff] (!%p337_p3)   ;;  %v3922_v19 = vld [vmem:[%s5213_s1 + $0x128] sm:$0xff] (!%p337_p3)   ;;  %vm1612_vm4 = vcmask (!%p337_p3), 1045504   ;;  %vm2195_vm5 = vcmask (!%p337_p3), 1044480   ;;  %vm2473_vm7 = vcmask (!%p337_p3), 130048  }
   0xa   : > { %3513 = vmatprep.subr.bf16.mxu0 (!%p337_p3), %v4037_v1  ;;  %3527 = vmatprep.mubr.msk.bf16.mxu0 (!%p337_p3), %vm4038_vm0, %v4037_v1  ;;  %v3923_v22 = vld [vmem:[%s5213_s1 + $0x70] sm:$0xff] (!%p337_p3)   ;;  %v3925_v35 = vld [vmem:[%s5213_s1 + $0x78] sm:$0xff] (!%p337_p3)   ;;  %v3931_v45 = vld [vmem:[%s5213_s1 + $0x140] sm:$0xff] (!%p337_p3)   ;;  %vm1984_vm6 = vsmask.f32 (!%p337_p3), 5376  ;;  %vm625_vm8 = vcmask (!%p337_p3), 1041408  }
   0xb   : > { %v3924_v25 = vld [vmem:[%s5213_s1 + $0x130] sm:$0xff] (!%p337_p3)   ;;  %v3926_v36 = vld [vmem:[%s5213_s1 + $0x138] sm:$0xff] (!%p337_p3)   ;;  %v3932_v47 = vld [vmem:[%s5213_s1] sm:$0xff] (!%p337_p3)   ;;  %vm631_vm9 = vcmask (!%p337_p3), 1043457   ;;  %vm626_vm10 = vsmask.f32 (!%p337_p3), 1280 }
   0xc   : > { %3370 = vmatpush3.bf16.msra.mxu1 (!%p337_p3), %v3913_v3  ;;  %v3933_v54 = vld [vmem:[%s5213_s1 + $0x148] sm:$0xff] (!%p337_p3)   ;;  %v3937_v62 = vld [vmem:[%s5213_s1 + $0x150] sm:$0xff] (!%p337_p3)   ;;  %vm632_vm11 = vsmask.f32 (!%p337_p3), 7942  ;;  %vm4756_vm12 = vmand (!%p337_p3), %vm625_vm8, %vm626_vm10 }
   0xd   : > { %3514 = vmatpush3.bf16.msra.mxu0 (!%p337_p3), %v3914_v4  ;;  %3371 = vmatprep.subr.bf16.mxu1 (!%p337_p3), %v4037_v1  ;;  %v3936_v55 = vld [vmem:[%s5213_s1 + $0x8] sm:$0xff] (!%p337_p3)   ;;  %v3938_v4 = vld [vmem:[%s5213_s1 + $0x10] sm:$0xff] (!%p337_p3)   ;;  %vm4763_vm13 = vmand (!%p337_p3), %vm631_vm9, %vm632_vm11 }
   0xe   : > { %s5268_s27 = smov (!%p398_p4, %s4027_s27), 1  ;;  %3515 = vmatprep.subr.bf16.mxu0 %v4037_v1 }
   0xf   : > { %s4131_s21 = smul.u32 56, %s5268_s27 }
  0x10   : > { %3372 = vmatpush3.bf16.msra.mxu1 %v3915_v5 }
  0x11   : > { %3516 = vmatpush3.bf16.msra.mxu0 %v3916_v6  ;;  %3373 = vmatprep.subr.bf16.mxu1 %v4037_v1  ;;  %s4145_s27 = scalar_lea.vmem %s5212_s0, %s4131_s21  ;;  %s4461_s20 = scalar_lea.vmem %s5216_s4, %s4131_s21 }
  0x12   : > { %3517 = vmatprep.subr.bf16.mxu0 %v4037_v1  ;;  %v639_v12 = vld [vmem:[%s4145_s27] sm:$0xf]  ;;  %v4160_v13 = vld [vmem:[%s4145_s27 + $0x4] sm:$0xf]  ;;  %v4166_v15 = vld [vmem:[%s4145_s27 + $0x8] sm:$0xff]   ;;  %s4749_s10 = scalar_lea.vmem %s5220_s8, %s4131_s21 }
  0x13   : > { %v4163_v14 = vcombine.low %v639_v12, %v4160_v13  ;;  %v4169_v16 = vld [vmem:[%s4145_s27 + $0xc] sm:$0xff]   ;;  %v1177_v17 = vld [vmem:[%s4145_s27 + $0x4] sm:$0xe]  ;;  %v4173_v18 = vld [vmem:[%s4145_s27 + $0x8] sm:$0xf]  ;;  %v720_v30 = vshll.u32 %v4166_v15, 16 }
  0x14   : > { %3374 = vmatpush3.bf16.msra.mxu1 %v3917_v7  ;;  %v4181_v21 = vcombine.low %v1177_v17, %v4173_v18  ;;  %v1411_v23 = vshrl.u32 %v4169_v16, 16  ;;  %v1414_v24 = vshll.u32 %v4169_v16, 16  ;;  %v4205_v37 = vld [vmem:[%s4145_s27 + $0x10] sm:$0xff]   ;;  %v724_v48 = vshrl.u32 %v4166_v15, 16  ;;  %v4226_v53 = vld [vmem:[%s4145_s27 + $0x1c] sm:$0xff]   ;;  %v4258_v7 = vld [vmem:[%s4145_s27 + $0x24] sm:$0xff]  }
  0x15   : > { %3518 = vmatpush3.bf16.msra.mxu0 %v3918_v8  ;;  %3375 = vmatprep.subr.bf16.mxu1 %v4037_v1  ;;  %v715_v20 = vshll.u32 %v4163_v14, 16  ;;  %v713_v26 = vshrl.u32 %v4163_v14, 16  ;;  %v722_v39 = vrot.slane %v720_v30, 1  ;;  %v4208_v40 = vld [vmem:[%s4145_s27 + $0x14] sm:$0xff]   ;;  %v728_v49 = vshll.u32 %v4205_v37, 16  ;;  %v3946_v30 = vld [vmem:[%s5213_s1 + $0x20] sm:$0xff]  }
  0x16   : > { %3519 = vmatprep.subr.bf16.mxu0 %v4037_v1  ;;  %v1403_v27 = vshrl.u32 %v4181_v21, 16  ;;  %v1406_v28 = vshll.u32 %v4181_v21, 16  ;;  %v1413_v33 = vrot.slane %v1411_v23, 1  ;;  %v1416_v34 = vrot.slane %v1414_v24, 2  ;;  %v4236_v58 = vld [vmem:[%s4145_s27 + $0x18] sm:$0xff]  }
  0x17   : > { %v717_v29 = vrot.slane %v715_v20, 1  ;;  %v1420_v43 = vshrl.u32 %v4208_v40, 16  ;;  %v1423_v44 = vshll.u32 %v4208_v40, 16  ;;  %v726_v56 = vor.u32 %v724_v48, %v722_v39  ;;  %v3941_v12 = vld [vmem:[%s5213_s1 + $0x158] sm:$0xff]  }
  0x18   : > { %3376 = vmatpush3.bf16.msra.mxu1 %v3919_v9  ;;  %v1405_v31 = vrot.slane %v1403_v27, 1  ;;  %v1408_v32 = vrot.slane %v1406_v28, 2  ;;  %v1417_v42 = vor.u32 %v1416_v34, %v1413_v33  ;;  %v730_v57 = vrot.slane %v728_v49, 1  ;;  %v3942_v17 = vld [vmem:[%s5213_s1 + $0x18] sm:$0xff]  }
  0x19   : > { %3520 = vmatpush3.bf16.msra.mxu0 %v3920_v10  ;;  %3377 = vmatprep.subr.bf16.mxu1 %v4037_v1  ;;  %v718_v38 = vor.u32 %v717_v29, %v713_v26  ;;  %v1422_v50 = vrot.slane %v1420_v43, 1  ;;  %v1425_v52 = vrot.slane %v1423_v44, 2  ;;  %v1429_v60 = vshrl.u32 %v4226_v53, 16  ;;  %v4264_v10 = vld [vmem:[%s4145_s27 + $0x20] sm:$0xff]   ;;  %v3949_v43 = vld [vmem:[%s5213_s1 + $0x170] sm:$0xff]  }
  0x1a   : > { %3521 = vmatprep.subr.bf16.mxu0 %v4037_v1  ;;  %v1409_v41 = vor.u32 %v1408_v32, %v1405_v31  ;;  %v1432_v61 = vshll.u32 %v4226_v53, 16  ;;  %v731_v63 = vsel %vm711_vm1, %v726_v56, %v730_v57  ;;  %v732_v0 = vshrl.u32 %v4205_v37, 16  ;;  %v4285_v26 = vld [vmem:[%s4145_s27 + $0x2c] ss:$0 sps:$4 sm:$0x33]  }
  0x1b   : > { %v723_v46 = vsel %vm711_vm1, %v718_v38, %v722_v39  ;;  %v1426_v59 = vor.u32 %v1425_v52, %v1422_v50  ;;  %v736_v2 = vshll.u32 %v4236_v58, 16  ;;  %v1431_v5 = vrot.slane %v1429_v60, 1  ;;  %v4294_v31 = vld [vmem:[%s4145_s27 + $0x28] ss:$0 sps:$4 sm:$0x11]  }
  0x1c   : > { %3378 = vmatpush3.bf16.msra.mxu1 %v3921_v11  ;;  %v1418_v51 = vsel %vm1401_vm2, %v1409_v41, %v1417_v42  ;;  %v1434_v6 = vrot.slane %v1432_v61, 2  ;;  %v734_v8 = vor.u32 %v732_v0, %v730_v57  ;;  %v1441_v20 = vshll.u32 %v4258_v7, 16  ;;  %v3947_v32 = vld [vmem:[%s5213_s1 + $0x168] sm:$0xff]   ;;  %v1591_v57 = vld [vmem:[%s4145_s27 + $0x4] sm:$0xc] }
  0x1d   : > { %3522 = vmatpush3.bf16.msra.mxu0 %v3922_v19  ;;  %3379 = vmatprep.subr.bf16.mxu1 %v4037_v1  ;;  %v1427_v3 = vsel %vm1401_vm2, %v1417_v42, %v1426_v59  ;;  %v738_v9 = vrot.slane %v736_v2, 1  ;;  %v1438_v19 = vshrl.u32 %v4258_v7, 16  ;;  %v740_v23 = vshrl.u32 %v4236_v58, 16 }
  0x1e   : > { %3523 = vmatprep.subr.bf16.mxu0 %v4037_v1  ;;  %v1435_v11 = vor.u32 %v1434_v6, %v1431_v5  ;;  %v1443_v29 = vrot.slane %v1441_v20, 2  ;;  %v1447_v38 = vshrl.u32 %v4285_v26, 16  ;;  %v1450_v39 = vshll.u32 %v4285_v26, 16 }
  0x1f   : > { %v739_v24 = vsel %vm711_vm1, %v734_v8, %v738_v9  ;;  %v1440_v28 = vrot.slane %v1438_v19, 1  ;;  %v742_v33 = vor.u32 %v740_v23, %v738_v9  ;;  %v1031_v41 = vrot.slane %v4166_v15, 1  ;;  %v1008_v9 = vld [vmem:[%s4145_s27] sm:$0xe]  ;;  %v3958_v23 = vld [vmem:[%s5213_s1 + $0x188] sm:$0xff]  }
  0x20   : > { %3380 = vmatpush3.bf16.msra.mxu1 %v3923_v22  ;;  %v3943_v22 = vld [vmem:[%s5213_s1 + $0x160] sm:$0xff]   ;;  %v1436_v27 = vsel %vm1401_vm2, %v1426_v59, %v1435_v11  ;;  %v1033_v42 = vrot.slane %v4205_v37, 1  ;;  %v1449_v49 = vrot.slane %v1447_v38, 1  ;;  %v1452_v50 = vrot.slane %v1450_v39, 2  ;;  %v1761_v39 = vld [vmem:[%s4145_s27 + $0xc] sm:$0xf] }
  0x21   : > { %3524 = vmatpush3.bf16.msra.mxu0 %v3924_v25  ;;  %3381 = vmatprep.subr.bf16.mxu1 %v4037_v1  ;;  %v744_v25 = vshll.u32 %v4264_v10, 16  ;;  %v1233_v52 = vrot.slane %v4181_v21, 1  ;;  %v1236_v59 = vrot.slane %v4208_v40, 1  ;;  %v3953_v21 = vld [vmem:[%s5213_s1 + $0x178] sm:$0xff]   ;;  %v1240_v2 = vrot.slane %v4258_v7, 1 }
  0x22   : > { %3525 = vmatprep.subr.bf16.mxu0 %v4037_v1  ;;  %v1453_v60 = vor.u32 %v1452_v50, %v1449_v49  ;;  %v3117_v8 = vcombine.low %v1591_v57, %v4173_v18  ;;  %v1614_v18 = vrot.slane %v4169_v16, 2  ;;  %v4469_v49 = vld [vmem:[%s4145_s27 + $0x18] sm:$0xff]  }
  0x23   : > { %v746_v34 = vrot.slane %v744_v25, 1  ;;  %v2199_v57 = vrot.slane %v4469_v49, 3 }
  0x24   : > { %3382 = vmatpush3.bf16.msra.mxu1 %v3925_v35  ;;  %v3948_v35 = vld [vmem:[%s5213_s1 + $0x28] sm:$0xff]  }
  0x25   : > { %3526 = vmatpush3.bf16.msra.mxu0 %v3926_v36  ;;  %3403 = vmatprep.subr.bf16.mxu1 %v4037_v1  ;;  %v1444_v36 = vor.u32 %v1443_v29, %v1440_v28  ;;  %v747_v44 = vsel %vm711_vm1, %v742_v33, %v746_v34  ;;  %v1618_v28 = vrot.slane %v4226_v53, 2  ;;  %v3963_v29 = vld [vmem:[%s5213_s1 + $0x98] sm:$0xff]   ;;  %v3966_v33 = vld [vmem:[%s5213_s1 + $0x1a8] sm:$0xff]  }
  0x26   : > { %3547 = vmatprep.subr.bf16.mxu0 %v4037_v1 }
  0x27   : > { %3384 = vmatmul.mubr.bf16.vlgmr.msra.gmra.mrb[0].mxu1 %v723_v46  ;;  %v752_v46 = vshll.u32 %v4294_v31, 16  ;;  %v1445_v48 = vsel %vm1401_vm2, %v1435_v11, %v1444_v36  ;;  %v1454_v6 = vsel %vm1401_vm2, %v1444_v36, %v1453_v60  ;;  %v3037_v11 = vcombine.low %v1008_v9, %v4160_v13  ;;  %v3957_v13 = vld [vmem:[%s5213_s1 + $0x80] sm:$0xff]   ;;  %v4003_v36 = vld [vmem:[%s4145_s27 + $0x2c] ss:$0 sps:$4 sm:$0x11]  }
  0x28   : > { %3528 = vmatmul.mubr.bf16.vlgmr.msra.gmra.mrb[0].mxu0 %v1418_v51  ;;  %3404 = vmatpush3.bf16.msra.mxu1 %v3932_v47  ;;  %v4321_v47 = vsel %vm1029_vm3, %v1031_v41, %v1033_v42  ;;  %v3952_v51 = vld [vmem:[%s5213_s1 + $0x30] sm:$0xff]  }
  0x29   : > { %3548 = vmatpush3.bf16.msra.mxu0 %v3931_v45  ;;  %3387 = vmatprep.mubr.msk.bf16.mxu1 %vm4038_vm0, %v4037_v1  ;;  %v748_v45 = vshrl.u32 %v4264_v10, 16  ;;  %v754_v56 = vrot.slane %v752_v46, 1 }
  0x2a   : > { %3549 = vmatprep.subr.bf16.mxu0 %v4037_v1  ;;  %3531 = vmatprep.mubr.msk.bf16.mxu0 %vm4038_vm0, %v4037_v1 }
  0x2b   : > { %3405 = vmatprep.subr.bf16.mxu1 %v4037_v1 }
  0x2c   : > { %3406 = vmatpush3.bf16.msra.mxu1 %v3936_v55  ;;  %v750_v55 = vor.u32 %v748_v45, %v746_v34  ;;  %v3967_v34 = vld [vmem:[%s5213_s1 + $0xa8] sm:$0xff]  }
  0x2d   : > { %3550 = vmatpush3.bf16.msra.mxu0 %v3933_v54  ;;  %3407 = vmatprep.subr.bf16.mxu1 %v4037_v1  ;;  %v1234_v54 = vrot.slane %v4169_v16, 1  ;;  %v3959_v16 = vld [vmem:[%s5213_s1 + $0x88] sm:$0xff]  }
  0x2e   : > { %3551 = vmatprep.subr.bf16.mxu0 %v4037_v1  ;;  %v2174_v45 = vld [vmem:[%s4145_s27 + $0x8] sm:$0x8] }
  0x2f   : > { %3388 = vmatmul.mubr.bf16.gmra.mrb[4].mxu1 %v731_v63  ;;  %v4341_v61 = vsel %vm1029_vm3, %v1233_v52, %v1234_v54  ;;  %v3954_v63 = vld [vmem:[%s5213_s1 + $0x38] sm:$0xff]   ;;  %v4349_v0 = vsel %vm1029_vm3, %v1234_v54, %v1236_v59  ;;  %v3197_v46 = vcombine.low %v2174_v45, %v1761_v39  ;;  %v4483_v54 = vld [vmem:[%s4145_s27 + $0x20] sm:$0xff]  }
  0x30   : > { %3532 = vmatmul.mubr.bf16.gmra.mrb[4].mxu0 %v1427_v3  ;;  %3391 = vmatprep.mubr.msk.bf16.mxu1 %vm4038_vm0, %v4037_v1  ;;  %v3970_v52 = vld [vmem:[%s5213_s1 + $0x1b8] sm:$0xff]  }
  0x31   : > { %3552 = vmatpush3.bf16.msra.mxu0 %v3937_v62  ;;  %3408 = vmatpush3.bf16.msra.mxu1 %v3938_v4  ;;  %v1238_v62 = vrot.slane %v4226_v53, 1  ;;  %v755_v4 = vsel %vm711_vm1, %v750_v55, %v754_v56  ;;  %v3965_v53 = vld [vmem:[%s5213_s1 + $0xa0] sm:$0xff]   ;;  %v2196_v55 = vrot.slane %v3197_v46, 3  ;;  %v1760_v56 = vld [vmem:[%s4145_s27 + $0x8] sm:$0xc] }
  0x32   : > { %3535 = vmatprep.mubr.msk.bf16.mxu0 %vm4038_vm0, %v4037_v1  ;;  %3553 = vmatprep.subr.bf16.mxu0 %v4037_v1 }
  0x33   : > { %3409 = vmatprep.subr.bf16.mxu1 %v4037_v1  ;;  %v4354_v3 = vsel %vm1029_vm3, %v1236_v59, %v1238_v62  ;;  %v4360_v5 = vsel %vm1029_vm3, %v1238_v62, %v1240_v2  ;;  %v2201_v59 = vrot.slane %v4483_v54, 3  ;;  %v4500_v62 = vcombine.low %v1760_v56, %v1761_v39 }
  0x34   : > { %v2006_v56 = vshll.u32 %v4469_v49, 16 }
  0x35   : > { %3554 = vmatpush3.bf16.msra.mxu0 %v3941_v12  ;;  %3410 = vmatpush3.bf16.msra.mxu1 %v3942_v17  ;;  %v1030_v12 = vrot.slane %v3037_v11, 1  ;;  %v1613_v17 = vrot.slane %v3117_v8, 2  ;;  %v3976_v11 = vld [vmem:[%s5213_s1 + $0xc0] sm:$0xff]  }
  0x36   : > { %3555 = vmatprep.subr.bf16.mxu0 %v4037_v1  ;;  %3411 = vmatprep.subr.bf16.mxu1 %v4037_v1 }
  0x37   : > { %3392 = vmatmul.mubr.bf16.gmra.mrb[8].mxu1 %v739_v24  ;;  %v4374_v19 = vsel %vm1029_vm3, %v1030_v12, %v1031_v41  ;;  %v1615_v20 = vsel %vm1612_vm4, %v1613_v17, %v1614_v18  ;;  %v1616_v24 = vrot.slane %v4208_v40, 2  ;;  %v3961_v40 = vld [vmem:[%s5213_s1 + $0x90] sm:$0xff]   ;;  %v3975_v17 = vld [vmem:[%s5213_s1 + $0x1c0] sm:$0xff]  }
  0x38   : > { %3536 = vmatmul.mubr.bf16.gmra.mrb[8].mxu0 %v1436_v27  ;;  %3395 = vmatprep.mubr.msk.bf16.mxu1 %vm4038_vm0, %v4037_v1  ;;  %v3962_v27 = vld [vmem:[%s5213_s1 + $0x198] sm:$0xff]   ;;  %v4450_v41 = vld [vmem:[%s4145_s27 + $0x10] sm:$0xff]  }
  0x39   : > { %3556 = vmatpush3.bf16.msra.mxu0 %v3943_v22  ;;  %3539 = vmatprep.mubr.msk.bf16.mxu0 %vm4038_vm0, %v4037_v1  ;;  %v3956_v22 = vld [vmem:[%s5213_s1 + $0x180] sm:$0xff]   ;;  %v1617_v25 = vsel %vm1612_vm4, %v1614_v18, %v1616_v24  ;;  %v1817_v8 = vrot.slane %v4450_v41, 2  ;;  %v3979_v18 = vld [vmem:[%s5213_s1 + $0xc8] sm:$0xff]   ;;  %v1994_v39 = vshrl.u32 %v4450_v41, 16 }
  0x3a   : > { %3412 = vmatpush3.bf16.msra.mxu1 %v3946_v30  ;;  %3557 = vmatprep.subr.bf16.mxu0 %v4037_v1  ;;  %v3964_v30 = vld [vmem:[%s5213_s1 + $0x1a0] sm:$0xff]  }
  0x3b   : > { %3413 = vmatprep.subr.bf16.mxu1 %v4037_v1 }
  0x3d   : > { %3558 = vmatpush3.bf16.msra.mxu0 %v3947_v32  ;;  %v1620_v32 = vrot.slane %v4258_v7, 2  ;;  %v3971_v7 = vld [vmem:[%s5213_s1 + $0xb8] sm:$0xff]  }
  0x3e   : > { %3414 = vmatpush3.bf16.msra.mxu1 %v3948_v35  ;;  %3559 = vmatprep.subr.bf16.mxu0 %v4037_v1  ;;  %v3968_v35 = vld [vmem:[%s5213_s1 + $0x1b0] sm:$0xff]  }
  0x3f   : > { %3396 = vmatmul.mubr.bf16.gmra.mrb[12].mxu1 %v747_v44  ;;  %3415 = vmatprep.subr.bf16.mxu1 %v4037_v1  ;;  %v1621_v38 = vsel %vm1612_vm4, %v1618_v28, %v1620_v32  ;;  %v1242_v44 = vrot.slane %v4003_v36, 1  ;;  %v3993_v36 = vld [vmem:[%s5213_s1 + $0x1f8] sm:$0xff]  }
  0x40   : > { %3540 = vmatmul.mubr.bf16.gmra.mrb[12].mxu0 %v1445_v48  ;;  %3399 = vmatprep.mubr.msk.bf16.mxu1 %vm4038_vm0, %v4037_v1  ;;  %v2197_v48 = vrot.slane %v4450_v41, 3 }
  0x41   : > { %3543 = vmatprep.mubr.msk.bf16.mxu0 %vm4038_vm0, %v4037_v1  ;;  %3560 = vmatpush3.bf16.msra.mxu0 %v3949_v43  ;;  %v3969_v43 = vld [vmem:[%s5213_s1 + $0xb0] sm:$0xff]   ;;  %v4474_v50 = vsel %vm1029_vm3, %v1240_v2, %v1242_v44  ;;  %v4506_v2 = vsel %vm2195_vm5, %v2199_v57, %v2201_v59 }
  0x42   : > { %3416 = vmatpush3.bf16.msra.mxu1 %v3952_v51  ;;  %3561 = vmatprep.subr.bf16.mxu0 %v4037_v1  ;;  %v1622_v51 = vrot.slane %v4285_v26, 2  ;;  %v4493_v26 = vsel %vm2195_vm5, %v2196_v55, %v2197_v48  ;;  %v4497_v60 = vsel %vm2195_vm5, %v2197_v48, %v2199_v57  ;;  %v3996_v57 = vld [vmem:[%s5217_s5] sm:$0xff]  }
  0x43   : > { %3417 = vmatprep.subr.bf16.mxu1 %v4037_v1 }
  0x45   : > { %3562 = vmatpush3.bf16.msra.mxu0 %v3953_v21  ;;  %v1623_v21 = vsel %vm1612_vm4, %v1620_v32, %v1622_v51  ;;  %v3992_v32 = vld [vmem:[%s5213_s1 + $0xf0] sm:$0xff]   ;;  %v1996_v51 = vrot.slane %v1994_v39, 2 }
  0x46   : > { %3418 = vmatpush3.bf16.msra.mxu1 %v3954_v63  ;;  %3583 = vmatprep.subr.bf16.mxu0 %v4037_v1  ;;  %v4503_v63 = vld [vmem:[%s4145_s27 + $0x28] sm:$0xff]  }
  0x47   : > { %3400 = vmatmul.mubr.bf16.gmra.mrb[16].mxu1 %v755_v4  ;;  %3439 = vmatprep.subr.bf16.mxu1 %v4037_v1  ;;  %v2203_v4 = vrot.slane %v4503_v63, 3 }
  0x48   : > { %3544 = vmatmul.mubr.bf16.gmra.mrb[16].mxu0 %v1454_v6  ;;  %3419 = vmatprep.mubr.msk.bf16.mxu1 %vm4038_vm0, %v4037_v1  ;;  %v1816_v6 = vrot.slane %v4500_v62, 2 }
  0x49   : > { %3563 = vmatprep.mubr.msk.bf16.mxu0 %vm4038_vm0, %v4037_v1  ;;  %v4521_v9 = vsel %vm2195_vm5, %v2201_v59, %v2203_v4 }
  0x4a   : > { %v1818_v12 = vsel %vm1612_vm4, %v1816_v6, %v1817_v8  ;;  %v2008_v6 = vrot.slane %v2006_v56, 3 }
  0x4f   : > { %3420 = vmatmul.mubr.bf16.vlgmr.msra.gmra.mrb[0].mxu1 %v4163_v14  ;;  %v3960_v14 = vld [vmem:[%s5213_s1 + $0x190] sm:$0xff]  }
  0x50   : > { %3564 = vmatmul.mubr.bf16.vlgmr.msra.gmra.mrb[0].mxu0 %v1615_v20  ;;  %3440 = vmatpush3.bf16.msra.mxu1 %v3957_v13  ;;  %v3977_v13 = vld [vmem:[%s5213_s1 + $0x1c8] sm:$0xff]   ;;  %v1819_v20 = vrot.slane %v4469_v49, 2 }
  0x51   : > { %3584 = vmatpush3.bf16.msra.mxu0 %v3956_v22  ;;  %3423 = vmatprep.mubr.msk.bf16.mxu1 %vm4038_vm0, %v4037_v1  ;;  %v3980_v22 = vld [vmem:[%s5213_s1 + $0x1d0] sm:$0xff]  }
  0x52   : > { %3585 = vmatprep.subr.bf16.mxu0 %v4037_v1  ;;  %3567 = vmatprep.mubr.msk.bf16.mxu0 %vm4038_vm0, %v4037_v1 }
  0x53   : > { %3441 = vmatprep.subr.bf16.mxu1 %v4037_v1 }
  0x54   : > { %3442 = vmatpush3.bf16.msra.mxu1 %v3959_v16  ;;  %v3981_v16 = vld [vmem:[%s5213_s1 + $0xd0] sm:$0xff]  }
  0x55   : > { %3586 = vmatpush3.bf16.msra.mxu0 %v3958_v23  ;;  %3443 = vmatprep.subr.bf16.mxu1 %v4037_v1  ;;  %v1035_v23 = vrot.slane %v4236_v58, 1 }
  0x56   : > { %3587 = vmatprep.subr.bf16.mxu0 %v4037_v1 }
  0x57   : > { %3424 = vmatmul.mubr.bf16.gmra.mrb[4].mxu1 %v4166_v15  ;;  %v1619_v15 = vsel %vm1612_vm4, %v1616_v24, %v1618_v28  ;;  %v1821_v24 = vrot.slane %v4483_v54, 2  ;;  %v3988_v28 = vld [vmem:[%s5213_s1 + $0x1e8] sm:$0xff]  }
  0x58   : > { %3568 = vmatmul.mubr.bf16.gmra.mrb[4].mxu0 %v1617_v25  ;;  %3427 = vmatprep.mubr.msk.bf16.mxu1 %vm4038_vm0, %v4037_v1  ;;  %v3984_v25 = vld [vmem:[%s5213_s1 + $0xd8] sm:$0xff]  }
  0x59   : > { %3588 = vmatpush3.bf16.msra.mxu0 %v3960_v14  ;;  %3444 = vmatpush3.bf16.msra.mxu1 %v3961_v40  ;;  %v3983_v14 = vld [vmem:[%s5213_s1 + $0x1d8] sm:$0xff]   ;;  %v3985_v40 = vld [vmem:[%s5213_s1 + $0x1e0] sm:$0xff]  }
  0x5a   : > { %3571 = vmatprep.mubr.msk.bf16.mxu0 %vm4038_vm0, %v4037_v1  ;;  %3589 = vmatprep.subr.bf16.mxu0 %v4037_v1 }
  0x5b   : > { %3445 = vmatprep.subr.bf16.mxu1 %v4037_v1 }
  0x5d   : > { %3590 = vmatpush3.bf16.msra.mxu0 %v3962_v27  ;;  %3446 = vmatpush3.bf16.msra.mxu1 %v3963_v29  ;;  %v3987_v27 = vld [vmem:[%s5213_s1 + $0xe0] sm:$0xff]   ;;  %v3989_v29 = vld [vmem:[%s5213_s1 + $0xe8] sm:$0xff]  }
  0x5e   : > { %3591 = vmatprep.subr.bf16.mxu0 %v4037_v1  ;;  %3447 = vmatprep.subr.bf16.mxu1 %v4037_v1 }
  0x5f   : > { %3428 = vmatmul.mubr.bf16.gmra.mrb[8].mxu1 %v4205_v37  ;;  %v1037_v37 = vrot.slane %v4264_v10, 1 }
  0x60   : > { %3572 = vmatmul.mubr.bf16.gmra.mrb[8].mxu0 %v1619_v15  ;;  %3431 = vmatprep.mubr.msk.bf16.mxu1 %vm4038_vm0, %v4037_v1 }
  0x61   : > { %3592 = vmatpush3.bf16.msra.mxu0 %v3964_v30  ;;  %3575 = vmatprep.mubr.msk.bf16.mxu0 %vm4038_vm0, %v4037_v1  ;;  %v3990_v30 = vld [vmem:[%s5213_s1 + $0x1f0] sm:$0xff]  }
  0x62   : > { %3448 = vmatpush3.bf16.msra.mxu1 %v3965_v53  ;;  %3593 = vmatprep.subr.bf16.mxu0 %v4037_v1  ;;  %v3991_v53 = vld [vmem:[%s4145_s27 + $0x30] ss:$0 sps:$4 sm:$0x33]  }
  0x63   : > { %3449 = vmatprep.subr.bf16.mxu1 %v4037_v1 }
  0x65   : > { %3594 = vmatpush3.bf16.msra.mxu0 %v3966_v33  ;;  %v1039_v33 = vrot.slane %v4294_v31, 1  ;;  %v3994_v31 = vld [vmem:[%s5213_s1 + $0xf8] sm:$0xff]  }
  0x66   : > { %3450 = vmatpush3.bf16.msra.mxu1 %v3967_v34  ;;  %3595 = vmatprep.subr.bf16.mxu0 %v4037_v1  ;;  %v1986_v34 = vshrl.u32 %v4500_v62, 16 }
  0x67   : > { %3432 = vmatmul.mubr.bf16.gmra.mrb[12].mxu1 %v4236_v58  ;;  %3451 = vmatprep.subr.bf16.mxu1 %v4037_v1  ;;  %v1036_v58 = vsel %vm1029_vm3, %v1033_v42, %v1035_v23  ;;  %v1823_v42 = vrot.slane %v4503_v63, 2  ;;  %v1040_v44 = vsel %vm1029_vm3, %v1037_v37, %v1039_v33  ;;  %v4005_v33 = vld [vmem:[%s5213_s1 + $0x238] sm:$0xff]  }
  0x68   : > { %3576 = vmatmul.mubr.bf16.gmra.mrb[12].mxu0 %v1621_v38  ;;  %3435 = vmatprep.mubr.msk.bf16.mxu1 %vm4038_vm0, %v4037_v1  ;;  %v1989_v38 = vshll.u32 %v4500_v62, 16  ;;  %v1988_v45 = vrot.slane %v1986_v34, 2 }
  0x69   : > { %3579 = vmatprep.mubr.msk.bf16.mxu0 %vm4038_vm0, %v4037_v1  ;;  %3596 = vmatpush3.bf16.msra.mxu0 %v3968_v35  ;;  %v1824_v15 = vsel %vm1612_vm4, %v1821_v24, %v1823_v42  ;;  %v1825_v35 = vrot.slane %v3991_v53, 2 }
  0x6a   : > { %3452 = vmatpush3.bf16.msra.mxu1 %v3969_v43  ;;  %3597 = vmatprep.subr.bf16.mxu0 %v4037_v1  ;;  %v1997_v43 = vshll.u32 %v4450_v41, 16  ;;  %v1991_v48 = vrot.slane %v1989_v38, 3  ;;  %v4009_v38 = vld [vmem:[%s4461_s20 + $0x14] sm:$0xff]  }
  0x6b   : > { %3453 = vmatprep.subr.bf16.mxu1 %v4037_v1  ;;  %v1826_v46 = vsel %vm1612_vm4, %v1823_v42, %v1825_v35  ;;  %v4002_v42 = vld [vmem:[%s5213_s1 + $0x230] sm:$0xff]  }
  0x6c   : > { %v1992_v41 = vor.u32 %v1991_v48, %v1988_v45  ;;  %v2435_v45 = vshll.u32 %v4009_v38, 16 }
  0x6d   : > { %3598 = vmatpush3.bf16.msra.mxu0 %v3970_v52  ;;  %v1999_v52 = vrot.slane %v1997_v43, 3 }
  0x6e   : > { %3454 = vmatpush3.bf16.msra.mxu1 %v3971_v7  ;;  %3619 = vmatprep.subr.bf16.mxu0 %v4037_v1  ;;  %v2003_v7 = vshrl.u32 %v4469_v49, 16  ;;  %v3997_v49 = vld [vmem:[%s5213_s1 + $0x208] sm:$0xff]  }
  0x6f   : > { %3436 = vmatmul.mubr.bf16.gmra.mrb[16].mxu1 %v4264_v10  ;;  %3475 = vmatprep.subr.bf16.mxu1 %v4037_v1  ;;  %v1038_v10 = vsel %vm1029_vm3, %v1035_v23, %v1037_v37  ;;  %v2000_v55 = vor.u32 %v1999_v52, %v1996_v51  ;;  %v2437_v51 = vrot.slane %v2435_v45, 2  ;;  %v4010_v52 = vld [vmem:[%s4461_s20 + $0x1c] sm:$0xff]  }
  0x70   : > { %3580 = vmatmul.mubr.bf16.gmra.mrb[16].mxu0 %v1623_v21  ;;  %3455 = vmatprep.mubr.msk.bf16.mxu1 %vm4038_vm0, %v4037_v1  ;;  %v3995_v21 = vld [vmem:[%s5213_s1 + $0x200] sm:$0xff]   ;;  %v2005_v62 = vrot.slane %v2003_v7, 2 }
  0x71   : > { %3599 = vmatprep.mubr.msk.bf16.mxu0 %vm4038_vm0, %v4037_v1  ;;  %v2001_v59 = vsel %vm1984_vm6, %v1992_v41, %v2000_v55  ;;  %v2441_v41 = vshrl.u32 %v4010_v52, 16 }
  0x73   : > { %v2443_v56 = vrot.slane %v2441_v41, 1 }
  0x77   : > { %3456 = vmatmul.mubr.bf16.vlgmr.msra.gmra.mrb[0].mxu1 %v4374_v19  ;;  %v1820_v19 = vsel %vm1612_vm4, %v1817_v8, %v1819_v20  ;;  %v2009_v8 = vor.u32 %v2008_v6, %v2005_v62 }
  0x78   : > { %3600 = vmatmul.mubr.bf16.vlgmr.msra.gmra.mrb[0].mxu0 %v1818_v12  ;;  %3476 = vmatpush3.bf16.msra.mxu1 %v3976_v11  ;;  %v2012_v11 = vshrl.u32 %v4483_v54, 16  ;;  %v2015_v12 = vshll.u32 %v4483_v54, 16 }
  0x79   : > { %3620 = vmatpush3.bf16.msra.mxu0 %v3975_v17  ;;  %3459 = vmatprep.mubr.msk.bf16.mxu1 %vm4038_vm0, %v4037_v1  ;;  %v3998_v17 = vld [vmem:[%s5213_s1 + $0x210] sm:$0xff]  }
  0x7a   : > { %3621 = vmatprep.subr.bf16.mxu0 %v4037_v1  ;;  %3603 = vmatprep.mubr.msk.bf16.mxu0 %vm4038_vm0, %v4037_v1 }
  0x7b   : > { %3477 = vmatprep.subr.bf16.mxu1 %v4037_v1 }
  0x7c   : > { %3478 = vmatpush3.bf16.msra.mxu1 %v3979_v18  ;;  %v2014_v18 = vrot.slane %v2012_v11, 2  ;;  %v4012_v11 = vld [vmem:[%s4461_s20 + $0x2c] ss:$0 sps:$4 sm:$0x33]  }
  0x7d   : > { %3622 = vmatpush3.bf16.msra.mxu0 %v3977_v13  ;;  %3479 = vmatprep.subr.bf16.mxu1 %v4037_v1  ;;  %v2017_v13 = vrot.slane %v2015_v12, 3  ;;  %v2459_v12 = vshrl.u32 %v4012_v11, 16 }
  0x7e   : > { %3623 = vmatprep.subr.bf16.mxu0 %v4037_v1 }
  0x7f   : > { %3460 = vmatmul.mubr.bf16.gmra.mrb[4].mxu1 %v4321_v47  ;;  %v1822_v47 = vsel %vm1612_vm4, %v1819_v20, %v1821_v24  ;;  %v2018_v54 = vor.u32 %v2017_v13, %v2014_v18  ;;  %v3999_v20 = vld [vmem:[%s5213_s1 + $0x218] sm:$0xff]   ;;  %v2461_v18 = vrot.slane %v2459_v12, 1 }
  0x80   : > { %3604 = vmatmul.mubr.bf16.gmra.mrb[4].mxu0 %v1820_v19  ;;  %3463 = vmatprep.mubr.msk.bf16.mxu1 %vm4038_vm0, %v4037_v1  ;;  %v2021_v19 = vshrl.u32 %v4503_v63, 16 }
  0x81   : > { %3624 = vmatpush3.bf16.msra.mxu0 %v3980_v22  ;;  %3480 = vmatpush3.bf16.msra.mxu1 %v3981_v16  ;;  %v2024_v22 = vshll.u32 %v4503_v63, 16  ;;  %v4000_v16 = vld [vmem:[%s5213_s1 + $0x220] sm:$0xff]  }
  0x82   : > { %3607 = vmatprep.mubr.msk.bf16.mxu0 %vm4038_vm0, %v4037_v1  ;;  %3625 = vmatprep.subr.bf16.mxu0 %v4037_v1  ;;  %v2023_v23 = vrot.slane %v2021_v19, 2  ;;  %v628_v63 = vld [vmem:[%s4749_s10 + $0x4] sm:$0x3] }
  0x83   : > { %3481 = vmatprep.subr.bf16.mxu1 %v4037_v1  ;;  %v2026_v24 = vrot.slane %v2024_v22, 3  ;;  %v629_v22 = vsel %vm4756_vm12, 0, %v628_v63 }
  0x84   : > { %630 = vst [vmem:[%s4749_s10 + $0x4] sm:$0x3] %v629_v22 }
  0x85   : > { %3626 = vmatpush3.bf16.msra.mxu0 %v3983_v14  ;;  %3482 = vmatpush3.bf16.msra.mxu1 %v3984_v25  ;;  %v4671_v14 = vld [vmem:[%s4145_s27 + $0x30] ss:$0 sps:$4 sm:$0x77]   ;;  %v2027_v25 = vor.u32 %v2026_v24, %v2023_v23 }
  0x86   : > { %3627 = vmatprep.subr.bf16.mxu0 %v4037_v1  ;;  %3483 = vmatprep.subr.bf16.mxu1 %v4037_v1 }
  0x87   : > { %3464 = vmatmul.mubr.bf16.gmra.mrb[8].mxu1 %v1036_v58  ;;  %v4001_v58 = vld [vmem:[%s5213_s1 + $0x228] sm:$0xff]   ;;  %v2028_v37 = vsel %vm1984_vm6, %v2018_v54, %v2027_v25 }
  0x88   : > { %3608 = vmatmul.mubr.bf16.gmra.mrb[8].mxu0 %v1822_v47  ;;  %3467 = vmatprep.mubr.msk.bf16.mxu1 %vm4038_vm0, %v4037_v1  ;;  %v2030_v47 = vshrl.u32 %v4671_v14, 16 }
  0x89   : > { %3628 = vmatpush3.bf16.msra.mxu0 %v3985_v40  ;;  %3611 = vmatprep.mubr.msk.bf16.mxu0 %vm4038_vm0, %v4037_v1  ;;  %v2033_v40 = vshll.u32 %v4671_v14, 16 }
  0x8a   : > { %3484 = vmatpush3.bf16.msra.mxu1 %v3987_v27  ;;  %3629 = vmatprep.subr.bf16.mxu0 %v4037_v1  ;;  %v4008_v27 = vld [vmem:[%s4461_s20 + $0xc] sm:$0xff]  }
  0x8b   : > { %3485 = vmatprep.subr.bf16.mxu1 %v4037_v1  ;;  %v2426_v53 = vshll.u32 %v4008_v27, 16 }
  0x8d   : > { %3630 = vmatpush3.bf16.msra.mxu0 %v3988_v28  ;;  %v2032_v28 = vrot.slane %v2030_v47, 2 }
  0x8e   : > { %3486 = vmatpush3.bf16.msra.mxu1 %v3989_v29  ;;  %3631 = vmatprep.subr.bf16.mxu0 %v4037_v1  ;;  %v2035_v29 = vrot.slane %v2033_v40, 3 }
  0x8f   : > { %3468 = vmatmul.mubr.bf16.gmra.mrb[12].mxu1 %v1038_v10  ;;  %3487 = vmatprep.subr.bf16.mxu1 %v4037_v1 }
  0x90   : > { %3612 = vmatmul.mubr.bf16.gmra.mrb[12].mxu0 %v1824_v15  ;;  %3471 = vmatprep.mubr.msk.bf16.mxu1 %vm4038_vm0, %v4037_v1 }
  0x91   : > { %3615 = vmatprep.mubr.msk.bf16.mxu0 %vm4038_vm0, %v4037_v1  ;;  %3632 = vmatpush3.bf16.msra.mxu0 %v3990_v30  ;;  %v2423_v30 = vshrl.u32 %v4008_v27, 16 }
  0x92   : > { %3488 = vmatpush3.bf16.msra.mxu1 %v3992_v32  ;;  %3633 = vmatprep.subr.bf16.mxu0 %v4037_v1  ;;  %v2036_v32 = vor.u32 %v2035_v29, %v2032_v28 }
  0x93   : > { %3489 = vmatprep.subr.bf16.mxu1 %v4037_v1  ;;  %v2425_v35 = vrot.slane %v2423_v30, 1 }
  0x94   : > { %v2037_v39 = vsel %vm1984_vm6, %v2027_v25, %v2036_v32  ;;  %v443_v25 = vlaneseq }
  0x95   : > { %3634 = vmatpush3.bf16.msra.mxu0 %v3993_v36  ;;  %v2428_v36 = vrot.slane %v2426_v53, 2 }
  0x96   : > { %3490 = vmatpush3.bf16.msra.mxu1 %v3994_v31  ;;  %3655 = vmatprep.subr.bf16.mxu0 %v4037_v1  ;;  %v4775_v47 = vshrl.u32 %v443_v25, 7 }
  0x97   : > { %3472 = vmatmul.mubr.bf16.gmra.mrb[16].mxu1 %v1040_v44  ;;  %3691 = vmatprep.subr.bf16.mxu1 %v4037_v1  ;;  %v2429_v31 = vor.u32 %v2428_v36, %v2425_v35  ;;  %v2432_v44 = vshrl.u32 %v4009_v38, 16 }
  0x98   : > { %3616 = vmatmul.mubr.bf16.gmra.mrb[16].mxu0 %v1826_v46  ;;  %3491 = vmatprep.mubr.msk.bf16.mxu1 %vm4038_vm0, %v4037_v1  ;;  %v4783_v28 = vmul.u32.u64.low 3435973837, %v4775_v47  ;;  %v4784_v29 = vmul.u32.u64.high 3435973837, %v4775_v47, %v4783_v28  ;;  %v446_v53 = vadd.s32 16, %v4775_v47 }
  0x99   : > { %3635 = vmatprep.mubr.msk.bf16.mxu0 %vm4038_vm0, %v4037_v1  ;;  %v2434_v48 = vrot.slane %v2432_v44, 1  ;;  %v4804_v44 = vadd.s32 40, %v4775_v47 }
  0x9a   : > { %v4796_v36 = vmul.u32.u64.low 3435973837, %v446_v53  ;;  %v4797_v38 = vmul.u32.u64.high 3435973837, %v446_v53, %v4796_v36 }
  0x9b   : > { %v4880_v36 = vld [vmem:[%s5214_s2] ss:$0 sm:$0xff] }
  0x9f   : > { %3492 = vmatmul.mubr.bf16.vlgmr.msra.gmra.mrb[0].mxu1 %v4341_v61  ;;  %v2010_v61 = vsel %vm1984_vm6, %v2000_v55, %v2009_v8  ;;  %v2444_v55 = vshll.u32 %v4010_v52, 16  ;;  %v4814_v52 = vadd.s32 56, %v4775_v47 }
  0xa0   : > { %3636 = vmatmul.mubr.bf16.vlgmr.msra.gmra.mrb[0].mxu0 %v2001_v59  ;;  %3692 = vmatpush3.bf16.msra.mxu1 %v3996_v57  ;;  %v4011_v59 = vld [vmem:[%s4461_s20 + $0x24] sm:$0xff]  }
  0xa1   : > { %3656 = vmatpush3.bf16.msra.mxu0 %v3995_v21  ;;  %3495 = vmatprep.mubr.msk.bf16.mxu1 %vm4038_vm0, %v4037_v1  ;;  %v2446_v57 = vrot.slane %v2444_v55, 2  ;;  %v2450_v21 = vshrl.u32 %v4011_v59, 16  ;;  %v2453_v62 = vshll.u32 %v4011_v59, 16 }
  0xa2   : > { %3657 = vmatprep.subr.bf16.mxu0 %v4037_v1  ;;  %3639 = vmatprep.mubr.msk.bf16.mxu0 %vm4038_vm0, %v4037_v1 }
  0xa5   : > { %3658 = vmatpush3.bf16.msra.mxu0 %v3997_v49  ;;  %v2452_v49 = vrot.slane %v2450_v21, 1 }
  0xa6   : > { %3659 = vmatprep.subr.bf16.mxu0 %v4037_v1 }
  0xa7   : > { %3496 = vmatmul.mubr.bf16.gmra.mrb[4].mxu1 %v4349_v0  ;;  %v2019_v0 = vsel %vm1984_vm6, %v2009_v8, %v2018_v54  ;;  %v2455_v8 = vrot.slane %v2453_v62, 2  ;;  %v2205_v54 = vrot.slane %v4671_v14, 3 }
  0xa8   : > { %3640 = vmatmul.mubr.bf16.gmra.mrb[4].mxu0 %v2010_v61  ;;  %3499 = vmatprep.mubr.msk.bf16.mxu1 %vm4038_vm0, %v4037_v1  ;;  %v2462_v61 = vshll.u32 %v4012_v11, 16 }
  0xa9   : > { %3660 = vmatpush3.bf16.msra.mxu0 %v3998_v17  ;;  %3643 = vmatprep.mubr.msk.bf16.mxu0 %vm4038_vm0, %v4037_v1  ;;  %v2206_v19 = vsel %vm2195_vm5, %v2203_v4, %v2205_v54 }
  0xaa   : > { %3661 = vmatprep.subr.bf16.mxu0 %v4037_v1  ;;  %v2464_v13 = vrot.slane %v2462_v61, 2 }
  0xad   : > { %3662 = vmatpush3.bf16.msra.mxu0 %v3999_v20 }
  0xae   : > { %3663 = vmatprep.subr.bf16.mxu0 %v4037_v1 }
  0xaf   : > { %3500 = vmatmul.mubr.bf16.gmra.mrb[8].mxu1 %v4354_v3  ;;  %v4007_v3 = vld [vmem:[%s4461_s20 + $0x4] sm:$0xfe]  }
  0xb0   : > { %3644 = vmatmul.mubr.bf16.gmra.mrb[8].mxu0 %v2019_v0  ;;  %3503 = vmatprep.mubr.msk.bf16.mxu1 %vm4038_vm0, %v4037_v1  ;;  %v2415_v10 = vshrl.u32 %v4007_v3, 16  ;;  %v2418_v15 = vshll.u32 %v4007_v3, 16 }
  0xb1   : > { %3664 = vmatpush3.bf16.msra.mxu0 %v4000_v16  ;;  %3647 = vmatprep.mubr.msk.bf16.mxu0 %vm4038_vm0, %v4037_v1 }
  0xb2   : > { %3665 = vmatprep.subr.bf16.mxu0 %v4037_v1  ;;  %v2420_v34 = vrot.slane %v2418_v15, 2 }
  0xb5   : > { %3666 = vmatpush3.bf16.msra.mxu0 %v4001_v58 }
  0xb6   : > { %3667 = vmatprep.subr.bf16.mxu0 %v4037_v1 }
  0xb7   : > { %3504 = vmatmul.mubr.bf16.gmra.mrb[12].mxu1 %v4360_v5  ;;  %v2417_v5 = vrot.slane %v2415_v10, 1 }
  0xb8   : > { %3648 = vmatmul.mubr.bf16.gmra.mrb[12].mxu0 %v2028_v37  ;;  %3507 = vmatprep.mubr.msk.bf16.mxu1 %vm4038_vm0, %v4037_v1  ;;  %v445_v37 = vadd.s32 8, %v4775_v47 }
  0xb9   : > { %3651 = vmatprep.mubr.msk.bf16.mxu0 %vm4038_vm0, %v4037_v1  ;;  %3668 = vmatpush3.bf16.msra.mxu0 %v4002_v42  ;;  %v2421_v43 = vor.u32 %v2420_v34, %v2417_v5  ;;  %v448_v34 = vadd.s32 32, %v4775_v47 }
  0xba   : > { %3669 = vmatprep.subr.bf16.mxu0 %v4037_v1  ;;  %v4786_v10 = vmul.u32.u64.low 3435973837, %v445_v37  ;;  %v4787_v15 = vmul.u32.u64.high 3435973837, %v445_v37, %v4786_v10 }
  0xbb   : > { %v2430_v46 = vsel %vm1401_vm2, %v2421_v43, %v2429_v31 }
  0xbc   : > { %v471_v45 = vshrl.u32 %v4787_v15, 3 }
  0xbd   : > { %3670 = vmatpush3.bf16.msra.mxu0 %v4005_v33  ;;  %v447_v33 = vadd.s32 24, %v4775_v47 }
  0xbe   : > { %v472_v59 = vmul.u32 10, %v471_v45 }
  0xbf   : > { %3508 = vmatmul.mubr.bf16.gmra.mrb[16].mxu1 %v4474_v50  ;;  %v2438_v50 = vor.u32 %v2437_v51, %v2434_v48  ;;  %v4811_v51 = vadd.s32 48, %v4775_v47 }
  0xc0   : > { %3652 = vmatmul.mubr.bf16.gmra.mrb[16].mxu0 %v2037_v39  ;;  %3693 = vmatprep.mubr.msk.bf16.mxu1 %vm4038_vm0, %v4037_v1  ;;  %v460_v39 = vshrl.u32 %v4784_v29, 3  ;;  %v4837_v12 = vsub.s32 %v445_v37, %v472_v59 }
  0xc1   : > { %3671 = vmatprep.mubr.msk.bf16.mxu0 %vm4038_vm0, %v4037_v1  ;;  %v2439_v7 = vsel %vm1401_vm2, %v2429_v31, %v2438_v50  ;;  %v4800_v43 = vmul.u32.u64.low 3435973837, %v447_v33  ;;  %v4801_v31 = vmul.u32.u64.high 3435973837, %v447_v33, %v4800_v43 }
  0xc2   : > { %v461_v55 = vmul.u32 10, %v460_v39  ;;  %vm575_vm1 = vcmp.lt.s32.totalorder %v4837_v12, 0 }
  0xc4   : > { %v4834_v11 = vsub.s32 %v4775_v47, %v461_v55 }
  0xc6   : > { %vm564_vm14 = vcmp.ne.s32.totalorder %v4834_v11, 0  ;;  %vm574_vm15 = vcmp.lt.s32.totalorder %v4834_v11, 0 }
  0xc7   : > { %3694 = vmatmul.mubr.msk.bf16.vlgmr.msra.gmra.mrb[20].mxu1 %vm2473_vm7, %v2430_v46  ;;  %v4807_v46 = vmul.u32.u64.low 3435973837, %v448_v34  ;;  %v4808_v48 = vmul.u32.u64.high 3435973837, %v448_v34, %v4807_v46 }
  0xc8   : > { %3672 = vmatmul.mubr.bf16.vlgmr.msra.gmra.mrb[0].mxu0 %v4493_v26  ;;  %3697 = vmatprep.mubr.msk.bf16.mxu1 %vm4038_vm0, %v4037_v1  ;;  %v2447_v26 = vor.u32 %v2446_v57, %v2443_v56 }
  0xc9   : > { %3675 = vmatprep.mubr.msk.bf16.mxu0 %vm4038_vm0, %v4037_v1  ;;  %v504_v61 = vshrl.u32 %v4808_v48, 3  ;;  %v4904_v48 = vld [vmem:[%s5215_s3] ss:$0 sm:$0xff] }
  0xca   : > { %v2448_v6 = vsel %vm1401_vm2, %v2438_v50, %v2447_v26 }
  0xcf   : > { %3698 = vmatmul.mubr.msk.bf16.gmra.mrb[24].mxu1 %vm2473_vm7, %v2439_v7  ;;  %v4819_v7 = vmul.u32.u64.low 3435973837, %v4804_v44  ;;  %v4820_v56 = vmul.u32.u64.high 3435973837, %v4804_v44, %v4819_v7 }
  0xd0   : > { %3676 = vmatmul.mubr.bf16.gmra.mrb[4].mxu0 %v4497_v60  ;;  %3701 = vmatprep.mubr.msk.bf16.mxu1 %vm4038_vm0, %v4037_v1  ;;  %v2456_v60 = vor.u32 %v2455_v8, %v2452_v49  ;;  %v482_v8 = vshrl.u32 %v4797_v38, 3 }
  0xd1   : > { %3679 = vmatprep.mubr.msk.bf16.mxu0 %vm4038_vm0, %v4037_v1 }
  0xd2   : > { %v2457_v17 = vsel %vm1401_vm2, %v2447_v26, %v2456_v60  ;;  %v4825_v26 = vmul.u32.u64.low 3435973837, %v4811_v51  ;;  %v4826_v21 = vmul.u32.u64.high 3435973837, %v4811_v51, %v4825_v26 }
  0xd4   : > { %v526_v63 = vshrl.u32 %v4826_v21, 3 }
  0xd6   : > { %v527_v15 = vmul.u32 10, %v526_v63 }
  0xd7   : > { %3702 = vmatmul.mubr.msk.bf16.gmra.mrb[28].mxu1 %vm2473_vm7, %v2448_v6  ;;  %v4829_v6 = vmul.u32.u64.low 3435973837, %v4814_v52  ;;  %v4830_v49 = vmul.u32.u64.high 3435973837, %v4814_v52, %v4829_v6 }
  0xd8   : > { %3680 = vmatmul.mubr.bf16.gmra.mrb[8].mxu0 %v4506_v2  ;;  %3705 = vmatprep.mubr.msk.bf16.mxu1 %vm4038_vm0, %v4037_v1  ;;  %v2465_v2 = vor.u32 %v2464_v13, %v2461_v18  ;;  %v483_v13 = vmul.u32 10, %v482_v8  ;;  %v4909_v55 = vsub.s32 %v4811_v51, %v527_v15 }
  0xd9   : > { %3683 = vmatprep.mubr.msk.bf16.mxu0 %vm4038_vm0, %v4037_v1  ;;  %v537_v22 = vshrl.u32 %v4830_v49, 3 }
  0xda   : > { %v2466_v20 = vsel %vm1401_vm2, %v2456_v60, %v2465_v2  ;;  %v493_v60 = vshrl.u32 %v4801_v31, 3  ;;  %vm4858_vm2 = vmand %vm574_vm15, %vm564_vm14  ;;  %v4864_v37 = vsub.s32 %v446_v53, %v483_v13  ;;  %v4885_v53 = vld [vmem:[%s5218_s6] ss:$0 sm:$0xff] }
  0xdc   : > { %v494_v54 = vmul.u32 10, %v493_v60  ;;  %vm566_vm4 = vcmp.ne.s32.totalorder %v4864_v37, 0  ;;  %vm576_vm5 = vcmp.lt.s32.totalorder %v4864_v37, 0  ;;  %v596_v43 = vadd.s32 10, %v4864_v37 }
  0xdd   : > { %vm4931_vm14 = vmand %vm576_vm5, %vm566_vm4 }
  0xde   : > { %v4870_v28 = vsub.s32 %v447_v33, %v494_v54  ;;  %v606_v63 = vsel %vm4931_vm14, %v596_v43, %v4864_v37  ;;  %v4993_v37 = vadd.s32 10, %v4909_v55  ;;  %vm2674_vm14 = vsmask.f32 5392 }
  0xdf   : > { %3706 = vmatmul.mubr.msk.bf16.gmra.mrb[32].mxu1 %vm2473_vm7, %v2457_v17  ;;  %v4841_v17 = vadd.s32 64, %v4775_v47 }
  0xe0   : > { %3684 = vmatmul.mubr.bf16.gmra.mrb[12].mxu0 %v4521_v9  ;;  %3709 = vmatprep.mubr.msk.bf16.mxu1 %vm4038_vm0, %v4037_v1  ;;  %v634_v9 = vld [vmem:[%s4749_s10 + $0x2c] sm:$0xe]  ;;  %vm567_vm6 = vcmp.ne.s32.totalorder %v4870_v28, 0  ;;  %v597_v8 = vadd.s32 10, %v4870_v28 }
  0xe1   : > { %3687 = vmatprep.mubr.msk.bf16.mxu0 %vm4038_vm0, %v4037_v1  ;;  %v4039_v1 = vmov 0   ;;  %v635_v16 = vsel %vm4763_vm13, 0, %v634_v9  ;;  %vm565_vm0 = vcmp.ne.s32.totalorder %v4837_v12, 0 }
  0xe2   : > { %624 = vst [vmem:[%s4749_s10] sm:$0xf] %v4039_v1  ;;  %637 = vst [vmem:[%s4749_s10 + $0x30] sm:$0xf] %v4039_v1 }
  0xe3   : > { %638 = vst [vmem:[%s4749_s10 + $0x34] sm:$0x7] %v4039_v1  ;;  %636 = vst [vmem:[%s4749_s10 + $0x2c] sm:$0xe] %v635_v16  ;;  %v505_v1 = vmul.u32 10, %v504_v61 }
  0xe4   : > { %vm4866_vm3 = vmand %vm575_vm1, %vm565_vm0 }
  0xe5   : > { %v4872_v10 = vsub.s32 %v448_v34, %v505_v1 }
  0xe7   : > { %3710 = vmatmul.mubr.msk.bf16.gmra.mrb[36].mxu1 %vm2473_vm7, %v2466_v20  ;;  %v515_v20 = vshrl.u32 %v4820_v56, 3  ;;  %vm577_vm7 = vcmp.lt.s32.totalorder %v4870_v28, 0  ;;  %vm568_vm8 = vcmp.ne.s32.totalorder %v4872_v10, 0  ;;  %vm578_vm9 = vcmp.lt.s32.totalorder %v4872_v10, 0 }
  0xe8   : > { %3688 = vmatmul.mubr.bf16.gmra.mrb[16].mxu0 %v2206_v19  ;;  %vm4944_vm1 = vmand %vm577_vm7, %vm567_vm6  ;;  %v598_v25 = vadd.s32 10, %v4872_v10 }
  0xe9   : > { %v516_v29 = vmul.u32 10, %v515_v20  ;;  %vm4961_vm5 = vmand %vm578_vm9, %vm568_vm8 }
  0xeb   : > { %v4898_v31 = vsub.s32 %v4804_v44, %v516_v29 }
  0xed   : > { %vm569_vm15 = vcmp.ne.s32.totalorder %v4898_v31, 0  ;;  %vm579_vm0 = vcmp.lt.s32.totalorder %v4898_v31, 0 }
  0xee   : > { %vm4976_vm8 = vmand %vm579_vm0, %vm569_vm15  ;;  %vm5011_vm0 = vcmp.lt.s32.totalorder %v606_v63, 8 }
 0x172   : > { %v4771_v23 = vpop.f32.mrb[0].mxu1 }
 0x173   : > { %v3493_v24 = vpop.f32.mrb[1].mxu1 }
 0x174   : > { %v4773_v14 = vpop.f32.mrb[2].mxu1  ;;  %v4855_v16 = vmul.u32.u64.low 3435973837, %v4841_v17  ;;  %v4856_v24 = vmul.u32.u64.high 3435973837, %v4841_v17, %v4855_v16 }
 0x175   : > { %v3494_v58 = vpop.f32.mrb[3].mxu1 }
 0x176   : > { %v594_v58 = vadd.s32 10, %v4834_v11 }
 0x178   : > { %v604_v33 = vsel %vm4858_vm2, %v594_v58, %v4834_v11  ;;  %vm570_vm2 = vcmp.ne.s32.totalorder %v4909_v55, 0  ;;  %v4982_v58 = vadd.s32 10, %v4898_v31 }
 0x179   : > { %vm4923_vm11 = vcmp.lt.s32.totalorder %v604_v33, 8 }
 0x17a   : > { %v4777_v40 = vpop.f32.mrb[4].mxu1 }
 0x17b   : > { %v3497_v3 = vpop.f32.mrb[5].mxu1 }
 0x17c   : > { %v4779_v27 = vpop.f32.mrb[6].mxu1  ;;  %v595_v3 = vadd.s32 10, %v4837_v12 }
 0x17d   : > { %v3498_v42 = vpop.f32.mrb[7].mxu1 }
 0x182   : > { %v4789_v30 = vpop.f32.mrb[8].mxu1 }
 0x183   : > { %v3501_v32 = vpop.f32.mrb[9].mxu1 }
 0x184   : > { %v4793_v5 = vpop.f32.mrb[10].mxu1  ;;  %v538_v32 = vmul.u32 10, %v537_v22 }
 0x185   : > { %v3502_v35 = vpop.f32.mrb[11].mxu1 }
 0x186   : > { %v4875_v35 = vadd.s32 72, %v4775_v47  ;;  %v605_v47 = vsel %vm4866_vm3, %v595_v3, %v4837_v12  ;;  %v4912_v44 = vsub.s32 %v4814_v52, %v538_v32  ;;  %vm580_vm3 = vcmp.lt.s32.totalorder %v4909_v55, 0  ;;  %v4953_v12 = vld [vmem:[%s5219_s7] ss:$0 sm:$0xff] }
 0x187   : > { %vm4955_vm4 = vcmp.lt.s32.totalorder %v605_v47, 8  ;;  %vm4988_vm9 = vmand %vm580_vm3, %vm570_vm2 }
 0x188   : > { %v4916_v59 = vmul.u32.u64.low 3435973837, %v4875_v35  ;;  %v4917_v26 = vmul.u32.u64.high 3435973837, %v4875_v35, %v4916_v59  ;;  %vm571_vm6 = vcmp.ne.s32.totalorder %v4912_v44, 0  ;;  %vm581_vm7 = vcmp.lt.s32.totalorder %v4912_v44, 0 }
 0x189   : > { %v4996_v42 = vadd.s32 10, %v4912_v44  ;;  %vm5007_vm15 = vmand %vm581_vm7, %vm571_vm6 }
 0x18a   : > { %v4816_v50 = vpop.f32.mrb[12].mxu1 }
 0x18b   : > { %v3505_v41 = vpop.f32.mrb[13].mxu1 }
 0x18c   : > { %v4822_v57 = vpop.f32.mrb[14].mxu1 }
 0x18d   : > { %v3506_v62 = vpop.f32.mrb[15].mxu1 }
 0x192   : > { %v4843_v18 = vpop.f32.mrb[16].mxu1 }
 0x193   : > { %v3509_v2 = vpop.f32.mrb[17].mxu1 }
 0x194   : > { %v4848_v19 = vpop.f32.mrb[18].mxu1 }
 0x195   : > { %v3510_v9 = vpop.f32.mrb[19].mxu1 }
 0x19a   : > { %v2523_v34 = vpop.f32.mrb[20].mxu1 }
 0x19b   : > { %v2294_v38 = vpop.f32.mrb[0].mxu0  ;;  %v3695_v39 = vpop.f32.mrb[21].mxu1  ;;  %v2568_v6 = vmul.f32 %v4885_v53, %v2523_v34  ;;  %v607_v34 = vsel %vm4944_vm1, %v597_v8, %v4870_v28  ;;  %v559_v28 = vshrl.u32 %v4917_v26, 3  ;;  %v610_v26 = vsel %vm4988_vm9, %v4993_v37, %v4909_v55 }
 0x19c   : > { %v3713_v45 = vadd.f32 %v2294_v38, %v4771_v23  ;;  %v3673_v46 = vpop.f32.mrb[1].mxu0  ;;  %v2526_v41 = vpop.f32.mrb[22].mxu1  ;;  %v548_v23 = vshrl.u32 %v4856_v24, 3  ;;  %vm5023_vm1 = vcmp.lt.s32.totalorder %v607_v34, 8  ;;  %vm5120_vm7 = vcmp.lt.s32.totalorder %v610_v26, 8 }
 0x19d   : > { %v2297_v7 = vpop.f32.mrb[2].mxu0  ;;  %v3696_v56 = vpop.f32.mrb[23].mxu1  ;;  %v2569_v1 = vmul.f32 %v4885_v53, %v2526_v41 }
 0x19e   : > { %v2349_v21 = vmul.f32 %v3713_v45, %v4880_v36  ;;  %v3714_v62 = vadd.f32 %v2297_v7, %v4773_v14  ;;  %v3674_v49 = vpop.f32.mrb[3].mxu0  ;;  %v549_v2 = vmul.u32 10, %v548_v23 }
 0x1a0   : > { %v2350_v14 = vmul.f32 %v3714_v62, %v4880_v36  ;;  %v2365_v11 = vadd.f32 %v4904_v48, %v2349_v21  ;;  %v5017_v46 = vsub.s32 %v4841_v17, %v549_v2  ;;  %v608_v62 = vsel %vm4961_vm5, %v598_v25, %v4872_v10 }
 0x1a1   : > { %v609_v17 = vsel %vm4976_vm8, %v4982_v58, %v4898_v31  ;;  %v560_v31 = vmul.u32 10, %v559_v28 }
 0x1a2   : > { %v2578_v54 = vadd.f32 %v2568_v6, %v2365_v11  ;;  %v2366_v20 = vadd.f32 %v4904_v48, %v2350_v14  ;;  %v2531_v9 = vpop.f32.mrb[24].mxu1  ;;  %vm572_vm2 = vcmp.ne.s32.totalorder %v5017_v46, 0  ;;  %vm582_vm3 = vcmp.lt.s32.totalorder %v5017_v46, 0 }
 0x1a3   : > { %v2302_v16 = vpop.f32.mrb[4].mxu0  ;;  %v3699_v24 = vpop.f32.mrb[25].mxu1  ;;  %vm5072_vm5 = vcmp.lt.s32.totalorder %v609_v17, 8 }
 0x1a4   : > { %v2594_v29 = vadd.f32 %v4953_v12, %v2578_v54  ;;  %v2579_v15 = vadd.f32 %v2569_v1, %v2366_v20  ;;  %v3715_v32 = vadd.f32 %v2302_v16, %v4777_v40  ;;  %v3677_v33 = vpop.f32.mrb[5].mxu0  ;;  %v2534_v47 = vpop.f32.mrb[26].mxu1  ;;  %v2570_v40 = vmul.f32 %v4885_v53, %v2531_v9 }
 0x1a5   : > { %v2305_v39 = vpop.f32.mrb[6].mxu0  ;;  %v3700_v45 = vpop.f32.mrb[27].mxu1  ;;  %v2571_v51 = vmul.f32 %v4885_v53, %v2534_v47  ;;  %v5053_v9 = vadd.s32 10, %v5017_v46 }
 0x1a6   : > { %v2604_v41 = vmax.f32 %v2594_v29, 0.0  ;;  %v2595_v7 = vadd.f32 %v4953_v12, %v2579_v15  ;;  %v2351_v56 = vmul.f32 %v3715_v32, %v4880_v36  ;;  %v3716_v23 = vadd.f32 %v2305_v39, %v4779_v27  ;;  %v3678_v59 = vpop.f32.mrb[7].mxu0 }
 0x1a7   : > { %v611_v27 = vsel %vm5007_vm15, %v4996_v42, %v4912_v44 }
 0x1a8   : > { %v2634_v6 = vsel %vm4923_vm11, %v2604_v41, 0.0  ;;  %v2605_v49 = vmax.f32 %v2595_v7, 0.0  ;;  %v2352_v10 = vmul.f32 %v3716_v23, %v4880_v36  ;;  %v2367_v52 = vadd.f32 %v4904_v48, %v2351_v56 }
 0x1a9   : > { %v3234_v8 = vpack.c.bf16 %v2634_v6, %v2634_v6  ;;  %vm5058_vm11 = vcmp.lt.s32.totalorder %v608_v62, 8  ;;  %vm5135_vm8 = vcmp.lt.s32.totalorder %v611_v27, 8 }
 0x1aa   : > { %v2635_v14 = vsel %vm4955_vm4, %v2605_v49, 0.0  ;;  %v2580_v11 = vadd.f32 %v2570_v40, %v2367_v52  ;;  %v2368_v60 = vadd.f32 %v4904_v48, %v2352_v10  ;;  %v2539_v13 = vpop.f32.mrb[28].mxu1  ;;  %v2786_v40 = vld [vmem:[%s4749_s10 + $0x4] sm:$0xe]  ;;  %vm5068_vm4 = vmor %vm626_vm10, %vm2674_vm14  ;;  %v5077_v49 = vsub.s32 %v4875_v35, %v560_v31 }
 0x1ab   : > { %v2677_v2 = vshrl.u32 %v3234_v8, 16  ;;  %v2680_v54 = vshll.u32 %v3234_v8, 16  ;;  %v3235_v20 = vpack.c.bf16 %v2635_v14, %v2635_v14  ;;  %v2310_v1 = vpop.f32.mrb[8].mxu0  ;;  %v3703_v63 = vpop.f32.mrb[29].mxu1  ;;  %v2572_v25 = vmul.f32 %v4885_v53, %v2539_v13  ;;  %vm5087_vm10 = vmand %vm582_vm3, %vm572_vm2 }
 0x1ac   : > { %v2596_v22 = vadd.f32 %v4953_v12, %v2580_v11  ;;  %v2581_v16 = vadd.f32 %v2571_v51, %v2368_v60  ;;  %v3717_v61 = vadd.f32 %v2310_v1, %v4789_v30  ;;  %v3681_v24 = vpop.f32.mrb[9].mxu0  ;;  %v2542_v58 = vpop.f32.mrb[30].mxu1  ;;  %vm583_vm6 = vcmp.lt.s32.totalorder %v5077_v49, 0 }
 0x1ad   : > { %v2679_v29 = vrot.slane %v2677_v2, 6  ;;  %v2682_v15 = vrot.slane %v2680_v54, 7  ;;  %v2686_v32 = vshrl.u32 %v3235_v20, 16  ;;  %v2689_v33 = vshll.u32 %v3235_v20, 16  ;;  %v2313_v34 = vpop.f32.mrb[10].mxu0  ;;  %v3704_v39 = vpop.f32.mrb[31].mxu1 }
 0x1ae   : > { %v2606_v45 = vmax.f32 %v2596_v22, 0.0  ;;  %v2597_v28 = vadd.f32 %v4953_v12, %v2581_v16  ;;  %v2353_v30 = vmul.f32 %v3717_v61, %v4880_v36  ;;  %v3718_v41 = vadd.f32 %v2313_v34, %v4793_v5  ;;  %v3682_v7 = vpop.f32.mrb[11].mxu0 }
 0x1af   : > { %v2683_v23 = vor.u32 %v2682_v15, %v2679_v29  ;;  %v2688_v59 = vrot.slane %v2686_v32, 6  ;;  %v2691_v62 = vrot.slane %v2689_v33, 7  ;;  %v2573_v13 = vmul.f32 %v4885_v53, %v2542_v58 }
 0x1b0   : > { %v2636_v5 = vsel %vm5011_vm0, %v2606_v45, 0.0  ;;  %v2607_v10 = vmax.f32 %v2597_v28, 0.0  ;;  %v2354_v52 = vmul.f32 %v3718_v41, %v4880_v36  ;;  %v2369_v8 = vadd.f32 %v4904_v48, %v2353_v30 }
 0x1b1   : > { %v2684_v14 = vrot.slane %v2683_v23, 4  ;;  %v2787_v35 = vsel %vm4763_vm13, %v2683_v23, %v2786_v40  ;;  %v2692_v43 = vor.u32 %v2691_v62, %v2688_v59  ;;  %v3236_v31 = vpack.c.bf16 %v2636_v5, %v2636_v5 }
 0x1b2   : > { %2788 = vst [vmem:[%s4749_s10 + $0x4] sm:$0xe] %v2787_v35  ;;  %v2637_v11 = vsel %vm5023_vm1, %v2607_v10, 0.0  ;;  %v2582_v60 = vadd.f32 %v2572_v25, %v2369_v8  ;;  %v2370_v51 = vadd.f32 %v4904_v48, %v2354_v52  ;;  %v2547_v2 = vpop.f32.mrb[32].mxu1  ;;  %v612_v22 = vsel %vm5087_vm10, %v5053_v9, %v5017_v46 }
 0x1b3   : > { %v2693_v54 = vsel %vm5068_vm4, %v2684_v14, %v2692_v43  ;;  %v2696_v20 = vshrl.u32 %v3236_v31, 16  ;;  %v2699_v1 = vshll.u32 %v3236_v31, 16  ;;  %v2318_v0 = vpop.f32.mrb[12].mxu0  ;;  %v3707_v63 = vpop.f32.mrb[33].mxu1  ;;  %v3237_v21 = vpack.c.bf16 %v2637_v11, %v2637_v11 }
 0x1b4   : > { %2789 = vst [vmem:[%s4749_s10 + $0x8] sm:$0xf] %v2693_v54  ;;  %v2598_v16 = vadd.f32 %v4953_v12, %v2582_v60  ;;  %v2583_v61 = vadd.f32 %v2573_v13, %v2370_v51  ;;  %v3719_v24 = vadd.f32 %v2318_v0, %v4816_v50  ;;  %v3685_v25 = vpop.f32.mrb[13].mxu0  ;;  %v2550_v58 = vpop.f32.mrb[34].mxu1  ;;  %v2694_v29 = vrot.slane %v2692_v43, 4 }
 0x1b5   : > { %v2698_v15 = vrot.slane %v2696_v20, 6  ;;  %v2701_v32 = vrot.slane %v2699_v1, 7  ;;  %v2321_v33 = vpop.f32.mrb[14].mxu0  ;;  %v3708_v34 = vpop.f32.mrb[35].mxu1  ;;  %vm573_vm13 = vcmp.ne.s32.totalorder %v5077_v49, 0  ;;  %v5110_v39 = vadd.s32 10, %v5077_v49 }
 0x1b6   : > { %v2706_v40 = vshrl.u32 %v3237_v21, 16  ;;  %v2709_v45 = vshll.u32 %v3237_v21, 16  ;;  %v2608_v28 = vmax.f32 %v2598_v16, 0.0  ;;  %v2599_v30 = vadd.f32 %v4953_v12, %v2583_v61  ;;  %v3686_v50 = vpop.f32.mrb[15].mxu0  ;;  %vm5160_vm9 = vmand %vm583_vm6, %vm573_vm13 }
 0x1b7   : > { %v2702_v41 = vor.u32 %v2701_v32, %v2698_v15  ;;  %v2355_v7 = vmul.f32 %v3719_v24, %v4880_v36  ;;  %v3720_v23 = vadd.f32 %v2321_v33, %v4822_v57  ;;  %v2574_v62 = vmul.f32 %v4885_v53, %v2547_v2 }
 0x1b8   : > { %v2708_v5 = vrot.slane %v2706_v40, 6  ;;  %v2711_v10 = vrot.slane %v2709_v45, 7  ;;  %v2638_v52 = vsel %vm5058_vm11, %v2608_v28, 0.0  ;;  %v2609_v8 = vmax.f32 %v2599_v30, 0.0 }
 0x1b9   : > { %v2703_v57 = vsel %vm5068_vm4, %v2694_v29, %v2702_v41  ;;  %v2704_v14 = vrot.slane %v2702_v41, 4  ;;  %v3238_v3 = vpack.c.bf16 %v2638_v52, %v2638_v52  ;;  %v2356_v35 = vmul.f32 %v3720_v23, %v4880_v36 }
 0x1ba   : > { %2790 = vst [vmem:[%s4749_s10 + $0xc] sm:$0xf] %v2703_v57  ;;  %v2712_v37 = vor.u32 %v2711_v10, %v2708_v5  ;;  %v2639_v26 = vsel %vm5072_vm5, %v2609_v8, 0.0  ;;  %v2371_v47 = vadd.f32 %v4904_v48, %v2355_v7  ;;  %v2575_v43 = vmul.f32 %v4885_v53, %v2550_v58  ;;  %v2555_v31 = vpop.f32.mrb[36].mxu1 }
 0x1bb   : > { %v2716_v11 = vshrl.u32 %v3238_v3, 16  ;;  %v2719_v38 = vshll.u32 %v3238_v3, 16  ;;  %v3239_v60 = vpack.c.bf16 %v2639_v26, %v2639_v26  ;;  %v2372_v44 = vadd.f32 %v4904_v48, %v2356_v35  ;;  %v2326_v42 = vpop.f32.mrb[16].mxu0  ;;  %v3711_v27 = vpop.f32.mrb[37].mxu1 }
 0x1bc   : > { %v2713_v51 = vsel %vm5068_vm4, %v2704_v14, %v2712_v37  ;;  %v2714_v13 = vrot.slane %v2712_v37, 4  ;;  %v2584_v2 = vadd.f32 %v2574_v62, %v2371_v47  ;;  %v3721_v6 = vadd.f32 %v2326_v42, %v4843_v18  ;;  %v3689_v54 = vpop.f32.mrb[17].mxu0  ;;  %v2558_v20 = vpop.f32.mrb[38].mxu1 }
 0x1bd   : > { %2791 = vst [vmem:[%s4749_s10 + $0x10] sm:$0xf] %v2713_v51  ;;  %v2718_v1 = vrot.slane %v2716_v11, 6  ;;  %v2721_v0 = vrot.slane %v2719_v38, 7  ;;  %v2726_v63 = vshrl.u32 %v3239_v60, 16  ;;  %v2729_v21 = vshll.u32 %v3239_v60, 16 }
 0x1be   : > { %v2329_v16 = vpop.f32.mrb[18].mxu0  ;;  %v3712_v61 = vpop.f32.mrb[39].mxu1  ;;  %v2600_v24 = vadd.f32 %v4953_v12, %v2584_v2  ;;  %v2585_v25 = vadd.f32 %v2575_v43, %v2372_v44  ;;  %v2357_v58 = vmul.f32 %v3721_v6, %v4880_v36  ;;  %v2576_v34 = vmul.f32 %v4885_v53, %v2555_v31 }
 0x1bf   : > { %v3722_v29 = vadd.f32 %v2329_v16, %v4848_v19  ;;  %v3690_v15 = vpop.f32.mrb[19].mxu0  ;;  %v2722_v32 = vor.u32 %v2721_v0, %v2718_v1  ;;  %v2728_v18 = vrot.slane %v2726_v63, 6  ;;  %v2731_v33 = vrot.slane %v2729_v21, 7 }
 0x1c0   : > { %v2610_v40 = vmax.f32 %v2600_v24, 0.0  ;;  %v2601_v45 = vadd.f32 %v4953_v12, %v2585_v25  ;;  %v2373_v30 = vadd.f32 %v4904_v48, %v2357_v58  ;;  %v2577_v23 = vmul.f32 %v4885_v53, %v2558_v20  ;;  %v2798_v25 = vld [vmem:[%s4749_s10 + $0x2c] sm:$0x3] }
 0x1c1   : > { %v2358_v28 = vmul.f32 %v3722_v29, %v4880_v36  ;;  %v2723_v50 = vsel %vm5068_vm4, %v2714_v13, %v2722_v32  ;;  %v2724_v41 = vrot.slane %v2722_v32, 4  ;;  %v2732_v7 = vor.u32 %v2731_v33, %v2728_v18 }
 0x1c2   : > { %2792 = vst [vmem:[%s4749_s10 + $0x14] sm:$0xf] %v2723_v50  ;;  %v2640_v36 = vsel %vm5120_vm7, %v2610_v40, 0.0  ;;  %v2611_v62 = vmax.f32 %v2601_v45, 0.0  ;;  %v2586_v5 = vadd.f32 %v2576_v34, %v2373_v30  ;;  %v613_v57 = vsel %vm5160_vm9, %v5110_v39, %v5077_v49 }
 0x1c3   : > { %v2374_v10 = vadd.f32 %v4904_v48, %v2358_v28  ;;  %v2733_v52 = vsel %vm5068_vm4, %v2724_v41, %v2732_v7  ;;  %v3240_v8 = vpack.c.bf16 %v2640_v36, %v2640_v36  ;;  %vm622_vm14 = vcmp.lt.s32.totalorder %v612_v22, 8 }
 0x1c4   : > { %2793 = vst [vmem:[%s4749_s10 + $0x18] sm:$0xf] %v2733_v52  ;;  %v2641_v53 = vsel %vm5135_vm8, %v2611_v62, 0.0  ;;  %v2602_v59 = vadd.f32 %v4953_v12, %v2586_v5  ;;  %vm623_vm15 = vcmp.lt.s32.totalorder %v613_v57, 8  ;;  %v2734_v43 = vrot.slane %v2732_v7, 4 }
 0x1c5   : > { %v2587_v14 = vadd.f32 %v2577_v23, %v2374_v10  ;;  %v2736_v3 = vshrl.u32 %v3240_v8, 16  ;;  %v2739_v35 = vshll.u32 %v3240_v8, 16  ;;  %v3241_v37 = vpack.c.bf16 %v2641_v53, %v2641_v53 }
 0x1c6   : > { %v2612_v48 = vmax.f32 %v2602_v59, 0.0 }
 0x1c7   : > { %v2603_v49 = vadd.f32 %v4953_v12, %v2587_v14  ;;  %v2738_v39 = vrot.slane %v2736_v3, 6  ;;  %v2741_v55 = vrot.slane %v2739_v35, 7  ;;  %v2746_v26 = vshrl.u32 %v3241_v37, 16 }
 0x1c8   : > { %v2749_v47 = vshll.u32 %v3241_v37, 16  ;;  %v2642_v31 = vsel %vm622_vm14, %v2612_v48, 0.0 }
 0x1c9   : > { %v2613_v11 = vmax.f32 %v2603_v49, 0.0  ;;  %v2742_v38 = vor.u32 %v2741_v55, %v2738_v39  ;;  %v2748_v60 = vrot.slane %v2746_v26, 6  ;;  %v3242_v44 = vpack.c.bf16 %v2642_v31, %v2642_v31 }
 0x1ca   : > { %v2751_v17 = vrot.slane %v2749_v47, 7 }
 0x1cb   : > { %v2643_v42 = vsel %vm623_vm15, %v2613_v11, 0.0  ;;  %v2743_v46 = vsel %vm5068_vm4, %v2734_v43, %v2742_v38  ;;  %v2744_v9 = vrot.slane %v2742_v38, 4  ;;  %v2756_v12 = vshrl.u32 %v3242_v44, 16 }
 0x1cc   : > { %v2752_v22 = vor.u32 %v2751_v17, %v2748_v60  ;;  %2794 = vst [vmem:[%s4749_s10 + $0x1c] sm:$0xf] %v2743_v46  ;;  %v2759_v27 = vshll.u32 %v3242_v44, 16  ;;  %v3243_v51 = vpack.c.bf16 %v2643_v42, %v2643_v42 }
 0x1cd   : > { %v2758_v2 = vrot.slane %v2756_v12, 6 }
 0x1ce   : > { %v2753_v13 = vsel %vm5068_vm4, %v2744_v9, %v2752_v22  ;;  %v2761_v6 = vrot.slane %v2759_v27, 7  ;;  %v2766_v54 = vshrl.u32 %v3243_v51, 16  ;;  %v2769_v20 = vshll.u32 %v3243_v51, 16 }
 0x1cf   : > { %2795 = vst [vmem:[%s4749_s10 + $0x20] sm:$0xf] %v2753_v13  ;;  %v2754_v1 = vrot.slane %v2752_v22, 4 }
 0x1d0   : > { %v2762_v0 = vor.u32 %v2761_v6, %v2758_v2  ;;  %v2768_v63 = vrot.slane %v2766_v54, 6  ;;  %v2771_v21 = vrot.slane %v2769_v20, 7 }
 0x1d2   : > { %v2763_v16 = vsel %vm5068_vm4, %v2754_v1, %v2762_v0  ;;  %v2764_v61 = vrot.slane %v2762_v0, 4  ;;  %v2772_v24 = vor.u32 %v2771_v21, %v2768_v63 }
 0x1d3   : > { %2796 = vst [vmem:[%s4749_s10 + $0x24] sm:$0xf] %v2763_v16 }
 0x1d4   : > { %v2773_v58 = vsel %vm5068_vm4, %v2764_v61, %v2772_v24  ;;  %v2774_v29 = vrot.slane %v2772_v24, 4 }
 0x1d5   : > { %2797 = vst [vmem:[%s4749_s10 + $0x28] sm:$0xf] %v2773_v58 }
 0x1d6   : > { %v2799_v15 = vsel %vm4756_vm12, %v2774_v29, %v2798_v25 }
 0x1d7   : > { %2800 = vst [vmem:[%s4749_s10 + $0x2c] sm:$0x3] %v2799_v15 }
 0x1d8 PF: > { %s18_s29 = sadd.s32 1, %s4035_s29   ;;  %s5263_s27 = smov %s4031_s28 }
 0x1d9   : > { %p15_p5 = scmp.ge.s32.totalorder %s18_s29, 4   ;;  %s5264_s28 = smov %s5266_s30 }
 0x1db   :  { %17 = sbr.rel (!%p15_p5) target bundleno = 2 (0x2), region = 111 }

</bundles_post_ra>
